<compile_context>
chip_gen: v5e
topology: v5e:2x2
jax: 0.10.0
libtpu: 0.0.40
codegen_flags: <defaults>
</compile_context>

<pallas_src>
import jax
import jax.numpy as jnp
from jax.experimental import pallas as pl
from jax.experimental.pallas import tpu as pltpu

FEATURE_CHANNELS = [256, 512, 1024, 2048]
NUM_MANO_J = 16          # 1 root + 15 finger joints
NUM_J2D = 21             # 2D / 3D output joints (MANO 16 + 5 tips)
NUM_VERTS = 778
VP = 896                 # NUM_VERTS padded to 7*128 lanes
JLANES = 128             # joints padded to one vreg of lanes
MANO_OUT = 3 * VP + 3 * JLANES   # 3072 = 24*128
JOINT_FEATURES = 256
JW_OUT_DIM = 64
CTX_LANES = NUM_J2D * 128        # 2688 context lanes fed to the flow head
FLOW_HIDDEN = 512
NOISE_SCALE = 0.001
R6D = NUM_MANO_J * 6     # 96


# ---------------------------------------------------------------------------
# Pallas kernels
# ---------------------------------------------------------------------------
def _jw_kernel(f3_ref, f4_ref, sm_ref, w1f3_ref, w1f4_ref, w1sm_ref, b1_ref,
               w2_ref, b2_ref, o_ref):
    # First layer split into 128-aligned K=1024 / K=2048 MXU matmuls plus a
    # rank-3 VPU term (j2d x, j2d y, confidence).  (VPU term is free filler
    # next to the weight-DMA/MXU-bound matmuls; left as-is per review.)
    h = jnp.dot(f3_ref[...], w1f3_ref[...], preferred_element_type=jnp.float32)
    h = h + jnp.dot(f4_ref[...], w1f4_ref[...], preferred_element_type=jnp.float32)
    sm = sm_ref[...]                      # [TM, 3] f32
    wsm = w1sm_ref[...]                   # [3, 256] f32
    h = (h + sm[:, 0:1] * wsm[0:1, :]
           + sm[:, 1:2] * wsm[1:2, :]
           + sm[:, 2:3] * wsm[2:3, :])
    h = jnp.maximum(h + b1_ref[...], 0.0)
    o_ref[...] = (jnp.dot(h.astype(w2_ref.dtype), w2_ref[...],
                          preferred_element_type=jnp.float32) + b2_ref[...])


def _flow_kernel(ctx_ref, eps_ref, w1c_ref, b1_ref, w1e_ref, w2_ref, b2_ref,
                 o_ref, ctxh_sc):
    # Fused flow head: per-b context projection (once, into VMEM scratch) plus
    # per-sample K=96 noise term, tanh, and the 128-lane-padded output matmul.
    @pl.when(pl.program_id(1) == 0)
    def _():
        ctxh_sc[...] = (jnp.dot(ctx_ref[...], w1c_ref[...],
                                preferred_element_type=jnp.float32)
                        + b1_ref[...])
    h = ctxh_sc[...] + jnp.dot(eps_ref[...].astype(w1e_ref.dtype), w1e_ref[...],
                               preferred_element_type=jnp.float32)
    h = jnp.tanh(h)
    o_ref[...] = (jnp.dot(h.astype(w2_ref.dtype), w2_ref[...],
                          preferred_element_type=jnp.float32) + b2_ref[...])


def _mano_kernel(shape_ref, pose_ref, rot_ref, sdirs_ref, pdirs_ref, tmpl_ref,
                 v_ref, j_ref):
    # shape [TM,10] bf16, pose [TM,135] bf16, rot [TM,9] f32 (row-major 3x3)
    # sdirs [10, 3072] bf16, pdirs [135, 3072] bf16, tmpl [1, 3072] f32
    #   columns 0..2687  : per-axis vertices (axis-major, 896 lanes each)
    #   columns 2688..3071: per-axis unrotated joints (joint regressor folded in)
    # v_ref [TM, 3*VP] f32, j_ref [TM, 3*128] f32   (axis-major, lane-dense)
    vj = (jnp.dot(shape_ref[...], sdirs_ref[...],
                  preferred_element_type=jnp.float32)
          + jnp.dot(pose_ref[...], pdirs_ref[...],
                    preferred_element_type=jnp.float32)
          + tmpl_ref[...])
    rot = rot_ref[...]
    v0 = vj[:, 0 * VP:1 * VP]
    v1 = vj[:, 1 * VP:2 * VP]
    v2 = vj[:, 2 * VP:3 * VP]
    j0 = vj[:, 3 * VP + 0 * JLANES:3 * VP + 1 * JLANES]
    j1 = vj[:, 3 * VP + 1 * JLANES:3 * VP + 2 * JLANES]
    j2 = vj[:, 3 * VP + 2 * JLANES:3 * VP + 3 * JLANES]
    for i in range(3):
        r0 = rot[:, 3 * i + 0:3 * i + 1]
        r1 = rot[:, 3 * i + 1:3 * i + 2]
        r2 = rot[:, 3 * i + 2:3 * i + 3]
        v_ref[:, i * VP:(i + 1) * VP] = r0 * v0 + r1 * v1 + r2 * v2
        j_ref[:, i * JLANES:(i + 1) * JLANES] = r0 * j0 + r1 * j1 + r2 * j2


# ---------------------------------------------------------------------------
# Pallas wrappers (row-tiled grid, pinned weights, lane-dense 128-pad outputs)
# ---------------------------------------------------------------------------
def _round_up(x, m):
    return ((x + m - 1) // m) * m


def _tile_and_pad(rows):
    """Pick a row tile: >=2 grid steps when possible (v7x megacore), capped at
    512 rows (amortizes per-step overhead on v5e/v6e without blowing VMEM)."""
    r8 = _round_up(max(rows, 1), 8)
    tm = max(8, min(512, _round_up((r8 + 1) // 2, 8)))
    rows_pad = _round_up(r8, tm)
    return tm, rows_pad


def _flow_tiles(n):
    npad = _round_up(max(n, 1), 8)
    tn = min(npad, 128)
    npad = _round_up(npad, tn)
    return tn, npad


def _pad_rows(x, rows_pad):
    pad = rows_pad - x.shape[0]
    return jnp.pad(x, ((0, pad), (0, 0))) if pad else x


def _tile_spec(tm, cols):
    return pl.BlockSpec((tm, cols), lambda i: (i, 0))


def _pin_spec(shape):
    nd = len(shape)
    return pl.BlockSpec(shape, lambda *args, _n=nd: (0,) * _n)


def _cparams(semantics):
    return pltpu.CompilerParams(dimension_semantics=semantics,
                                vmem_limit_bytes=32 * 1024 * 1024)


def _nbytes(*arrs):
    return int(sum(int(a.size) * a.dtype.itemsize for a in arrs))


def jointwise_mlp(f3_feat, f4_feat, small, params):
    """Per-joint projection MLP; returns [rows, 128] f32 (first 64 lanes valid,
    the rest exactly zero)."""
    rows = f3_feat.shape[0]
    tm, rows_pad = _tile_and_pad(rows)
    f3p = _pad_rows(f3_feat, rows_pad)
    f4p = _pad_rows(f4_feat, rows_pad)
    smp = _pad_rows(small, rows_pad)
    w1f3, w1f4, w1sm = params['jw_w1_f3'], params['jw_w1_f4'], params['jw_w1_sm']
    b1, w2, b2 = params['jw_b1'], params['jw_w2'], params['jw_b2']
    flops = 2 * rows_pad * (1024 + 2048) * JOINT_FEATURES + 2 * rows_pad * JOINT_FEATURES * 128
    bytes_acc = _nbytes(f3p, f4p, smp, w1f3, w1f4, w1sm, b1, w2, b2) + rows_pad * 128 * 4
    out = pl.pallas_call(
        _jw_kernel,
        grid=(rows_pad // tm,),
        in_specs=[_tile_spec(tm, f3p.shape[1]),
                  _tile_spec(tm, f4p.shape[1]),
                  _tile_spec(tm, smp.shape[1]),
                  _pin_spec(w1f3.shape), _pin_spec(w1f4.shape), _pin_spec(w1sm.shape),
                  _pin_spec(b1.shape), _pin_spec(w2.shape), _pin_spec(b2.shape)],
        out_specs=_tile_spec(tm, 128),
        out_shape=jax.ShapeDtypeStruct((rows_pad, 128), jnp.float32),
        compiler_params=_cparams(("parallel",)),
        cost_estimate=pl.CostEstimate(flops=flops, transcendentals=0,
                                      bytes_accessed=bytes_acc),
    )(f3p, f4p, smp, w1f3, w1f4, w1sm, b1, w2, b2)
    return out[:rows]


def flow_sample_mlp(context, eps, params):
    """Fused flow head.

    context: [B, CTX_LANES] (21*128, per-joint 64-valid/64-zero lanes)
    eps:     [B, N, 96] f32
    returns  [B, N, 128] f32 (96 r6d lanes + 1 log-prob lane + zero pad).
    """
    B, N = eps.shape[0], eps.shape[1]
    tn, n_pad = _flow_tiles(N)
    ctx3 = context.reshape(B, 1, CTX_LANES).astype(jnp.bfloat16)
    epsp = jnp.pad(eps, ((0, 0), (0, n_pad - N), (0, 0))) if n_pad != N else eps
    w1c, b1 = params['fl_w1_ctx'], params['fl_b1']
    w1e, w2, b2 = params['fl_w1_eps'], params['fl_w2'], params['fl_b2']
    flops = (2 * B * CTX_LANES * FLOW_HIDDEN
             + 2 * B * n_pad * (R6D * FLOW_HIDDEN + FLOW_HIDDEN * 128))
    bytes_acc = _nbytes(ctx3, epsp, w1c, b1, w1e, w2, b2) + B * n_pad * 128 * 4
    out = pl.pallas_call(
        _flow_kernel,
        grid=(B, n_pad // tn),
        in_specs=[pl.BlockSpec((None, 1, CTX_LANES), lambda b, n: (b, 0, 0)),
                  pl.BlockSpec((None, tn, R6D), lambda b, n: (b, n, 0)),
                  _pin_spec(w1c.shape), _pin_spec(b1.shape),
                  _pin_spec(w1e.shape), _pin_spec(w2.shape), _pin_spec(b2.shape)],
        out_specs=pl.BlockSpec((None, tn, 128), lambda b, n: (b, n, 0)),
        out_shape=jax.ShapeDtypeStruct((B, n_pad, 128), jnp.float32),
        scratch_shapes=[pltpu.VMEM((1, FLOW_HIDDEN), jnp.float32)],
        compiler_params=_cparams(("parallel", "arbitrary")),
        cost_estimate=pl.CostEstimate(flops=flops,
                                      transcendentals=B * n_pad * FLOW_HIDDEN,
                                      bytes_accessed=bytes_acc),
    )(ctx3, epsp, w1c, b1, w1e, w2, b2)
    return out[:, :N]


def mano_forward(shape_vec, pose_feat, rot9, params):
    """Shape/pose blendshapes + root rotation + (folded-in) joint regression.

    Returns ([BN, 778, 3], [BN, 21, 3]).
    """
    rows = shape_vec.shape[0]
    tm, rows_pad = _tile_and_pad(rows)
    sp = _pad_rows(shape_vec.astype(jnp.bfloat16), rows_pad)
    pp = _pad_rows(pose_feat.astype(jnp.bfloat16), rows_pad)
    rp = _pad_rows(rot9, rows_pad)
    sdirs, pdirs, tmpl = params['mano_sdirs'], params['mano_pdirs'], params['mano_tmpl']
    flops = 2 * rows_pad * (10 + 135) * MANO_OUT
    bytes_acc = (_nbytes(sp, pp, rp, sdirs, pdirs, tmpl)
                 + rows_pad * (3 * VP + 3 * JLANES) * 4)
    v_pad, j_pad = pl.pallas_call(
        _mano_kernel,
        grid=(rows_pad // tm,),
        in_specs=[_tile_spec(tm, 10), _tile_spec(tm, 135), _tile_spec(tm, 9),
                  _pin_spec(sdirs.shape), _pin_spec(pdirs.shape),
                  _pin_spec(tmpl.shape)],
        out_specs=(_tile_spec(tm, 3 * VP), _tile_spec(tm, 3 * JLANES)),
        out_shape=(jax.ShapeDtypeStruct((rows_pad, 3 * VP), jnp.float32),
                   jax.ShapeDtypeStruct((rows_pad, 3 * JLANES), jnp.float32)),
        compiler_params=_cparams(("parallel",)),
        cost_estimate=pl.CostEstimate(flops=flops, transcendentals=0,
                                      bytes_accessed=bytes_acc),
    )(sp, pp, rp, sdirs, pdirs, tmpl)
    # Axis-major kernel output; only transpose at the API boundary (preds need [..., 3]).
    v = v_pad[:rows].reshape(rows, 3, VP)[:, :, :NUM_VERTS]
    j = j_pad[:rows].reshape(rows, 3, JLANES)[:, :, :NUM_J2D]
    return jnp.transpose(v, (0, 2, 1)), jnp.transpose(j, (0, 2, 1))


# ---------------------------------------------------------------------------
# JAX glue
# ---------------------------------------------------------------------------
def sample_feats_nchw(fmap, j2d):
    """Nearest-neighbor sampling of NCHW features at normalized (x,y) joint coords."""
    # TODO(synk): original JointWiseEnhanceLayer likely uses bilinear grid_sample;
    #             nearest-neighbor gather used here as the gather glue.
    B, C, H, W = fmap.shape
    x = jnp.clip(jnp.round(j2d[..., 0] * (W - 1)).astype(jnp.int32), 0, W - 1)
    y = jnp.clip(jnp.round(j2d[..., 1] * (H - 1)).astype(jnp.int32), 0, H - 1)
    idx = y * W + x                                              # [B, J]
    flat = jnp.transpose(fmap.reshape(B, C, H * W), (0, 2, 1))   # [B, HW, C]
    return jnp.take_along_axis(flat, idx[..., None], axis=1)     # [B, J, C]


def rot6d_to_rotmat(x):
    """[..., 6] -> [..., 3, 3] via Gram-Schmidt (columns b1,b2,b3)."""
    a1, a2 = x[..., :3], x[..., 3:]
    b1 = a1 / (jnp.linalg.norm(a1, axis=-1, keepdims=True) + 1e-8)
    b2 = a2 - jnp.sum(b1 * a2, axis=-1, keepdims=True) * b1
    b2 = b2 / (jnp.linalg.norm(b2, axis=-1, keepdims=True) + 1e-8)
    b3 = jnp.cross(b1, b2)
    return jnp.stack([b1, b2, b3], axis=-1)


def init_params(key):
    ks = jax.random.split(key, 12)

    def dense(k, shape, scale, dtype=jnp.float32):
        return (jax.random.normal(k, shape, jnp.float32) * scale).astype(dtype)

    p = {}
    # --- JointWiseEnhanceLayer projection: first layer split (== [3075,256] weight) ---
    s_jw = 1.0 / (3075.0 ** 0.5)
    p['jw_w1_f3'] = dense(ks[0], (FEATURE_CHANNELS[2], JOINT_FEATURES), s_jw, jnp.bfloat16)
    p['jw_w1_f4'] = dense(ks[1], (FEATURE_CHANNELS[3], JOINT_FEATURES), s_jw, jnp.bfloat16)
    p['jw_w1_sm'] = dense(ks[2], (3, JOINT_FEATURES), s_jw, jnp.float32)
    p['jw_b1'] = jnp.zeros((1, JOINT_FEATURES), jnp.float32)
    w2jw = dense(ks[3], (JOINT_FEATURES, JW_OUT_DIM), 1.0 / (256.0 ** 0.5))
    p['jw_w2'] = (jnp.zeros((JOINT_FEATURES, 128), jnp.bfloat16)
                  .at[:, :JW_OUT_DIM].set(w2jw.astype(jnp.bfloat16)))
    p['jw_b2'] = jnp.zeros((1, 128), jnp.float32)

    # --- GlowRmtPredictor sampling head: fused first layer ---
    # Context weight laid out for the 21*128-lane zero-padded context (rows
    # j*128 .. j*128+63 hold joint j's 64 features; padded rows are zero).
    ctx_dim = NUM_J2D * JW_OUT_DIM                     # 1344 logical
    s_fl = 1.0 / ((ctx_dim + R6D) ** 0.5)
    wctx = dense(ks[4], (NUM_J2D, JW_OUT_DIM, FLOW_HIDDEN), s_fl)
    w1ctx = (jnp.zeros((NUM_J2D, 128, FLOW_HIDDEN), jnp.float32)
             .at[:, :JW_OUT_DIM, :].set(wctx))
    p['fl_w1_ctx'] = w1ctx.reshape(CTX_LANES, FLOW_HIDDEN).astype(jnp.bfloat16)
    p['fl_w1_eps'] = dense(ks[5], (R6D, FLOW_HIDDEN), s_fl, jnp.bfloat16)
    p['fl_b1'] = jnp.zeros((1, FLOW_HIDDEN), jnp.float32)
    w2fl = dense(ks[6], (FLOW_HIDDEN, R6D + 1), 1.0 / (512.0 ** 0.5))
    p['fl_w2'] = (jnp.zeros((FLOW_HIDDEN, 128), jnp.bfloat16)
                  .at[:, :R6D + 1].set(w2fl.astype(jnp.bfloat16)))
    b2 = jnp.zeros((128,), jnp.float32)
    b2 = b2.at[jnp.arange(NUM_MANO_J) * 6 + 0].set(1.0)   # bias toward identity-ish rotations
    b2 = b2.at[jnp.arange(NUM_MANO_J) * 6 + 4].set(1.0)
    p['fl_b2'] = b2[None, :]

    # --- Simplified RotMatrixManolayer params: fused (axis,vertex|joint) lane layout.
    #     Joint regressor folded into the blendshape/template columns (exact algebra:
    #     rotation over axes and regression over vertices commute). bf16 dirs, f32 tmpl.
    sd = dense(ks[7], (3, 10, NUM_VERTS), 0.01)
    pd = dense(ks[8], (3, 135, NUM_VERTS), 0.001)
    tv = dense(ks[9], (3, NUM_VERTS), 0.1)
    jr = jax.random.uniform(ks[10], (NUM_J2D, NUM_VERTS), jnp.float32)
    jr = jr / jnp.sum(jr, axis=1, keepdims=True)          # [21, 778]
    sdirs = jnp.zeros((10, MANO_OUT), jnp.float32)
    pdirs = jnp.zeros((135, MANO_OUT), jnp.float32)
    tmpl = jnp.zeros((1, MANO_OUT), jnp.float32)
    for a in range(3):
        sdirs = sdirs.at[:, a * VP:a * VP + NUM_VERTS].set(sd[a])
        pdirs = pdirs.at[:, a * VP:a * VP + NUM_VERTS].set(pd[a])
        tmpl = tmpl.at[0, a * VP:a * VP + NUM_VERTS].set(tv[a])
        jc = 3 * VP + a * JLANES
        sdirs = sdirs.at[:, jc:jc + NUM_J2D].set(sd[a] @ jr.T)
        pdirs = pdirs.at[:, jc:jc + NUM_J2D].set(pd[a] @ jr.T)
        tmpl = tmpl.at[0, jc:jc + NUM_J2D].set(tv[a] @ jr.T)
    p['mano_sdirs'] = sdirs.astype(jnp.bfloat16)
    p['mano_pdirs'] = pdirs.astype(jnp.bfloat16)
    p['mano_tmpl'] = tmpl                                  # f32 (largest magnitudes)
    return p


def amb_hand_stage2_forward(image_features, batch_data, stage1_preds, params,
                            num_samples, noise_key):
    del batch_data  # only used by the training branch (see TODO below)
    f3, f4 = image_features[2], image_features[3]

    sampled_j2ds = jax.lax.stop_gradient(stage1_preds['amb_j2d'])   # [B, 21, 2]
    heatmap_j2ds = jax.lax.stop_gradient(stage1_preds['hm_j2d'])    # [B, 21, 2]
    heatmap_cfds = jax.lax.stop_gradient(stage1_preds['hm_cfd'])    # [B, 21, 1]
    weakcam = jax.lax.stop_gradient(stage1_preds['z0_weakcam'])     # [B, 3]
    shape = jax.lax.stop_gradient(stage1_preds['z0_shape'])         # [B, 10]

    B, N = sampled_j2ds.shape[0], num_samples

    # ----- jointWiseResampler -----
    f3_feat = sample_feats_nchw(f3, sampled_j2ds).reshape(B * NUM_J2D, -1).astype(jnp.bfloat16)
    f4_feat = sample_feats_nchw(f4, sampled_j2ds).reshape(B * NUM_J2D, -1).astype(jnp.bfloat16)
    small = jnp.concatenate([sampled_j2ds, heatmap_cfds],
                            axis=-1).reshape(B * NUM_J2D, 3).astype(jnp.float32)
    ctx_per_joint = jointwise_mlp(f3_feat, f4_feat, small, params)   # [B*21, 128] (64 valid + zero pad)
    context = ctx_per_joint.reshape(B, CTX_LANES)                    # [B, 2688], no 64-lane slice
    inner_j2d, inner_cfd = heatmap_j2ds, heatmap_cfds

    # ----- flowPredictor.generate_random_samples (fused ctx projection + sampling head) -----
    eps = NOISE_SCALE * jax.random.normal(noise_key, (B, N, R6D), jnp.float32)
    flow_out = flow_sample_mlp(context, eps, params)                 # [B, N, 128]
    pred_r6d = flow_out[..., :R6D].reshape(B * N, NUM_MANO_J, 6)
    sampled_logp = flow_out[..., R6D]                                # [B, N]
    pred_rmt = rot6d_to_rotmat(pred_r6d)                             # [B*N, 16, 3, 3]

    # TODO(synk): training branch (get_inputs_log_prob of the Glow flow over gt_amb_rmt)
    #             has no clean equivalent without the full flow; eval path used.
    pred_logp = jnp.zeros((B, N), jnp.float32)

    # ----- MANO layer -----
    _amb_rmt = pred_rmt.reshape(-1, NUM_MANO_J, 3, 3)
    _amb_cam = jnp.broadcast_to(weakcam[:, None, :], (B, N, 3)).reshape(-1, 1, 3)
    _amb_shape = jnp.broadcast_to(shape[:, None, :], (B, N, 10)).reshape(-1, 10)

    root_rmt = _amb_rmt[:, 0]                                         # [BN, 3, 3]
    finger_rmt = _amb_rmt[:, 1:]                                      # [BN, 15, 3, 3]
    # TODO(synk): full MANO LBS skinning not reproduced; root rotation + shape/pose
    #             corrective blendshapes + joint regression capture the hot matmuls.
    pose_feat = (finger_rmt - jnp.eye(3, dtype=jnp.float32)).reshape(-1, 15 * 9)
    rot9 = root_rmt.reshape(-1, 9)
    pred_amb_v3d, pred_amb_j3d = mano_forward(_amb_shape, pose_feat, rot9, params)

    pred_amb_j2d = (pred_amb_j3d[..., :2] * 1000.0 * _amb_cam[..., :1]
                    + _amb_cam[..., 1:])                              # [BN, 21, 2]

    # ----- pack predictions -----
    pred_logp = pred_logp.reshape(B, -1)
    pred_rmt = pred_rmt.reshape(B, N, NUM_MANO_J, 3, 3)
    pred_r6d = pred_r6d.reshape(B, N, NUM_MANO_J, 6)
    pred_amb_v3d = pred_amb_v3d.reshape(B, N, NUM_VERTS, 3)
    pred_amb_j3d = pred_amb_j3d.reshape(B, N, NUM_J2D, 3)
    pred_amb_j2d = pred_amb_j2d.reshape(B, N, NUM_J2D, 2)
    _amb_shape = _amb_shape.reshape(B, N, 10)
    _amb_cam = _amb_cam.reshape(B, N, 3)

    preds = dict(
        log_p=pred_logp, log_p_sampled=sampled_logp,
        amb_shape=_amb_shape, amb_weakcam=_amb_cam,
        amb_rmt=pred_rmt, amb_r6d=pred_r6d,
        amb_v3d=pred_amb_v3d, amb_j3d=pred_amb_j3d, amb_j2d=pred_amb_j2d,
        z0_shape=_amb_shape[:, 0], z0_weakcam=_amb_cam[:, 0],
        z0_rmt=pred_rmt[:, 0], z0_r6d=pred_r6d[:, 0],
        z0_v3d=pred_amb_v3d[:, 0], z0_j3d=pred_amb_j3d[:, 0], z0_j2d=pred_amb_j2d[:, 0],
        inner_j2d=inner_j2d, inner_cfd=inner_cfd,
    )
    return preds


# ---------------------------------------------------------------------------
if __name__ == "__main__":
    B, N = 2, 4
    key = jax.random.PRNGKey(0)
    kp, kf0, kf1, kf2, kf3, kj, kc, kw, ks, knoise, kimg = jax.random.split(key, 11)

    params = init_params(kp)

    # backbone pyramid (NCHW), small spatial sizes
    image_features = [
        jax.random.normal(kf0, (B, 256, 16, 16), jnp.float32) * 0.1,
        jax.random.normal(kf1, (B, 512, 8, 8), jnp.float32) * 0.1,
        jax.random.normal(kf2, (B, 1024, 4, 4), jnp.float32) * 0.1,
        jax.random.normal(kf3, (B, 2048, 2, 2), jnp.float32) * 0.1,
    ]

    j2d = jax.random.uniform(kj, (B, NUM_J2D, 2), jnp.float32)
    stage1_preds = dict(
        amb_j2d=j2d,
        hm_j2d=j2d + 0.01,
        hm_cfd=jax.random.uniform(kc, (B, NUM_J2D, 1), jnp.float32),
        z0_weakcam=jnp.concatenate(
            [jnp.ones((B, 1), jnp.float32),
             jax.random.normal(kw, (B, 2), jnp.float32) * 0.1], axis=-1),
        z0_shape=jax.random.normal(ks, (B, 10), jnp.float32) * 0.1,
    )

    batch_data = dict(  # only touched by the (unimplemented) training branch
        images=jax.random.normal(kimg, (B, 3, 64, 64), jnp.float32),
        root_rmt=jnp.broadcast_to(jnp.eye(3, dtype=jnp.float32), (B, 1, 3, 3)),
        multi_rmt=jnp.broadcast_to(jnp.eye(3, dtype=jnp.float32), (B, 2, 15, 3, 3)),
        hand_rmt=jnp.broadcast_to(jnp.eye(3, dtype=jnp.float32), (B, 15, 3, 3)),
    )

    preds = amb_hand_stage2_forward(image_features, batch_data, stage1_preds,
                                    params, num_samples=N, noise_key=knoise)
    preds = jax.tree_util.tree_map(lambda a: jax.block_until_ready(a), preds)

    assert preds['amb_rmt'].shape == (B, N, NUM_MANO_J, 3, 3)
    assert preds['amb_r6d'].shape == (B, N, NUM_MANO_J, 6)
    assert preds['amb_v3d'].shape == (B, N, NUM_VERTS, 3)
    assert preds['amb_j3d'].shape == (B, N, NUM_J2D, 3)
    assert preds['amb_j2d'].shape == (B, N, NUM_J2D, 2)
    assert preds['log_p'].shape == (B, N)
    assert preds['log_p_sampled'].shape == (B, N)
    assert preds['z0_v3d'].shape == (B, NUM_VERTS, 3)
    assert bool(jnp.all(jnp.isfinite(preds['amb_v3d'])))
    print("KERNEL_OK")
</pallas_src>

<mosaic_0001>
module attributes {stable_mosaic.version = 11 : i64} {
  func.func @_jw_kernel(%arg0: i32, %arg1: memref<24x1024xbf16, #tpu.memory_space<vmem>>, %arg2: memref<24x2048xbf16, #tpu.memory_space<vmem>>, %arg3: memref<24x3xf32, #tpu.memory_space<vmem>>, %arg4: memref<1024x256xbf16, #tpu.memory_space<vmem>>, %arg5: memref<2048x256xbf16, #tpu.memory_space<vmem>>, %arg6: memref<3x256xf32, #tpu.memory_space<vmem>>, %arg7: memref<1x256xf32, #tpu.memory_space<vmem>>, %arg8: memref<256x128xbf16, #tpu.memory_space<vmem>>, %arg9: memref<1x128xf32, #tpu.memory_space<vmem>>, %arg10: memref<24x128xf32, #tpu.memory_space<vmem>>) attributes {dimension_semantics = [#tpu.dimension_semantics<parallel>], iteration_bounds = array<i64: 2>, scalar_prefetch = 0 : i64, scratch_operands = 0 : i64, tpu.core_type = #tpu.core_type<tc>, window_params = [{transform_indices = @transform_0, window_bounds = array<i64: 24, 1024>}, {transform_indices = @transform_1, window_bounds = array<i64: 24, 2048>}, {transform_indices = @transform_2, window_bounds = array<i64: 24, 3>}, {pipeline_mode = #tpu.pipeline_mode<synchronous>, transform_indices = @transform_3, window_bounds = array<i64: 1024, 256>}, {pipeline_mode = #tpu.pipeline_mode<synchronous>, transform_indices = @transform_4, window_bounds = array<i64: 2048, 256>}, {pipeline_mode = #tpu.pipeline_mode<synchronous>, transform_indices = @transform_5, window_bounds = array<i64: 3, 256>}, {pipeline_mode = #tpu.pipeline_mode<synchronous>, transform_indices = @transform_6, window_bounds = array<i64: 1, 256>}, {pipeline_mode = #tpu.pipeline_mode<synchronous>, transform_indices = @transform_7, window_bounds = array<i64: 256, 128>}, {pipeline_mode = #tpu.pipeline_mode<synchronous>, transform_indices = @transform_8, window_bounds = array<i64: 1, 128>}, {transform_indices = @transform_9, window_bounds = array<i64: 24, 128>}]} {
    %c0 = arith.constant 0 : index
    %c0_0 = arith.constant 0 : index
    %0 = vector.load %arg1[%c0, %c0_0] : memref<24x1024xbf16, #tpu.memory_space<vmem>>, vector<24x1024xbf16>
    %c0_1 = arith.constant 0 : index
    %c0_2 = arith.constant 0 : index
    %1 = vector.load %arg4[%c0_1, %c0_2] : memref<1024x256xbf16, #tpu.memory_space<vmem>>, vector<1024x256xbf16>
    %cst = arith.constant dense<0.000000e+00> : vector<24x256xf32>
    %2 = tpu.matmul %0, %1, %cst {dimension_numbers = #tpu.dot_dimension_numbers<[1], [0], [0], [1], [0, 0, 1, 1], [], []>} : vector<24x1024xbf16>, vector<1024x256xbf16>, vector<24x256xf32> -> vector<24x256xf32>
    %c0_3 = arith.constant 0 : index
    %c0_4 = arith.constant 0 : index
    %3 = vector.load %arg2[%c0_3, %c0_4] : memref<24x2048xbf16, #tpu.memory_space<vmem>>, vector<24x2048xbf16>
    %c0_5 = arith.constant 0 : index
    %c0_6 = arith.constant 0 : index
    %4 = vector.load %arg5[%c0_5, %c0_6] : memref<2048x256xbf16, #tpu.memory_space<vmem>>, vector<2048x256xbf16>
    %cst_7 = arith.constant dense<0.000000e+00> : vector<24x256xf32>
    %5 = tpu.matmul %3, %4, %cst_7 {dimension_numbers = #tpu.dot_dimension_numbers<[1], [0], [0], [1], [0, 0, 1, 1], [], []>} : vector<24x2048xbf16>, vector<2048x256xbf16>, vector<24x256xf32> -> vector<24x256xf32>
    %6 = arith.addf %2, %5 : vector<24x256xf32>
    %c0_8 = arith.constant 0 : index
    %c0_9 = arith.constant 0 : index
    %7 = vector.load %arg3[%c0_8, %c0_9] : memref<24x3xf32, #tpu.memory_space<vmem>>, vector<24x3xf32>
    %c0_10 = arith.constant 0 : index
    %c0_11 = arith.constant 0 : index
    %8 = vector.load %arg6[%c0_10, %c0_11] : memref<3x256xf32, #tpu.memory_space<vmem>>, vector<3x256xf32>
    %9 = vector.extract_strided_slice %7 {offsets = [0, 0], sizes = [24, 1], strides = [1, 1]} : vector<24x3xf32> to vector<24x1xf32>
    %10 = vector.extract_strided_slice %8 {offsets = [0, 0], sizes = [1, 256], strides = [1, 1]} : vector<3x256xf32> to vector<1x256xf32>
    %11 = vector.broadcast %9 : vector<24x1xf32> to vector<24x256xf32>
    %12 = vector.broadcast %10 : vector<1x256xf32> to vector<24x256xf32>
    %13 = arith.mulf %11, %12 : vector<24x256xf32>
    %14 = arith.addf %6, %13 : vector<24x256xf32>
    %15 = vector.extract_strided_slice %7 {offsets = [0, 1], sizes = [24, 1], strides = [1, 1]} : vector<24x3xf32> to vector<24x1xf32>
    %16 = vector.extract_strided_slice %8 {offsets = [1, 0], sizes = [1, 256], strides = [1, 1]} : vector<3x256xf32> to vector<1x256xf32>
    %17 = vector.broadcast %15 : vector<24x1xf32> to vector<24x256xf32>
    %18 = vector.broadcast %16 : vector<1x256xf32> to vector<24x256xf32>
    %19 = arith.mulf %17, %18 : vector<24x256xf32>
    %20 = arith.addf %14, %19 : vector<24x256xf32>
    %21 = vector.extract_strided_slice %7 {offsets = [0, 2], sizes = [24, 1], strides = [1, 1]} : vector<24x3xf32> to vector<24x1xf32>
    %22 = vector.extract_strided_slice %8 {offsets = [2, 0], sizes = [1, 256], strides = [1, 1]} : vector<3x256xf32> to vector<1x256xf32>
    %23 = vector.broadcast %21 : vector<24x1xf32> to vector<24x256xf32>
    %24 = vector.broadcast %22 : vector<1x256xf32> to vector<24x256xf32>
    %25 = arith.mulf %23, %24 : vector<24x256xf32>
    %26 = arith.addf %20, %25 : vector<24x256xf32>
    %c0_12 = arith.constant 0 : index
    %c0_13 = arith.constant 0 : index
    %27 = vector.load %arg7[%c0_12, %c0_13] : memref<1x256xf32, #tpu.memory_space<vmem>>, vector<1x256xf32>
    %28 = vector.broadcast %27 : vector<1x256xf32> to vector<24x256xf32>
    %29 = arith.addf %26, %28 : vector<24x256xf32>
    %cst_14 = arith.constant 0.000000e+00 : f32
    %30 = vector.broadcast %cst_14 : f32 to vector<24x256xf32>
    %31 = arith.maximumf %29, %30 : vector<24x256xf32>
    %32 = arith.truncf %31 : vector<24x256xf32> to vector<24x256xbf16>
    %c0_15 = arith.constant 0 : index
    %c0_16 = arith.constant 0 : index
    %33 = vector.load %arg8[%c0_15, %c0_16] : memref<256x128xbf16, #tpu.memory_space<vmem>>, vector<256x128xbf16>
    %cst_17 = arith.constant dense<0.000000e+00> : vector<24x128xf32>
    %34 = tpu.matmul %32, %33, %cst_17 {dimension_numbers = #tpu.dot_dimension_numbers<[1], [0], [0], [1], [0, 0, 1, 1], [], []>} : vector<24x256xbf16>, vector<256x128xbf16>, vector<24x128xf32> -> vector<24x128xf32>
    %c0_18 = arith.constant 0 : index
    %c0_19 = arith.constant 0 : index
    %35 = vector.load %arg9[%c0_18, %c0_19] : memref<1x128xf32, #tpu.memory_space<vmem>>, vector<1x128xf32>
    %36 = vector.broadcast %35 : vector<1x128xf32> to vector<24x128xf32>
    %37 = arith.addf %34, %36 : vector<24x128xf32>
    %c0_20 = arith.constant 0 : index
    %c0_21 = arith.constant 0 : index
    %38 = vector.load %arg10[%c0_20, %c0_21] : memref<24x128xf32, #tpu.memory_space<vmem>>, vector<24x128xf32>
    tpu.vector_store %arg10[%c0_20, %c0_21], %37 {strides = array<i32>} : memref<24x128xf32, #tpu.memory_space<vmem>>, vector<24x128xf32>,
    return
  }
  func.func @transform_0(%arg0: i32) -> (i32, i32) {
    %c0_i32 = arith.constant 0 : i32
    %c0_i32_0 = arith.constant 0 : i32
    return %arg0, %c0_i32 : i32, i32
  }
  func.func @transform_1(%arg0: i32) -> (i32, i32) {
    %c0_i32 = arith.constant 0 : i32
    %c0_i32_0 = arith.constant 0 : i32
    return %arg0, %c0_i32 : i32, i32
  }
  func.func @transform_2(%arg0: i32) -> (i32, i32) {
    %c0_i32 = arith.constant 0 : i32
    %c0_i32_0 = arith.constant 0 : i32
    return %arg0, %c0_i32 : i32, i32
  }
  func.func @transform_3(%arg0: i32) -> (i32, i32) {
    %c0_i32 = arith.constant 0 : i32
    %c0_i32_0 = arith.constant 0 : i32
    %c0_i32_1 = arith.constant 0 : i32
    return %c0_i32, %c0_i32_0 : i32, i32
  }
  func.func @transform_4(%arg0: i32) -> (i32, i32) {
    %c0_i32 = arith.constant 0 : i32
    %c0_i32_0 = arith.constant 0 : i32
    %c0_i32_1 = arith.constant 0 : i32
    return %c0_i32, %c0_i32_0 : i32, i32
  }
  func.func @transform_5(%arg0: i32) -> (i32, i32) {
    %c0_i32 = arith.constant 0 : i32
    %c0_i32_0 = arith.constant 0 : i32
    %c0_i32_1 = arith.constant 0 : i32
    return %c0_i32, %c0_i32_0 : i32, i32
  }
  func.func @transform_6(%arg0: i32) -> (i32, i32) {
    %c0_i32 = arith.constant 0 : i32
    %c0_i32_0 = arith.constant 0 : i32
    %c0_i32_1 = arith.constant 0 : i32
    return %c0_i32, %c0_i32_0 : i32, i32
  }
  func.func @transform_7(%arg0: i32) -> (i32, i32) {
    %c0_i32 = arith.constant 0 : i32
    %c0_i32_0 = arith.constant 0 : i32
    %c0_i32_1 = arith.constant 0 : i32
    return %c0_i32, %c0_i32_0 : i32, i32
  }
  func.func @transform_8(%arg0: i32) -> (i32, i32) {
    %c0_i32 = arith.constant 0 : i32
    %c0_i32_0 = arith.constant 0 : i32
    %c0_i32_1 = arith.constant 0 : i32
    return %c0_i32, %c0_i32_0 : i32, i32
  }
  func.func @transform_9(%arg0: i32) -> (i32, i32) {
    %c0_i32 = arith.constant 0 : i32
    %c0_i32_0 = arith.constant 0 : i32
    return %arg0, %c0_i32 : i32, i32
  }
}

</mosaic_0001>

<bundles_post_ra>
// kernel: tpu_custom_call.1
= control target key start
LH: loop header
LB: loop body
LE: loop exit
PB: predicated region body
PF: predicated region fallthrough
CT: control target
= control target key end

     0   :  { %s7517_s0 = inlined_call_operand.hbm [shape: bf16[48,1024], index: 0, kind: input, shape index: {}]   ;;  %s7518_s1 = inlined_call_operand.hbm [shape: bf16[48,2048], index: 1, kind: input, shape index: {}]   ;;  %s7519_s2 = inlined_call_operand.vmem [shape: f32[48,3], index: 2, kind: input, shape index: {}]   ;;  %s7520_s3 = inlined_call_operand.hbm [shape: bf16[1024,256], index: 3, kind: input, shape index: {}]   ;;  %s7521_s4 = inlined_call_operand.hbm [shape: bf16[2048,256], index: 4, kind: input, shape index: {}]   ;;  %s7522_s5 = inlined_call_operand.vmem [shape: f32[3,256], index: 5, kind: input, shape index: {}]   ;;  %s7523_s6 = inlined_call_operand.vmem [shape: f32[1,256], index: 6, kind: input, shape index: {}]   ;;  %s7524_s7 = inlined_call_operand.hbm [shape: bf16[256,128], index: 7, kind: input, shape index: {}]   ;;  %s7525_s8 = inlined_call_operand.vmem [shape: f32[1,128], index: 8, kind: input, shape index: {}]   ;;  %s7526_s9 = inlined_call_operand.hbm [shape: f32[48,128], index: 9, kind: output, shape index: {}]  }
   0x1   :  { %7534 = sst [smem:[#allocation23_spill]] %s7517_s0 }
   0x2   :  { %7535 = sst [smem:[#allocation24_spill]] %s7520_s3 }
   0x3   :  { %7536 = sst [smem:[#allocation25_spill]] %s7521_s4 }
   0x4   :  { %7537 = sst [smem:[#allocation26_spill]] %s7524_s7 }
   0x5   :  { %14 = vsyncpa [#allocation3], 0 }
   0x6   :  { %16 = vsyncpa [#allocation3 + $0x1], 0 }
   0x7   :  { %17 = vsyncpa [#allocation6], 0 }
   0x8   :  { %19 = vsyncpa [#allocation6 + $0x1], 0 }
   0x9   :  { %20 = vsyncpa [#allocation9], 0 }
   0xa   :  { %21 = vsyncpa [#allocation4], 0 }
   0xb   :  { %23 = vsyncpa [#allocation4 + $0x1], 0  ;;  %s6885_s30 = smov 0   ;;  %s6887_s10 = smov 0  }
   0xc   :  { %s6889_s11 = smov 0   ;;  %s6891_s12 = smov 0  }
   0xd LB: > { %7538 = sst [smem:[#allocation17_spill]] %s6806_s30  ;;  %s6906_s13 = sadd.s32 4294967295, %s6818_s12   ;;  %s6818_s12 = sphi %s6891_s12, %s7560_s12   ;;  %s6814_s11 = sphi %s6889_s11, %s7562_s11   ;;  %s6810_s10 = sphi %s6887_s10, %s7564_s10   ;;  %s6806_s30 = sphi %s6885_s30, %s7563_s30  }
   0xe   : > { %7539 = sst [smem:[#allocation18_spill]] %s6814_s11  ;;  %s4322_s14 = sadd.s32 4294967294, %s6818_s12  }
   0xf   : > { %p49_p0 = scmp.ne.s32.totalorder %s6810_s10, %s6806_s30  ;;  %p50_p1 = scmp.eq.s32.totalorder %s6906_s13, 0 }
  0x10   : > { %p251_p2 = scmp.eq.s32.totalorder %s6906_s13, 1  ;;  %p257_p3 = scmp.eq.s32.totalorder %s4322_s14, 1 }
  0x11   : > { %p6915_p4 = por %p50_p1, %p49_p0  ;;  %p4323_p5 = scmp.ge.s32.totalorder %s6818_s12, 1 }
  0x12   : > { %p6920_p6 = por %p257_p3, %p49_p0  ;;  %p264_p7 = scmp.lt.s32.totalorder %s6818_s12, 3 }
  0x13   : > { %s7543_s3 = sld [smem:[#allocation24_spill]]  ;;  %s6820_s21 = smov [#allocation7]  }
  0x14   : > { %s7541_s16 = scalar_select %p6920_p6, 1, 0 }
  0x15   : > { %p6928_p8 = pnand %p4323_p5, %p264_p7  ;;  %s277_s22 = sshll.u32 %s6820_s21, 4  ;;  %s278_s22 = int_to_ptr.vmem [resolvable:$true] %s277_s22 }
  0x16   : > { %7542 = sst [smem:[#allocation19_spill]] %s7541_s16  ;;  %s6821_s27 = smov 128  }
  0x17   : > { %p6506_p9 = pneg %p6928_p8  ;;  %s7546_s4 = sld [smem:[#allocation25_spill]] }
  0x18   : > { %s6822_s28 = smov 8   ;;  %s6823_s29 = smov [#allocation8]  }
  0x19   : > { %s275_s19 = sshll.u32 %s7543_s3, 4  ;;  %p6936_p10 = pnand %p6506_p9, %p50_p1  ;;  %s276_s19 = int_to_ptr.hbm [resolvable:$true] %s275_s19 }
  0x1a   : > { %s291_s14 = sshll.u32 %s6823_s29, 4  ;;  %s7547_s7 = sld [smem:[#allocation26_spill]]  ;;  %s292_s14 = int_to_ptr.vmem [resolvable:$true] %s291_s14 }
  0x1b   : > { %6509 = dma.hbm_to_vmem [thread:$0]  (!%p6936_p10), %s276_s19, 16384, %s278_s22, [#allocation6], %s6821_s27, %s6821_s27, %s6822_s28  }
  0x1c   : > { %s6824_s24 = smov [#allocation10]   ;;  %s7527_s19 = smov 64  }
  0x1d   : > { %s289_s26 = sshll.u32 %s7546_s4, 4  ;;  %s311_s25 = sshll.u32 %s6824_s24, 4  ;;  %s290_s26 = int_to_ptr.hbm [resolvable:$true] %s289_s26  ;;  %s312_s25 = int_to_ptr.vmem [resolvable:$true] %s311_s25 }
  0x1e   : > { %6512 = dma.hbm_to_vmem [thread:$0]  (!%p6936_p10), %s290_s26, 32768, %s292_s14, [#allocation9], %s6821_s27, %s6821_s27, %s6822_s28  }
  0x1f   : > { %s6826_s22 = smov 4   ;;  %s6956_s29 = sadd.s32 1, %s6818_s12  }
  0x20   : > { %s309_s21 = sshll.u32 %s7547_s7, 4  ;;  %7548 = sst [smem:[#allocation20_spill]] %s6956_s29  ;;  %s310_s21 = int_to_ptr.hbm [resolvable:$true] %s309_s21 }
  0x21   : > { %6515 = dma.hbm_to_vmem [thread:$0]  (!%p6936_p10), %s310_s21, 2048, %s312_s25, [#allocation9], %s7527_s19, %s7527_s19, %s6826_s22  }
  0x22   : > { %s33_s17 = ssub.s32 %s6818_s12, %s6956_s29  ;;  %s36_s18 = sadd.s32 1, %s6814_s11 }
  0x23   : > { %p34_p12 = scmp.eq.s32.totalorder %s33_s17, 0  ;;  %p43_p13 = scmp.ne.s32.totalorder %s6814_s11, %s6810_s10 }
  0x24   : > { %p44_p0 = scmp.eq.s32.totalorder %s6818_s12, 0  ;;  %p6530_p3 = scmp.lt.s32.totalorder %s6818_s12, 2 }
  0x25   : > { %s6966_s26 = scalar_select %p34_p12, %s6814_s11, %s36_s18  }
  0x26   : > { %p45_p5 = por %p44_p0, %p43_p13  ;;  %p6970_p7 = por %p251_p2, %p43_p13 }
  0x27   : > { %7549 = sst [smem:[#allocation21_spill]] %s6966_s26  ;;  %s6975_s23 = sand.u32 1, %s6814_s11  }
  0x28   : > { %s6465_s28 = smul.u32 96, %s6818_s12  ;;  %s7551_s0 = sld [smem:[#allocation23_spill]] }
  0x29   : > { %s6483_s14 = smul.u32 96, %s6975_s23  ;;  %p6982_p9 = pnand %p6530_p3, %p45_p5 }
  0x2a   : > { %s329_s3 = scalar_lea.sflag [#allocation3], %s6975_s23 }
  0x2b   : > { %s332_s18 = scalar_lea.vmem [#allocation2], %s6483_s14  ;;  %p6684_p10 = pneg %p6982_p9 }
  0x2c   : > { %s341_s19 = sshll.u32 %s332_s18, 4  ;;  %s342_s19 = int_to_ptr.vmem [resolvable:$true] %s341_s19 }
  0x2e   : > { %s338_s25 = scalar_lea.hbm %s7551_s0, %s6465_s28  ;;  %s6687_s24 = scalar_lea.hbm %s7551_s0, 192 }
  0x2f   : > { %s339_s17 = sshll.u32 %s338_s25, 4  ;;  %s340_s17 = int_to_ptr.hbm [resolvable:$true] %s339_s17 }
  0x30   : > { %s6680_s4 = sshra.s32 %s340_s17, 4  ;;  %s6681_s4 = int_to_ptr.hbm [resolvable:$true] %s6680_s4 }
  0x31   : > { %s6682_s7 = scalar_lea.hbm %s6681_s4, 96  ;;  %p6688_p0 = scmp.lt.s32.totalorder %s6681_s4, %s7551_s0 }
  0x32   : > { %p6683_p2 = scmp.ne.s32.totalorder %s6681_s4, %s6682_s7  ;;  %p6689_p3 = scmp.lt.s32.totalorder %s6687_s24, %s6682_s7 }
  0x34   : > { %p6685_p12 = pnand %p6684_p10, %p6683_p2  ;;  %p6690_p5 = por %p6689_p3, %p6688_p0 }
  0x36   : > { %p6686_p13 = pneg %p6685_p12 }
  0x38   : > { %p6691_p11 = pnand %p6690_p5, %p6686_p13 }
  0x3a   : > { %6694 = shalt.err (!%p6691_p11)
}
  0x3b   : > { %s6827_s14 = smov 512   ;;  %s6828_s18 = smov 32  }
  0x3c   : > { %6519 = dma.hbm_to_vmem [thread:$0]  (!%p6982_p9), %s340_s17, 1536, %s342_s19, %s329_s3, %s6827_s14, %s6827_s14, %s6828_s18  }
  0x3d   : > { %s351_s11 = sand.u32 1, %s6818_s12   ;;  %s6484_s28 = smul.u32 192, %s6975_s23 }
  0x3e   : > { %s6466_s21 = smul.u32 192, %s6818_s12  ;;  %s352_s25 = scalar_lea.sflag [#allocation6], %s351_s11 }
  0x3f   : > { %s355_s7 = scalar_lea.vmem [#allocation5], %s6484_s28  ;;  %s6717_s23 = scalar_lea.hbm %s7518_s1, 384 }
  0x40   : > { %s361_s4 = scalar_lea.hbm %s7518_s1, %s6466_s21  ;;  %s364_s26 = sshll.u32 %s355_s7, 4  ;;  %s365_s26 = int_to_ptr.vmem [resolvable:$true] %s364_s26 }
  0x41   : > { %s362_s24 = sshll.u32 %s361_s4, 4  ;;  %s363_s24 = int_to_ptr.hbm [resolvable:$true] %s362_s24 }
  0x42   : > { %s6710_s0 = sshra.s32 %s363_s24, 4  ;;  %s6711_s0 = int_to_ptr.hbm [resolvable:$true] %s6710_s0 }
  0x43   : > { %s6712_s30 = scalar_lea.hbm %s6711_s0, 192  ;;  %p6718_p13 = scmp.lt.s32.totalorder %s6711_s0, %s7518_s1 }
  0x44   : > { %p6713_p11 = scmp.ne.s32.totalorder %s6711_s0, %s6712_s30  ;;  %p6719_p0 = scmp.lt.s32.totalorder %s6717_s23, %s6712_s30 }
  0x46   : > { %p6715_p2 = pnand %p6713_p11, %p6684_p10  ;;  %p6720_p3 = por %p6719_p0, %p6718_p13 }
  0x48   : > { %p6716_p12 = pneg %p6715_p2 }
  0x4a   : > { %p6721_p5 = pnand %p6720_p3, %p6716_p12 }
  0x4c   : > { %6724 = shalt.err (!%p6721_p5)
}
  0x4d   : > { %s6829_s11 = smov 1024   ;;  %s7553_s17 = smov 64  }
  0x4e   : > { %6522 = dma.hbm_to_vmem [thread:$0]  (!%p6982_p9), %s363_s24, 3072, %s365_s26, %s352_s25, %s6829_s11, %s6829_s11, %s7553_s17  }
  0x4f   : > { %385 = sbr.rel (%p6928_p8) target bundleno = 791 (0x317), region = 56 }
  0x54   : > { %s7021_s14 = sand.u32 1, %s6810_s10  }
  0x55   : > { %s6485_s18 = smul.u32 96, %s7021_s14  ;;  %s388_s0 = scalar_lea.sflag [#allocation3], %s7021_s14 }
  0x57   : > { %s7025_s30 = scalar_lea.vmem [#allocation2], %s6485_s18 }
  0x58   : > { %6785 = dma.done.wait (%p6915_p4), %s388_s0, 1536  }
  0x59   : > { %6787 = vsyncadd (%p6915_p4), %s388_s0, 4294965760  ;;  %s397_s20 = sand.u32 1, %s6906_s13   ;;  %s6486_s22 = smul.u32 192, %s7021_s14 }
  0x5a   : > { %s398_s28 = scalar_lea.sflag [#allocation6], %s397_s20 }
  0x5b   : > { %s7033_s21 = scalar_lea.vmem [#allocation5], %s6486_s22 }
  0x5c   : > { %6789 = dma.done.wait (%p6915_p4), %s398_s28, 3072  }
  0x5d   : > { %6791 = vsyncadd (%p6915_p4), %s398_s28, 4294964224 }
  0x5e   : > { %6793 = dma.done.wait (%p50_p1), [#allocation6], 16384  }
  0x5f   : > { %6795 = vsyncadd (%p50_p1), [#allocation6], 4294950912 }
  0x60   : > { %6797 = dma.done.wait (%p50_p1), [#allocation9], 34816  }
  0x61   : > { %6799 = vsyncadd (%p50_p1), [#allocation9], 4294932480  ;;  %v4459_v0 = vld [vmem:[#allocation8 + $0x70] sm:$0xf]  ;;  %v6207_v1 = vld [vmem:[#allocation8 + $0x74] sm:$0xf0] }
  0x62   : > { %v4523_v2 = vld [vmem:[#allocation8 + $0xf0] sm:$0xf]  ;;  %v4460_v3 = vor.u32 %v6207_v1, %v4459_v0  ;;  %v6223_v4 = vld [vmem:[#allocation8 + $0xf4] sm:$0xf0]  ;;  %v4451_v11 = vld [vmem:[#allocation8 + $0x60] sm:$0xf] }
  0x63   : > { %v4587_v5 = vld [vmem:[#allocation8 + $0x170] sm:$0xf]  ;;  %v6239_v6 = vld [vmem:[#allocation8 + $0x174] sm:$0xf0]  ;;  %v4524_v7 = vor.u32 %v6223_v4, %v4523_v2  ;;  %v6205_v13 = vld [vmem:[#allocation8 + $0x64] sm:$0xf0] }
  0x64   : > { %v4588_v8 = vor.u32 %v6239_v6, %v4587_v5  ;;  %v4651_v9 = vld [vmem:[#allocation8 + $0x1f0] sm:$0xf]  ;;  %v6255_v10 = vld [vmem:[#allocation8 + $0x1f4] sm:$0xf0]  ;;  %2307 = vmatpush.bf16.msra.mxu0 %v4460_v3  ;;  %v4515_v14 = vld [vmem:[#allocation8 + $0xe0] sm:$0xf]  ;;  %v4452_v16 = vor.u32 %v6205_v13, %v4451_v11 }
  0x65   : > { %v4652_v12 = vor.u32 %v6255_v10, %v4651_v9  ;;  %v6221_v15 = vld [vmem:[#allocation8 + $0xe4] sm:$0xf0]  ;;  %2325 = vmatpush.bf16.msra.mxu1 %v4524_v7  ;;  %v4579_v18 = vld [vmem:[#allocation8 + $0x160] sm:$0xf]  ;;  %v4443_v23 = vld [vmem:[#allocation8 + $0x50] sm:$0xf] }
  0x66   : > { %2343 = vmatpush.bf16.msra.mxu2 %v4588_v8  ;;  %v4516_v17 = vor.u32 %v6221_v15, %v4515_v14  ;;  %v6237_v19 = vld [vmem:[#allocation8 + $0x164] sm:$0xf0]  ;;  %v4643_v20 = vld [vmem:[#allocation8 + $0x1e0] sm:$0xf]  ;;  %v6203_v24 = vld [vmem:[#allocation8 + $0x54] sm:$0xf0] }
  0x67   : > { %2361 = vmatpush.bf16.msra.mxu3 %v4652_v12  ;;  %v4580_v21 = vor.u32 %v6237_v19, %v4579_v18  ;;  %v6253_v22 = vld [vmem:[#allocation8 + $0x1e4] sm:$0xf0]  ;;  %v4507_v26 = vld [vmem:[#allocation8 + $0xd0] sm:$0xf]  ;;  %v6219_v27 = vld [vmem:[#allocation8 + $0xd4] sm:$0xf0]  ;;  %v4444_v29 = vor.u32 %v6203_v24, %v4443_v23 }
  0x68   : > { %v4644_v25 = vor.u32 %v6253_v22, %v4643_v20  ;;  %v4571_v28 = vld [vmem:[#allocation8 + $0x150] sm:$0xf]  ;;  %2308 = vmatpush.bf16.msra.mxu0 %v4452_v16  ;;  %v6235_v30 = vld [vmem:[#allocation8 + $0x154] sm:$0xf0]  ;;  %v4508_v33 = vor.u32 %v6219_v27, %v4507_v26  ;;  %v4435_v35 = vld [vmem:[#allocation8 + $0x40] sm:$0xf] }
  0x69   : > { %v4635_v31 = vld [vmem:[#allocation8 + $0x1d0] sm:$0xf]  ;;  %v6251_v32 = vld [vmem:[#allocation8 + $0x1d4] sm:$0xf0]  ;;  %2326 = vmatpush.bf16.msra.mxu1 %v4516_v17  ;;  %v4572_v34 = vor.u32 %v6235_v30, %v4571_v28  ;;  %v6201_v36 = vld [vmem:[#allocation8 + $0x44] sm:$0xf0] }
  0x6a   : > { %2344 = vmatpush.bf16.msra.mxu2 %v4580_v21  ;;  %v4499_v37 = vld [vmem:[#allocation8 + $0xc0] sm:$0xf]  ;;  %v4636_v38 = vor.u32 %v6251_v32, %v4635_v31  ;;  %v6217_v39 = vld [vmem:[#allocation8 + $0xc4] sm:$0xf0]  ;;  %v4436_v44 = vor.u32 %v6201_v36, %v4435_v35  ;;  %v4427_v47 = vld [vmem:[#allocation8 + $0x30] sm:$0xf] }
  0x6b   : > { %2362 = vmatpush.bf16.msra.mxu3 %v4644_v25  ;;  %v4563_v40 = vld [vmem:[#allocation8 + $0x140] sm:$0xf]  ;;  %v6233_v41 = vld [vmem:[#allocation8 + $0x144] sm:$0xf0]  ;;  %v4500_v45 = vor.u32 %v6217_v39, %v4499_v37  ;;  %v6199_v48 = vld [vmem:[#allocation8 + $0x34] sm:$0xf0] }
  0x6c   : > { %v4627_v42 = vld [vmem:[#allocation8 + $0x1c0] sm:$0xf]  ;;  %v6249_v43 = vld [vmem:[#allocation8 + $0x1c4] sm:$0xf0]  ;;  %2309 = vmatpush.bf16.msra.mxu0 %v4444_v29  ;;  %v4564_v46 = vor.u32 %v6233_v41, %v4563_v40  ;;  %v4491_v49 = vld [vmem:[#allocation8 + $0xb0] sm:$0xf]  ;;  %v4428_v56 = vor.u32 %v6199_v48, %v4427_v47 }
  0x6d   : > { %2327 = vmatpush.bf16.msra.mxu1 %v4508_v33  ;;  %v4628_v50 = vor.u32 %v6249_v43, %v4627_v42  ;;  %v6215_v51 = vld [vmem:[#allocation8 + $0xb4] sm:$0xf0]  ;;  %v4555_v52 = vld [vmem:[#allocation8 + $0x130] sm:$0xf]  ;;  %v4419_v59 = vld [vmem:[#allocation8 + $0x20] sm:$0xf] }
  0x6e   : > { %2345 = vmatpush.bf16.msra.mxu2 %v4572_v34  ;;  %v6231_v53 = vld [vmem:[#allocation8 + $0x134] sm:$0xf0]  ;;  %v4619_v54 = vld [vmem:[#allocation8 + $0x1b0] sm:$0xf]  ;;  %v4492_v57 = vor.u32 %v6215_v51, %v4491_v49  ;;  %v6197_v60 = vld [vmem:[#allocation8 + $0x24] sm:$0xf0] }
  0x6f   : > { %2363 = vmatpush.bf16.msra.mxu3 %v4636_v38  ;;  %v6247_v55 = vld [vmem:[#allocation8 + $0x1b4] sm:$0xf0]  ;;  %v4556_v58 = vor.u32 %v6231_v53, %v4555_v52  ;;  %v4483_v61 = vld [vmem:[#allocation8 + $0xa0] sm:$0xf]  ;;  %v6213_v63 = vld [vmem:[#allocation8 + $0xa4] sm:$0xf0]  ;;  %v4420_v4 = vor.u32 %v6197_v60, %v4419_v59 }
  0x70   : > { %2310 = vmatpush.bf16.msra.mxu0 %v4436_v44  ;;  %v4620_v62 = vor.u32 %v6247_v55, %v4619_v54  ;;  %v4547_v0 = vld [vmem:[#allocation8 + $0x120] sm:$0xf]  ;;  %v6229_v1 = vld [vmem:[#allocation8 + $0x124] sm:$0xf0]  ;;  %v4484_v5 = vor.u32 %v6213_v63, %v4483_v61  ;;  %v4411_v7 = vld [vmem:[#allocation8 + $0x10] sm:$0xf] }
  0x71   : > { %2328 = vmatpush.bf16.msra.mxu1 %v4500_v45  ;;  %v4611_v2 = vld [vmem:[#allocation8 + $0x1a0] sm:$0xf]  ;;  %v6245_v3 = vld [vmem:[#allocation8 + $0x1a4] sm:$0xf0]  ;;  %v4548_v6 = vor.u32 %v6229_v1, %v4547_v0  ;;  %v6195_v8 = vld [vmem:[#allocation8 + $0x14] sm:$0xf0] }
  0x72   : > { %2346 = vmatpush.bf16.msra.mxu2 %v4564_v46  ;;  %v4475_v9 = vld [vmem:[#allocation8 + $0x90] sm:$0xf]  ;;  %v4612_v10 = vor.u32 %v6245_v3, %v4611_v2  ;;  %v6211_v11 = vld [vmem:[#allocation8 + $0x94] sm:$0xf0]  ;;  %v4403_v16 = vld [vmem:[#allocation8] sm:$0xf]  ;;  %v4412_v17 = vor.u32 %v6195_v8, %v4411_v7 }
  0x73   : > { %2364 = vmatpush.bf16.msra.mxu3 %v4628_v50  ;;  %v4539_v12 = vld [vmem:[#allocation8 + $0x110] sm:$0xf]  ;;  %v6227_v13 = vld [vmem:[#allocation8 + $0x114] sm:$0xf0]  ;;  %v6193_v18 = vld [vmem:[#allocation8 + $0x4] sm:$0xf0]  ;;  %v4476_v21 = vor.u32 %v6211_v11, %v4475_v9 }
  0x74   : > { %2311 = vmatpush.bf16.msra.mxu0 %v4428_v56  ;;  %v4603_v14 = vld [vmem:[#allocation8 + $0x190] sm:$0xf]  ;;  %v6243_v15 = vld [vmem:[#allocation8 + $0x194] sm:$0xf0]  ;;  %v4467_v19 = vld [vmem:[#allocation8 + $0x80] sm:$0xf]  ;;  %v4540_v22 = vor.u32 %v6227_v13, %v4539_v12  ;;  %v4404_v34 = vor.u32 %v6193_v18, %v4403_v16 }
  0x75   : > { %2329 = vmatpush.bf16.msra.mxu1 %v4492_v57  ;;  %v6209_v20 = vld [vmem:[#allocation8 + $0x84] sm:$0xf0]  ;;  %v4531_v23 = vld [vmem:[#allocation8 + $0x100] sm:$0xf]  ;;  %v4604_v26 = vor.u32 %v6243_v15, %v4603_v14  ;;  %v6176_v30 = vld [vmem:[%s7033_s21 + $0x4] sm:$0xf] }
  0x76   : > { %2347 = vmatpush.bf16.msra.mxu2 %v4556_v58  ;;  %v6225_v24 = vld [vmem:[#allocation8 + $0x104] sm:$0xf0]  ;;  %v4595_v25 = vld [vmem:[#allocation8 + $0x180] sm:$0xf]  ;;  %v4341_v31 = vld [vmem:[%s7033_s21 + $0x40] sm:$0xf0]  ;;  %v4468_v38 = vor.u32 %v6209_v20, %v4467_v19 }
  0x77   : > { %2365 = vmatpush.bf16.msra.mxu3 %v4620_v62  ;;  %v6241_v27 = vld [vmem:[#allocation8 + $0x184] sm:$0xf0]  ;;  %v4339_v28 = vld [vmem:[%s7033_s21] sm:$0xf]  ;;  %v4843_v32 = vld [vmem:[#allocation8 + $0x370] sm:$0xf]  ;;  %v4532_v39 = vor.u32 %v6225_v24, %v4531_v23  ;;  %v7057_v53 = vor.u32 %v6176_v30, %v4341_v31 }
  0x78   : > { %2312 = vmatpush.bf16.msra.mxu0 %v4420_v4  ;;  %v6184_v29 = vld [vmem:[%s7033_s21 + $0x3c] sm:$0xf0]  ;;  %v6303_v33 = vld [vmem:[#allocation8 + $0x374] sm:$0xf0]  ;;  %v4347_v35 = vld [vmem:[%s7033_s21 + $0x8] sm:$0xf]  ;;  %v4596_v43 = vor.u32 %v6241_v27, %v4595_v25 }
  0x79   : > { %2330 = vmatpush.bf16.msra.mxu1 %v4484_v5  ;;  %v4779_v36 = vld [vmem:[#allocation8 + $0x2f0] sm:$0xf]  ;;  %v6287_v37 = vld [vmem:[#allocation8 + $0x2f4] sm:$0xf0]  ;;  %v6185_v40 = vld [vmem:[%s7033_s21 + $0x44] sm:$0xf0]  ;;  %v4844_v44 = vor.u32 %v6303_v33, %v4843_v32  ;;  %v7055_v48 = vor.u32 %v6184_v29, %v4339_v28 }
  0x7a   : > { %2348 = vmatpush.bf16.msra.mxu2 %v4548_v6  ;;  %v6177_v41 = vld [vmem:[%s7033_s21 + $0xc] sm:$0xf]  ;;  %v4715_v45 = vld [vmem:[#allocation8 + $0x270] sm:$0xf]  ;;  %v6271_v46 = vld [vmem:[#allocation8 + $0x274] sm:$0xf0]  ;;  %v4780_v49 = vor.u32 %v6287_v37, %v4779_v36  ;;  %v7059_v54 = vor.u32 %v6185_v40, %v4347_v35 }
  0x7b   : > { %2366 = vmatpush.bf16.msra.mxu3 %v4612_v10  ;;  %v4349_v42 = vld [vmem:[%s7033_s21 + $0x48] sm:$0xf0]  ;;  %v4907_v47 = vld [vmem:[#allocation8 + $0x3f0] sm:$0xf]  ;;  %v6319_v50 = vld [vmem:[#allocation8 + $0x3f4] sm:$0xf0]  ;;  %v4716_v58 = vor.u32 %v6271_v46, %v4715_v45 }
  0x7c   : > { %2313 = vmatpush.bf16.msra.mxu0 %v4412_v17  ;;  %v4835_v51 = vld [vmem:[#allocation8 + $0x360] sm:$0xf]  ;;  %v6301_v52 = vld [vmem:[#allocation8 + $0x364] sm:$0xf0]  ;;  %v7061_v57 = vor.u32 %v6177_v41, %v4349_v42  ;;  %v4908_v59 = vor.u32 %v6319_v50, %v4907_v47  ;;  %v4827_v2 = vld [vmem:[#allocation8 + $0x350] sm:$0xf] }
  0x7d   : > { %2331 = vmatpush.bf16.msra.mxu1 %v4476_v21  ;;  %v4771_v55 = vld [vmem:[#allocation8 + $0x2e0] sm:$0xf]  ;;  %v6285_v56 = vld [vmem:[#allocation8 + $0x2e4] sm:$0xf0]  ;;  %v4836_v60 = vor.u32 %v6301_v52, %v4835_v51  ;;  %v6299_v3 = vld [vmem:[#allocation8 + $0x354] sm:$0xf0] }
  0x7e   : > { %2349 = vmatpush.bf16.msra.mxu2 %v4540_v22  ;;  %v4707_v61 = vld [vmem:[#allocation8 + $0x260] sm:$0xf]  ;;  %v6269_v62 = vld [vmem:[#allocation8 + $0x264] sm:$0xf0]  ;;  %v4772_v0 = vor.u32 %v6285_v56, %v4771_v55  ;;  %v4763_v4 = vld [vmem:[#allocation8 + $0x2d0] sm:$0xf]  ;;  %v4828_v8 = vor.u32 %v6299_v3, %v4827_v2 }
  0x7f   : > { %2367 = vmatpush.bf16.msra.mxu3 %v4604_v26  ;;  %v4899_v63 = vld [vmem:[#allocation8 + $0x3e0] sm:$0xf]  ;;  %v6317_v1 = vld [vmem:[#allocation8 + $0x3e4] sm:$0xf0]  ;;  %v6283_v5 = vld [vmem:[#allocation8 + $0x2d4] sm:$0xf0]  ;;  %v4708_v6 = vor.u32 %v6269_v62, %v4707_v61 }
  0x80   : > { %2314 = vmatpush.bf16.msra.mxu0 %v4404_v34  ;;  %v4900_v7 = vor.u32 %v6317_v1, %v4899_v63  ;;  %v4699_v9 = vld [vmem:[#allocation8 + $0x250] sm:$0xf]  ;;  %v6267_v10 = vld [vmem:[#allocation8 + $0x254] sm:$0xf0]  ;;  %v4764_v12 = vor.u32 %v6283_v5, %v4763_v4  ;;  %v4819_v14 = vld [vmem:[#allocation8 + $0x340] sm:$0xf] }
  0x81   : > { %2332 = vmatpush.bf16.msra.mxu1 %v4468_v38  ;;  %v4891_v11 = vld [vmem:[#allocation8 + $0x3d0] sm:$0xf]  ;;  %v6315_v13 = vld [vmem:[#allocation8 + $0x3d4] sm:$0xf0]  ;;  %v6297_v15 = vld [vmem:[#allocation8 + $0x344] sm:$0xf0]  ;;  %v4700_v19 = vor.u32 %v6267_v10, %v4699_v9 }
  0x82   : > { %2350 = vmatpush.bf16.msra.mxu2 %v4532_v39  ;;  %v4755_v16 = vld [vmem:[#allocation8 + $0x2c0] sm:$0xf]  ;;  %v6281_v17 = vld [vmem:[#allocation8 + $0x2c4] sm:$0xf0]  ;;  %v4892_v21 = vor.u32 %v6315_v13, %v4891_v11  ;;  %v4820_v22 = vor.u32 %v6297_v15, %v4819_v14  ;;  %v4811_v29 = vld [vmem:[#allocation8 + $0x330] sm:$0xf] }
  0x83   : > { %2368 = vmatpush.bf16.msra.mxu3 %v4596_v43  ;;  %2315 = vmatmul.bf16.vlgmr.msra.gmra.mxu0 %v7055_v48  ;;  %v627_v18 = vld [vmem:[%s7033_s21 + $0x80] sm:$0xff]  ;;  %v628_v20 = vld [vmem:[%s7033_s21 + $0x88] sm:$0xff]  ;;  %v4756_v26 = vor.u32 %v6281_v17, %v4755_v16  ;;  %v6295_v30 = vld [vmem:[#allocation8 + $0x334] sm:$0xf0]  ;;  %s464_s15 = smul.u32 3, %s6906_s13  ;;  %s6760_s24 = scalar_lea.hbm %s7526_s9, 48 }
  0x84   : > { %2333 = vmatmul.bf16.vlgmr.msra.gmra.mxu1 %v7057_v53  ;;  %2379 = vmatpush.bf16.msrb.mxu0 %v4716_v58  ;;  %v4691_v23 = vld [vmem:[#allocation8 + $0x240] sm:$0xf]  ;;  %v6265_v24 = vld [vmem:[#allocation8 + $0x244] sm:$0xf0]  ;;  %v947_v28 = vunpack.c.l.b16 %v627_v18  ;;  %v948_v31 = vunpack.c.h.b16 %v627_v18  ;;  %v949_v32 = vunpack.c.l.b16 %v628_v20  ;;  %v4747_v33 = vld [vmem:[#allocation8 + $0x2b0] sm:$0xf]  ;;  %v950_v36 = vunpack.c.h.b16 %v628_v20 }
  0x85   : > { %2397 = vmatpush.bf16.msrb.mxu1 %v4780_v49  ;;  %2351 = vmatmul.bf16.vlgmr.msra.gmra.mxu2 %v7059_v54  ;;  %v4883_v25 = vld [vmem:[#allocation8 + $0x3c0] sm:$0xf]  ;;  %v6313_v27 = vld [vmem:[#allocation8 + $0x3c4] sm:$0xf0]  ;;  %v6279_v34 = vld [vmem:[#allocation8 + $0x2b4] sm:$0xf0]  ;;  %v4692_v35 = vor.u32 %v6265_v24, %v4691_v23  ;;  %v4812_v38 = vor.u32 %v6295_v30, %v4811_v29 }
  0x86   : > { %2415 = vmatpush.bf16.msrb.mxu2 %v4844_v44  ;;  %2369 = vmatmul.bf16.vlgmr.msra.gmra.mxu3 %v7061_v57  ;;  %v4884_v37 = vor.u32 %v6313_v27, %v4883_v25  ;;  %v4683_v39 = vld [vmem:[#allocation8 + $0x230] sm:$0xf]  ;;  %v6263_v40 = vld [vmem:[#allocation8 + $0x234] sm:$0xf0]  ;;  %v7069_v42 = vpack.c.b16 %v947_v28, %v947_v28  ;;  %v4748_v43 = vor.u32 %v6279_v34, %v4747_v33  ;;  %v4803_v45 = vld [vmem:[#allocation8 + $0x320] sm:$0xf] }
  0x87   : > { %2433 = vmatpush.bf16.msrb.mxu3 %v4908_v59  ;;  %v4875_v41 = vld [vmem:[#allocation8 + $0x3b0] sm:$0xf]  ;;  %v6311_v44 = vld [vmem:[#allocation8 + $0x3b4] sm:$0xf0]  ;;  %v6293_v46 = vld [vmem:[#allocation8 + $0x324] sm:$0xf0]  ;;  %v7071_v47 = vpack.c.b16 %v948_v31, %v948_v31  ;;  %v7073_v49 = vpack.c.b16 %v949_v32, %v949_v32  ;;  %v7075_v52 = vpack.c.b16 %v950_v36, %v950_v36  ;;  %v4684_v55 = vor.u32 %v6263_v40, %v4683_v39 }
  0x88   : > { %2380 = vmatpush.bf16.msrb.mxu0 %v4708_v6  ;;  %v4739_v50 = vld [vmem:[#allocation8 + $0x2a0] sm:$0xf]  ;;  %v6277_v51 = vld [vmem:[#allocation8 + $0x2a4] sm:$0xf0]  ;;  %v4876_v56 = vor.u32 %v6311_v44, %v4875_v41  ;;  %v4804_v58 = vor.u32 %v6293_v46, %v4803_v45  ;;  %v6291_v1 = vld [vmem:[#allocation8 + $0x314] sm:$0xf0] }
  0x89   : > { %2398 = vmatpush.bf16.msrb.mxu1 %v4772_v0  ;;  %v4675_v59 = vld [vmem:[#allocation8 + $0x220] sm:$0xf]  ;;  %v4740_v62 = vor.u32 %v6277_v51, %v4739_v50  ;;  %v6309_v63 = vld [vmem:[#allocation8 + $0x3a4] sm:$0xf0]  ;;  %v4795_v0 = vld [vmem:[#allocation8 + $0x310] sm:$0xf] }
  0x8a   : > { %2416 = vmatpush.bf16.msrb.mxu2 %v4836_v60  ;;  %v6261_v60 = vld [vmem:[#allocation8 + $0x224] sm:$0xf0]  ;;  %v4867_v61 = vld [vmem:[#allocation8 + $0x3a0] sm:$0xf]  ;;  %v4731_v2 = vld [vmem:[#allocation8 + $0x290] sm:$0xf] }
  0x8b   : > { %2434 = vmatpush.bf16.msrb.mxu3 %v4900_v7  ;;  %v6275_v3 = vld [vmem:[#allocation8 + $0x294] sm:$0xf0]  ;;  %v4676_v4 = vor.u32 %v6261_v60, %v4675_v59  ;;  %v4667_v5 = vld [vmem:[#allocation8 + $0x210] sm:$0xf]  ;;  %v4868_v6 = vor.u32 %v6309_v63, %v4867_v61  ;;  %v4796_v7 = vor.u32 %v6291_v1, %v4795_v0  ;;  %v6289_v13 = vld [vmem:[#allocation8 + $0x304] sm:$0xf0] }
  0x8c   : > { %2381 = vmatpush.bf16.msrb.mxu0 %v4700_v19  ;;  %v4859_v9 = vld [vmem:[#allocation8 + $0x390] sm:$0xf]  ;;  %v6307_v10 = vld [vmem:[#allocation8 + $0x394] sm:$0xf0]  ;;  %v4732_v11 = vor.u32 %v6275_v3, %v4731_v2  ;;  %v4723_v14 = vld [vmem:[#allocation8 + $0x280] sm:$0xf] }
  0x8d   : > { %2399 = vmatpush.bf16.msrb.mxu1 %v4764_v12  ;;  %v4787_v12 = vld [vmem:[#allocation8 + $0x300] sm:$0xf]  ;;  %v6273_v15 = vld [vmem:[#allocation8 + $0x284] sm:$0xf0]  ;;  %v5099_v16 = vld [vmem:[#allocation8 + $0x570] sm:$0xf] }
  0x8e   : > { %2417 = vmatpush.bf16.msrb.mxu2 %v4828_v8  ;;  %v6259_v8 = vld [vmem:[#allocation8 + $0x214] sm:$0xf0]  ;;  %v4659_v19 = vld [vmem:[#allocation8 + $0x200] sm:$0xf]  ;;  %v5035_v20 = vld [vmem:[#allocation8 + $0x4f0] sm:$0xf]  ;;  %v4788_v23 = vor.u32 %v6289_v13, %v4787_v12  ;;  %v4724_v27 = vor.u32 %v6273_v15, %v4723_v14 }
  0x8f   : > { %2435 = vmatpush.bf16.msrb.mxu3 %v4892_v21  ;;  %v6367_v17 = vld [vmem:[#allocation8 + $0x574] sm:$0xf0]  ;;  %v4668_v18 = vor.u32 %v6259_v8, %v4667_v5  ;;  %v6257_v24 = vld [vmem:[#allocation8 + $0x204] sm:$0xf0]  ;;  %v4851_v25 = vld [vmem:[#allocation8 + $0x380] sm:$0xf] }
  0x90   : > { %2382 = vmatpush.bf16.msrb.mxu0 %v4692_v35  ;;  %v6351_v21 = vld [vmem:[#allocation8 + $0x4f4] sm:$0xf0]  ;;  %v4355_v28 = vld [vmem:[%s7033_s21 + $0x10] sm:$0xf]  ;;  %v6178_v30 = vld [vmem:[%s7033_s21 + $0x14] sm:$0xf]  ;;  %v5100_v32 = vor.u32 %v6367_v17, %v5099_v16  ;;  %v4660_v40 = vor.u32 %v6257_v24, %v4659_v19 }
  0x91   : > { %2400 = vmatpush.bf16.msrb.mxu1 %v4756_v26  ;;  %v6305_v26 = vld [vmem:[#allocation8 + $0x384] sm:$0xf0]  ;;  %v6186_v29 = vld [vmem:[%s7033_s21 + $0x4c] sm:$0xf0]  ;;  %v4357_v31 = vld [vmem:[%s7033_s21 + $0x50] sm:$0xf0]  ;;  %v5036_v36 = vor.u32 %v6351_v21, %v5035_v20 }
  0x92   : > { %2418 = vmatpush.bf16.msrb.mxu2 %v4820_v22  ;;  %v4860_v22 = vor.u32 %v6307_v10, %v4859_v9  ;;  %v4971_v33 = vld [vmem:[#allocation8 + $0x470] sm:$0xf]  ;;  %v6335_v34 = vld [vmem:[#allocation8 + $0x474] sm:$0xf0]  ;;  %v6365_v39 = vld [vmem:[#allocation8 + $0x564] sm:$0xf0]  ;;  %v4852_v45 = vor.u32 %v6305_v26, %v4851_v25  ;;  %v7091_v63 = vor.u32 %v6178_v30, %v4357_v31 }
  0x93   : > { %2436 = vmatpush.bf16.msrb.mxu3 %v4884_v37  ;;  %2320 = vmatmul.bf16.gmra.mxu0 %v7069_v42  ;;  %v5163_v35 = vld [vmem:[#allocation8 + $0x5f0] sm:$0xf]  ;;  %v6383_v37 = vld [vmem:[#allocation8 + $0x5f4] sm:$0xf0]  ;;  %v6179_v44 = vld [vmem:[%s7033_s21 + $0x1c] sm:$0xf]  ;;  %v4972_v50 = vor.u32 %v6335_v34, %v4971_v33 }
  0x94   : > { %2338 = vmatmul.bf16.gmra.mxu1 %v7071_v47  ;;  %2383 = vmatpush.bf16.msrb.mxu0 %v4684_v55  ;;  %v4363_v41 = vld [vmem:[%s7033_s21 + $0x18] sm:$0xf]  ;;  %v4365_v46 = vld [vmem:[%s7033_s21 + $0x58] sm:$0xf0]  ;;  %v4963_v51 = vld [vmem:[#allocation8 + $0x460] sm:$0xf] }
  0x95   : > { %2401 = vmatpush.bf16.msrb.mxu1 %v4748_v43  ;;  %2356 = vmatmul.bf16.gmra.mxu2 %v7073_v49  ;;  %v6187_v43 = vld [vmem:[%s7033_s21 + $0x54] sm:$0xf0]  ;;  %v6333_v55 = vld [vmem:[#allocation8 + $0x464] sm:$0xf0]  ;;  %v5027_v59 = vld [vmem:[#allocation8 + $0x4e0] sm:$0xf] }
  0x96   : > { %2419 = vmatpush.bf16.msrb.mxu2 %v4812_v38  ;;  %2374 = vmatmul.bf16.gmra.mxu3 %v7075_v52  ;;  %v5091_v38 = vld [vmem:[#allocation8 + $0x560] sm:$0xf]  ;;  %v6349_v60 = vld [vmem:[#allocation8 + $0x4e4] sm:$0xf0]  ;;  %v5083_v1 = vld [vmem:[#allocation8 + $0x550] sm:$0xf]  ;;  %v7093_v3 = vor.u32 %v6187_v43, %v4363_v41  ;;  %v4964_v5 = vor.u32 %v6333_v55, %v4963_v51 }
  0x97   : > { %2437 = vmatpush.bf16.msrb.mxu3 %v4876_v56  ;;  %v5164_v56 = vor.u32 %v6383_v37, %v5163_v35  ;;  %v5155_v61 = vld [vmem:[#allocation8 + $0x5e0] sm:$0xf]  ;;  %v6381_v0 = vld [vmem:[#allocation8 + $0x5e4] sm:$0xf0]  ;;  %v6363_v2 = vld [vmem:[#allocation8 + $0x554] sm:$0xf0] }
  0x98   : > { %2384 = vmatpush.bf16.msrb.mxu0 %v4676_v4  ;;  %v7095_v4 = vor.u32 %v6179_v44, %v4365_v46  ;;  %v6331_v8 = vld [vmem:[#allocation8 + $0x454] sm:$0xf0]  ;;  %v5156_v9 = vor.u32 %v6381_v0, %v5155_v61  ;;  %v5084_v10 = vor.u32 %v6363_v2, %v5083_v1  ;;  %v5147_v13 = vld [vmem:[#allocation8 + $0x5d0] sm:$0xf]  ;;  %v5075_v15 = vld [vmem:[#allocation8 + $0x540] sm:$0xf] }
  0x99   : > { %2402 = vmatpush.bf16.msrb.mxu1 %v4740_v62  ;;  %v7089_v62 = vor.u32 %v6186_v29, %v4355_v28  ;;  %v6347_v12 = vld [vmem:[#allocation8 + $0x4d4] sm:$0xf0]  ;;  %v6361_v16 = vld [vmem:[#allocation8 + $0x544] sm:$0xf0]  ;;  %v4947_v19 = vld [vmem:[#allocation8 + $0x440] sm:$0xf] }
  0x9a   : > { %2420 = vmatpush.bf16.msrb.mxu2 %v4804_v58  ;;  %v5092_v58 = vor.u32 %v6365_v39, %v5091_v38  ;;  %v6379_v14 = vld [vmem:[#allocation8 + $0x5d4] sm:$0xf0]  ;;  %v6329_v20 = vld [vmem:[#allocation8 + $0x444] sm:$0xf0]  ;;  %v5139_v25 = vld [vmem:[#allocation8 + $0x5c0] sm:$0xf] }
  0x9b   : > { %2438 = vmatpush.bf16.msrb.mxu3 %v4868_v6  ;;  %v5028_v6 = vor.u32 %v6349_v60, %v5027_v59  ;;  %v5148_v21 = vor.u32 %v6379_v14, %v5147_v13  ;;  %v6345_v24 = vld [vmem:[#allocation8 + $0x4c4] sm:$0xf0]  ;;  %v6359_v28 = vld [vmem:[#allocation8 + $0x534] sm:$0xf0]  ;;  %v629_v29 = vld [vmem:[%s7033_s21 + $0x90] sm:$0xff]  ;;  %v4948_v30 = vor.u32 %v6329_v20, %v4947_v19  ;;  %p7249_p1 = scmp.lt.s32.totalorder %s464_s15, 5 }
  0x9c   : > { %2385 = vmatpush.bf16.msrb.mxu0 %v4668_v18  ;;  %v6377_v26 = vld [vmem:[#allocation8 + $0x5c4] sm:$0xf0]  ;;  %v4939_v33 = vld [vmem:[#allocation8 + $0x430] sm:$0xf]  ;;  %v6327_v34 = vld [vmem:[#allocation8 + $0x434] sm:$0xf0]  ;;  %v952_v41 = vunpack.c.h.b16 %v629_v29 }
  0x9d   : > { %2403 = vmatpush.bf16.msrb.mxu1 %v4732_v11  ;;  %v5019_v11 = vld [vmem:[#allocation8 + $0x4d0] sm:$0xf]  ;;  %v5140_v35 = vor.u32 %v6377_v26, %v5139_v25  ;;  %v6343_v38 = vld [vmem:[#allocation8 + $0x4b4] sm:$0xf0]  ;;  %v5059_v44 = vld [vmem:[#allocation8 + $0x520] sm:$0xf]  ;;  %v4940_v51 = vor.u32 %v6327_v34, %v4939_v33 }
  0x9e   : > { %2421 = vmatpush.bf16.msrb.mxu2 %v4796_v7  ;;  %v4955_v7 = vld [vmem:[#allocation8 + $0x450] sm:$0xf]  ;;  %v5020_v18 = vor.u32 %v6347_v12, %v5019_v11  ;;  %v6375_v43 = vld [vmem:[#allocation8 + $0x5b4] sm:$0xf0]  ;;  %v4995_v61 = vld [vmem:[#allocation8 + $0x4a0] sm:$0xf] }
  0x9f   : > { %2439 = vmatpush.bf16.msrb.mxu3 %v4860_v22  ;;  %v4956_v17 = vor.u32 %v6331_v8, %v4955_v7  ;;  %v5076_v22 = vor.u32 %v6361_v16, %v5075_v15  ;;  %v5003_v37 = vld [vmem:[#allocation8 + $0x4b0] sm:$0xf]  ;;  %v6341_v0 = vld [vmem:[#allocation8 + $0x4a4] sm:$0xf0]  ;;  %v5123_v1 = vld [vmem:[#allocation8 + $0x5a0] sm:$0xf] }
  0xa0   : > { %2386 = vmatpush.bf16.msrb.mxu0 %v4660_v40  ;;  %v5131_v39 = vld [vmem:[#allocation8 + $0x5b0] sm:$0xf]  ;;  %v951_v40 = vunpack.c.l.b16 %v629_v29  ;;  %v5004_v55 = vor.u32 %v6343_v38, %v5003_v37  ;;  %v6355_v8 = vld [vmem:[#allocation8 + $0x514] sm:$0xf0]  ;;  %v4996_v12 = vor.u32 %v6341_v0, %v4995_v61  ;;  %v4979_v29 = vld [vmem:[#allocation8 + $0x480] sm:$0xf] }
  0xa1   : > { %2404 = vmatpush.bf16.msrb.mxu1 %v4724_v27  ;;  %v5067_v27 = vld [vmem:[#allocation8 + $0x530] sm:$0xf]  ;;  %v5132_v59 = vor.u32 %v6375_v43, %v5131_v39  ;;  %v6323_v14 = vld [vmem:[#allocation8 + $0x414] sm:$0xf0]  ;;  %v5107_v33 = vld [vmem:[#allocation8 + $0x580] sm:$0xf] }
  0xa2   : > { %2422 = vmatpush.bf16.msrb.mxu2 %v4788_v23  ;;  %v5011_v23 = vld [vmem:[#allocation8 + $0x4c0] sm:$0xf]  ;;  %v7103_v2 = vpack.c.b16 %v951_v40, %v951_v40  ;;  %v5051_v7 = vld [vmem:[#allocation8 + $0x510] sm:$0xf]  ;;  %v6371_v20 = vld [vmem:[#allocation8 + $0x594] sm:$0xf0] }
  0xa3   : > { %2440 = vmatpush.bf16.msrb.mxu3 %v4852_v45  ;;  %2387 = vmatmul.bf16.vlgmr.msrb.gmra.mxu0 %v7089_v62  ;;  %v5012_v31 = vor.u32 %v6345_v24, %v5011_v23  ;;  %v6357_v45 = vld [vmem:[#allocation8 + $0x524] sm:$0xf0]  ;;  %v4923_v13 = vld [vmem:[#allocation8 + $0x410] sm:$0xf]  ;;  %v5052_v16 = vor.u32 %v6355_v8, %v5051_v7  ;;  %v6431_v24 = vld [vmem:[#allocation8 + $0x774] sm:$0xf0] }
  0xa4   : > { %2451 = vmatpush.bf16.msra.mxu0 %v4972_v50  ;;  %2405 = vmatmul.bf16.vlgmr.msrb.gmra.mxu1 %v7091_v63  ;;  %v5060_v60 = vor.u32 %v6357_v45, %v5059_v44  ;;  %v5115_v19 = vld [vmem:[#allocation8 + $0x590] sm:$0xf]  ;;  %v4924_v25 = vor.u32 %v6323_v14, %v4923_v13  ;;  %v6369_v34 = vld [vmem:[#allocation8 + $0x584] sm:$0xf0]  ;;  %v6399_v37 = vld [vmem:[#allocation8 + $0x674] sm:$0xf0] }
  0xa5   : > { %2469 = vmatpush.bf16.msra.mxu1 %v5036_v36  ;;  %2423 = vmatmul.bf16.vlgmr.msrb.gmra.mxu2 %v7093_v3  ;;  %v5068_v36 = vor.u32 %v6359_v28, %v5067_v27  ;;  %v5355_v23 = vld [vmem:[#allocation8 + $0x770] sm:$0xf]  ;;  %v4915_v27 = vld [vmem:[#allocation8 + $0x400] sm:$0xf]  ;;  %v6321_v28 = vld [vmem:[#allocation8 + $0x404] sm:$0xf0] }
  0xa6   : > { %2487 = vmatpush.bf16.msra.mxu2 %v5100_v32  ;;  %2441 = vmatmul.bf16.vlgmr.msrb.gmra.mxu3 %v7095_v4  ;;  %v630_v32 = vld [vmem:[%s7033_s21 + $0x98] sm:$0xff]  ;;  %v5291_v38 = vld [vmem:[#allocation8 + $0x6f0] sm:$0xf]  ;;  %v4916_v43 = vor.u32 %v6321_v28, %v4915_v27  ;;  %v5347_v45 = vld [vmem:[#allocation8 + $0x760] sm:$0xf]  ;;  %s7566_s15 = smov (!%p7249_p1, %s464_s15), 5 }
  0xa7   : > { %2505 = vmatpush.bf16.msra.mxu3 %v5164_v56  ;;  %v953_v46 = vunpack.c.l.b16 %v630_v32  ;;  %v954_v50 = vunpack.c.h.b16 %v630_v32  ;;  %v4931_v56 = vld [vmem:[#allocation8 + $0x420] sm:$0xf]  ;;  %v6337_v32 = vld [vmem:[#allocation8 + $0x484] sm:$0xf0]  ;;  %v6415_v39 = vld [vmem:[#allocation8 + $0x6f4] sm:$0xf0] }
  0xa8   : > { %2452 = vmatpush.bf16.msra.mxu0 %v4964_v5  ;;  %v7105_v5 = vpack.c.b16 %v952_v41, %v952_v41  ;;  %v5419_v40 = vld [vmem:[#allocation8 + $0x7f0] sm:$0xf]  ;;  %v6447_v41 = vld [vmem:[#allocation8 + $0x7f4] sm:$0xf0]  ;;  %v4980_v44 = vor.u32 %v6337_v32, %v4979_v29  ;;  %v5219_v0 = vld [vmem:[#allocation8 + $0x660] sm:$0xf] }
  0xa9   : > { %2470 = vmatpush.bf16.msra.mxu1 %v5028_v6  ;;  %v6373_v6 = vld [vmem:[#allocation8 + $0x5a4] sm:$0xf0]  ;;  %v5420_v61 = vor.u32 %v6447_v41, %v5419_v40  ;;  %v6181_v8 = vld [vmem:[%s7033_s21 + $0x2c] sm:$0xf]  ;;  %v5283_v13 = vld [vmem:[#allocation8 + $0x6e0] sm:$0xf] }
  0xaa   : > { %2488 = vmatpush.bf16.msra.mxu2 %v5092_v58  ;;  %v6325_v58 = vld [vmem:[#allocation8 + $0x424] sm:$0xf0]  ;;  %v5124_v15 = vor.u32 %v6373_v6, %v5123_v1  ;;  %v5275_v28 = vld [vmem:[#allocation8 + $0x6d0] sm:$0xf]  ;;  %v6411_v29 = vld [vmem:[#allocation8 + $0x6d4] sm:$0xf0] }
  0xab   : > { %2506 = vmatpush.bf16.msra.mxu3 %v5156_v9  ;;  %v7107_v9 = vpack.c.b16 %v953_v46, %v953_v46  ;;  %v4932_v11 = vor.u32 %v6325_v58, %v4931_v56  ;;  %v6429_v46 = vld [vmem:[#allocation8 + $0x764] sm:$0xf0]  ;;  %v6180_v56 = vld [vmem:[%s7033_s21 + $0x24] sm:$0xf]  ;;  %v5403_v32 = vld [vmem:[#allocation8 + $0x7d0] sm:$0xf] }
  0xac   : > { %2453 = vmatpush.bf16.msra.mxu0 %v4956_v17  ;;  %v4987_v17 = vld [vmem:[#allocation8 + $0x490] sm:$0xf]  ;;  %v6397_v1 = vld [vmem:[#allocation8 + $0x664] sm:$0xf0]  ;;  %v5267_v40 = vld [vmem:[#allocation8 + $0x6c0] sm:$0xf] }
  0xad   : > { %2471 = vmatpush.bf16.msra.mxu1 %v5020_v18  ;;  %v6339_v18 = vld [vmem:[#allocation8 + $0x494] sm:$0xf0]  ;;  %v4379_v6 = vld [vmem:[%s7033_s21 + $0x28] sm:$0xf]  ;;  %s4336_s7 = sshll.u32 %s7566_s15, 3  ;;  %s6487_s17 = smul.u32 24, %s7021_s14 }
  0xae   : > { %2489 = vmatpush.bf16.msra.mxu2 %v5084_v10  ;;  %v7109_v10 = vpack.c.b16 %v954_v50, %v954_v50  ;;  %v4988_v26 = vor.u32 %v6339_v18, %v4987_v17  ;;  %v5108_v50 = vor.u32 %v6369_v34, %v5107_v33  ;;  %v6189_v7 = vld [vmem:[%s7033_s21 + $0x64] sm:$0xf0]  ;;  %v5339_v18 = vld [vmem:[#allocation8 + $0x750] sm:$0xf]  ;;  %v6443_v33 = vld [vmem:[#allocation8 + $0x7d4] sm:$0xf0]  ;;  %s7285_s25 = scalar_lea.vmem %s7519_s2, %s4336_s7 }
  0xaf   : > { %2507 = vmatpush.bf16.msra.mxu3 %v5148_v21  ;;  %v5043_v21 = vld [vmem:[#allocation8 + $0x500] sm:$0xf]  ;;  %v6413_v14 = vld [vmem:[#allocation8 + $0x6e4] sm:$0xf0]  ;;  %s461_s18 = scalar_lea.vmem [#allocation11], %s6487_s17  ;;  %s6464_s0 = smul.u32 24, %s6906_s13 }
  0xb0   : > { %2454 = vmatpush.bf16.msra.mxu0 %v4948_v30  ;;  %v5116_v30 = vor.u32 %v6371_v20, %v5115_v19  ;;  %v6445_v17 = vld [vmem:[#allocation8 + $0x7e4] sm:$0xf0]  ;;  %v5331_v34 = vld [vmem:[#allocation8 + $0x740] sm:$0xf]  ;;  %s4183_s28 = sshll.u32 %s461_s18, 4  ;;  %s4171_s15 = scalar_lea.sflag [#allocation4], %s7021_s14  ;;  %s4184_s28 = int_to_ptr.vmem [resolvable:$true] %s4183_s28 }
  0xb1   : > { %2472 = vmatpush.bf16.msra.mxu1 %v5012_v31  ;;  %v6409_v41 = vld [vmem:[#allocation8 + $0x6c4] sm:$0xf0]  ;;  %s4182_s22 = scalar_lea.hbm %s7526_s9, %s6464_s0 }
  0xb2   : > { %2490 = vmatpush.bf16.msra.mxu2 %v5076_v22  ;;  %v6353_v22 = vld [vmem:[#allocation8 + $0x504] sm:$0xf0] }
  0xb3   : > { %2508 = vmatpush.bf16.msra.mxu3 %v5140_v35  ;;  %2392 = vmatmul.bf16.gmra.mxu0 %v7103_v2  ;;  %v5044_v31 = vor.u32 %v6353_v22, %v5043_v21  ;;  %v5356_v35 = vor.u32 %v6431_v24, %v5355_v23  ;;  %v6427_v21 = vld [vmem:[#allocation8 + $0x754] sm:$0xf0]  ;;  %v5211_v22 = vld [vmem:[#allocation8 + $0x650] sm:$0xf]  ;;  %v7127_v24 = vor.u32 %v6189_v7, %v4379_v6 }
  0xb4   : > { %2455 = vmatpush.bf16.msra.mxu0 %v4940_v51  ;;  %2410 = vmatmul.bf16.gmra.mxu1 %v7105_v5  ;;  %v4371_v51 = vld [vmem:[%s7033_s21 + $0x20] sm:$0xf]  ;;  %v6395_v23 = vld [vmem:[#allocation8 + $0x654] sm:$0xf0] }
  0xb5   : > { %2473 = vmatpush.bf16.msra.mxu1 %v5004_v55  ;;  %2428 = vmatmul.bf16.gmra.mxu2 %v7107_v9  ;;  %v6188_v55 = vld [vmem:[%s7033_s21 + $0x5c] sm:$0xf0] }
  0xb6   : > { %2491 = vmatpush.bf16.msra.mxu2 %v5068_v36  ;;  %2446 = vmatmul.bf16.gmra.mxu3 %v7109_v10  ;;  %v5227_v36 = vld [vmem:[#allocation8 + $0x670] sm:$0xf]  ;;  %v7123_v19 = vor.u32 %v6188_v55, %v4371_v51  ;;  %v6423_v51 = vld [vmem:[#allocation8 + $0x734] sm:$0xf0] }
  0xb7   : > { %2509 = vmatpush.bf16.msra.mxu3 %v5132_v59  ;;  %v5228_v58 = vor.u32 %v6399_v37, %v5227_v36  ;;  %v4373_v59 = vld [vmem:[%s7033_s21 + $0x60] sm:$0xf0]  ;;  %v5203_v36 = vld [vmem:[#allocation8 + $0x640] sm:$0xf]  ;;  %v6393_v37 = vld [vmem:[#allocation8 + $0x644] sm:$0xf0] }
  0xb8   : > { %2456 = vmatpush.bf16.msra.mxu0 %v4932_v11  ;;  %v5348_v11 = vor.u32 %v6429_v46, %v5347_v45  ;;  %v7125_v20 = vor.u32 %v6180_v56, %v4373_v59  ;;  %v5395_v45 = vld [vmem:[#allocation8 + $0x7c0] sm:$0xf]  ;;  %v6441_v46 = vld [vmem:[#allocation8 + $0x7c4] sm:$0xf0]  ;;  %v5195_v55 = vld [vmem:[#allocation8 + $0x630] sm:$0xf]  ;;  %v5268_v59 = vor.u32 %v6409_v41, %v5267_v40 }
  0xb9   : > { %2474 = vmatpush.bf16.msra.mxu1 %v4996_v12  ;;  %v4381_v12 = vld [vmem:[%s7033_s21 + $0x68] sm:$0xf0]  ;;  %v6391_v56 = vld [vmem:[#allocation8 + $0x634] sm:$0xf0] }
  0xba   : > { %2492 = vmatpush.bf16.msra.mxu2 %v5060_v60  ;;  %v5292_v60 = vor.u32 %v6415_v39, %v5291_v38  ;;  %v5276_v38 = vor.u32 %v6411_v29, %v5275_v28  ;;  %v5404_v39 = vor.u32 %v6443_v33, %v5403_v32  ;;  %v5196_v7 = vor.u32 %v6391_v56, %v5195_v55  ;;  %v5307_v32 = vld [vmem:[#allocation8 + $0x710] sm:$0xf]  ;;  %v5299_v55 = vld [vmem:[#allocation8 + $0x700] sm:$0xf]  ;;  %v6417_v56 = vld [vmem:[#allocation8 + $0x704] sm:$0xf0] }
  0xbb   : > { %2510 = vmatpush.bf16.msra.mxu3 %v5124_v15  ;;  %v5220_v15 = vor.u32 %v6397_v1, %v5219_v0  ;;  %v5259_v0 = vld [vmem:[#allocation8 + $0x6b0] sm:$0xf]  ;;  %v6407_v1 = vld [vmem:[#allocation8 + $0x6b4] sm:$0xf0] }
  0xbc   : > { %2457 = vmatpush.bf16.msra.mxu0 %v4924_v25  ;;  %v7129_v25 = vor.u32 %v6181_v8, %v4381_v12  ;;  %v5387_v8 = vld [vmem:[#allocation8 + $0x7b0] sm:$0xf]  ;;  %v5315_v12 = vld [vmem:[#allocation8 + $0x720] sm:$0xf] }
  0xbd   : > { %2475 = vmatpush.bf16.msra.mxu1 %v4988_v26  ;;  %v5284_v26 = vor.u32 %v6413_v14, %v5283_v13 }
  0xbe   : > { %2493 = vmatpush.bf16.msra.mxu2 %v5052_v16  ;;  %v5411_v16 = vld [vmem:[#allocation8 + $0x7e0] sm:$0xf] }
  0xbf   : > { %2511 = vmatpush.bf16.msra.mxu3 %v5116_v30  ;;  %v5412_v27 = vor.u32 %v6445_v17, %v5411_v16  ;;  %v5340_v30 = vor.u32 %v6427_v21, %v5339_v18  ;;  %v5187_v16 = vld [vmem:[#allocation8 + $0x620] sm:$0xf]  ;;  %v6389_v17 = vld [vmem:[#allocation8 + $0x624] sm:$0xf0] }
  0xc0   : > { %2458 = vmatpush.bf16.msra.mxu0 %v4916_v43  ;;  %v5188_v29 = vor.u32 %v6389_v17, %v5187_v16  ;;  %v6222_v16 = vld [vmem:[#allocation8 + $0xf4] sm:$0xf]  ;;  %v4525_v17 = vld [vmem:[#allocation8 + $0xf8] sm:$0xf0] }
  0xc1   : > { %2476 = vmatpush.bf16.msra.mxu1 %v4980_v44  ;;  %v5204_v44 = vor.u32 %v6393_v37, %v5203_v36  ;;  %v5179_v36 = vld [vmem:[#allocation8 + $0x610] sm:$0xf]  ;;  %v6387_v37 = vld [vmem:[#allocation8 + $0x614] sm:$0xf0] }
  0xc2   : > { %2494 = vmatpush.bf16.msra.mxu2 %v5044_v31  ;;  %v5212_v31 = vor.u32 %v6395_v23, %v5211_v22  ;;  %v5260_v22 = vor.u32 %v6407_v1, %v5259_v0  ;;  %v6206_v0 = vld [vmem:[#allocation8 + $0x74] sm:$0xf]  ;;  %v4461_v1 = vld [vmem:[#allocation8 + $0x78] sm:$0xf0] }
  0xc3   : > { %2512 = vmatpush.bf16.msra.mxu3 %v5108_v50  ;;  %2459 = vmatmul.bf16.vlgmr.msra.gmra.mxu0 %v7123_v19  ;;  %v5323_v50 = vld [vmem:[#allocation8 + $0x730] sm:$0xf] }
  0xc4   : > { %2523 = vmatpush.bf16.msrb.mxu0 %v5228_v58  ;;  %2477 = vmatmul.bf16.vlgmr.msra.gmra.mxu1 %v7125_v20  ;;  %v631_v58 = vld [vmem:[%s7033_s21 + $0xa0] sm:$0xff]  ;;  %v5324_v6 = vor.u32 %v6423_v51, %v5323_v50  ;;  %v5180_v50 = vor.u32 %v6387_v37, %v5179_v36  ;;  %v6435_v51 = vld [vmem:[#allocation8 + $0x794] sm:$0xf0]  ;;  %v6182_v36 = vld [vmem:[%s7033_s21 + $0x34] sm:$0xf] }
  0xc5   : > { %2541 = vmatpush.bf16.msrb.mxu1 %v5292_v60  ;;  %2495 = vmatmul.bf16.vlgmr.msra.gmra.mxu2 %v7127_v24  ;;  %v5396_v60 = vor.u32 %v6441_v46, %v5395_v45  ;;  %v955_v13 = vunpack.c.l.b16 %v631_v58  ;;  %v956_v14 = vunpack.c.h.b16 %v631_v58  ;;  %v5371_v45 = vld [vmem:[#allocation8 + $0x790] sm:$0xf]  ;;  %v5171_v58 = vld [vmem:[#allocation8 + $0x600] sm:$0xf]  ;;  %v4389_v37 = vld [vmem:[%s7033_s21 + $0x70] sm:$0xf0] }
  0xc6   : > { %2559 = vmatpush.bf16.msrb.mxu2 %v5356_v35  ;;  %v6425_v35 = vld [vmem:[#allocation8 + $0x744] sm:$0xf0]  ;;  %2513 = vmatmul.bf16.vlgmr.msra.gmra.mxu3 %v7129_v25 }
  0xc7   : > { %2577 = vmatpush.bf16.msrb.mxu3 %v5420_v61  ;;  %v5332_v43 = vor.u32 %v6425_v35, %v5331_v34  ;;  %v632_v61 = vld [vmem:[%s7033_s21 + $0xa8] sm:$0xff]  ;;  %v7137_v33 = vpack.c.b16 %v955_v13, %v955_v13  ;;  %v7139_v34 = vpack.c.b16 %v956_v14, %v956_v14  ;;  %v6419_v35 = vld [vmem:[#allocation8 + $0x714] sm:$0xf0]  ;;  %v5300_v13 = vor.u32 %v6417_v56, %v5299_v55 }
  0xc8   : > { %2524 = vmatpush.bf16.msrb.mxu0 %v5220_v15  ;;  %v6421_v15 = vld [vmem:[#allocation8 + $0x724] sm:$0xf0]  ;;  %v957_v18 = vunpack.c.l.b16 %v632_v61  ;;  %v958_v21 = vunpack.c.h.b16 %v632_v61  ;;  %v5308_v46 = vor.u32 %v6419_v35, %v5307_v32  ;;  %v4589_v61 = vld [vmem:[#allocation8 + $0x178] sm:$0xf0]  ;;  %v4387_v32 = vld [vmem:[%s7033_s21 + $0x30] sm:$0xf] }
  0xc9   : > { %2542 = vmatpush.bf16.msrb.mxu1 %v5284_v26  ;;  %v5251_v26 = vld [vmem:[#allocation8 + $0x6a0] sm:$0xf]  ;;  %v5316_v28 = vor.u32 %v6421_v15, %v5315_v12  ;;  %v6433_v15 = vld [vmem:[#allocation8 + $0x784] sm:$0xf0]  ;;  %v6190_v35 = vld [vmem:[%s7033_s21 + $0x6c] sm:$0xf0] }
  0xca   : > { %2560 = vmatpush.bf16.msrb.mxu2 %v5348_v11  ;;  %v6439_v11 = vld [vmem:[#allocation8 + $0x7b4] sm:$0xf0]  ;;  %v5363_v12 = vld [vmem:[#allocation8 + $0x780] sm:$0xf] }
  0xcb   : > { %2578 = vmatpush.bf16.msrb.mxu3 %v5412_v27  ;;  %v5388_v23 = vor.u32 %v6439_v11, %v5387_v8  ;;  %v6405_v27 = vld [vmem:[#allocation8 + $0x6a4] sm:$0xf0]  ;;  %v5235_v8 = vld [vmem:[#allocation8 + $0x680] sm:$0xf]  ;;  %v4395_v55 = vld [vmem:[%s7033_s21 + $0x38] sm:$0xf] }
  0xcc   : > { %2525 = vmatpush.bf16.msrb.mxu0 %v5212_v31  ;;  %v6437_v31 = vld [vmem:[#allocation8 + $0x7a4] sm:$0xf0]  ;;  %v5252_v40 = vor.u32 %v6405_v27, %v5251_v26  ;;  %v6236_v26 = vld [vmem:[#allocation8 + $0x164] sm:$0xf]  ;;  %v4581_v27 = vld [vmem:[#allocation8 + $0x168] sm:$0xf0] }
  0xcd   : > { %2543 = vmatpush.bf16.msrb.mxu1 %v5276_v38  ;;  %v7141_v38 = vpack.c.b16 %v957_v18, %v957_v18  ;;  %v6401_v11 = vld [vmem:[#allocation8 + $0x684] sm:$0xf0]  ;;  %v6191_v56 = vld [vmem:[%s7033_s21 + $0x74] sm:$0xf0] }
  0xce   : > { %2561 = vmatpush.bf16.msrb.mxu2 %v5340_v30  ;;  %v5379_v30 = vld [vmem:[#allocation8 + $0x7a0] sm:$0xf] }
  0xcf   : > { %2579 = vmatpush.bf16.msrb.mxu3 %v5404_v39  ;;  %v7143_v39 = vpack.c.b16 %v958_v21, %v958_v21  ;;  %v5380_v41 = vor.u32 %v6437_v31, %v5379_v30  ;;  %v4464_v21 = vor.u32 %v6206_v0, %v4461_v1  ;;  %v5236_v30 = vor.u32 %v6401_v11, %v5235_v8  ;;  %v6218_v8 = vld [vmem:[#allocation8 + $0xd4] sm:$0xf] }
  0xd0   : > { %2526 = vmatpush.bf16.msrb.mxu0 %v5204_v44  ;;  %v6403_v44 = vld [vmem:[#allocation8 + $0x694] sm:$0xf0]  ;;  %v5364_v31 = vor.u32 %v6433_v15, %v5363_v12  ;;  %v7157_v11 = vor.u32 %v6190_v35, %v4387_v32  ;;  %v7159_v12 = vor.u32 %v6182_v36, %v4389_v37  ;;  %v4637_v15 = vld [vmem:[#allocation8 + $0x1d8] sm:$0xf0]  ;;  %v6248_v32 = vld [vmem:[#allocation8 + $0x1c4] sm:$0xf] }
  0xd1   : > { %2544 = vmatpush.bf16.msrb.mxu1 %v5268_v59  ;;  %v6385_v59 = vld [vmem:[#allocation8 + $0x604] sm:$0xf0]  ;;  %v4629_v35 = vld [vmem:[#allocation8 + $0x1c8] sm:$0xf0] }
  0xd2   : > { %2562 = vmatpush.bf16.msrb.mxu2 %v5332_v43  ;;  %v5243_v43 = vld [vmem:[#allocation8 + $0x690] sm:$0xf]  ;;  %v5172_v14 = vor.u32 %v6385_v59, %v5171_v58  ;;  %v6183_v58 = vld [vmem:[%s7033_s21 + $0x3c] sm:$0xf] }
  0xd3   : > { %2580 = vmatpush.bf16.msrb.mxu3 %v5396_v60  ;;  %2464 = vmatmul.bf16.gmra.mxu0 %v7137_v33  ;;  %v6238_v60 = vld [vmem:[#allocation8 + $0x174] sm:$0xf]  ;;  %v4397_v59 = vld [vmem:[%s7033_s21 + $0x78] sm:$0xf0] }
  0xd4   : > { %2527 = vmatpush.bf16.msrb.mxu0 %v5196_v7  ;;  %2482 = vmatmul.bf16.gmra.mxu1 %v7139_v34  ;;  %v5372_v7 = vor.u32 %v6435_v51, %v5371_v45  ;;  %v4592_v18 = vor.u32 %v6238_v60, %v4589_v61  ;;  %v4645_v51 = vld [vmem:[#allocation8 + $0x1e8] sm:$0xf0]  ;;  %v6234_v60 = vld [vmem:[#allocation8 + $0x154] sm:$0xf]  ;;  %v4573_v61 = vld [vmem:[#allocation8 + $0x158] sm:$0xf0] }
  0xd5   : > { %2545 = vmatpush.bf16.msrb.mxu1 %v5260_v22  ;;  %2500 = vmatmul.bf16.gmra.mxu2 %v7141_v38  ;;  %v6254_v22 = vld [vmem:[#allocation8 + $0x1f4] sm:$0xf] }
  0xd6   : > { %2563 = vmatpush.bf16.msrb.mxu2 %v5324_v6  ;;  %2518 = vmatmul.bf16.gmra.mxu3 %v7143_v39  ;;  %v5244_v6 = vor.u32 %v6403_v44, %v5243_v43  ;;  %v6220_v43 = vld [vmem:[#allocation8 + $0xe4] sm:$0xf]  ;;  %v4584_v44 = vor.u32 %v6236_v26, %v4581_v27 }
  0xd7   : > { %2581 = vmatpush.bf16.msrb.mxu3 %v5388_v23  ;;  %v4653_v23 = vld [vmem:[#allocation8 + $0x1f8] sm:$0xf0] }
  0xd8   : > { %2528 = vmatpush.bf16.msrb.mxu0 %v5188_v29  ;;  %v4453_v29 = vld [vmem:[#allocation8 + $0x68] sm:$0xf0] }
  0xd9   : > { %2546 = vmatpush.bf16.msrb.mxu1 %v5252_v40  ;;  %v4528_v40 = vor.u32 %v6222_v16, %v4525_v17  ;;  %v7161_v16 = vor.u32 %v6191_v56, %v4395_v55  ;;  %v7163_v17 = vor.u32 %v6183_v58, %v4397_v59  ;;  %v6246_v55 = vld [vmem:[#allocation8 + $0x1b4] sm:$0xf]  ;;  %v4621_v56 = vld [vmem:[#allocation8 + $0x1b8] sm:$0xf0] }
  0xda   : > { %2564 = vmatpush.bf16.msrb.mxu2 %v5316_v28  ;;  %v6204_v28 = vld [vmem:[#allocation8 + $0x64] sm:$0xf]  ;;  %v633_v58 = vld [vmem:[%s7033_s21 + $0xb0] sm:$0xff]  ;;  %v634_v59 = vld [vmem:[%s7033_s21 + $0xb8] sm:$0xff]  ;;  %s4185_s21 = sshll.u32 %s4182_s22, 4  ;;  %s4186_s21 = int_to_ptr.hbm [resolvable:$true] %s4185_s21 }
  0xdb   : > { %2582 = vmatpush.bf16.msrb.mxu3 %v5380_v41  ;;  %v4656_v41 = vor.u32 %v6254_v22, %v4653_v23  ;;  %v4456_v45 = vor.u32 %v6204_v28, %v4453_v29  ;;  %v6232_v22 = vld [vmem:[#allocation8 + $0x144] sm:$0xf]  ;;  %v4565_v23 = vld [vmem:[#allocation8 + $0x148] sm:$0xf0]  ;;  %s6754_s4 = sshra.s32 %s4186_s21, 4  ;;  %s6755_s4 = int_to_ptr.hbm [resolvable:$true] %s6754_s4 }
  0xdc   : > { %2529 = vmatpush.bf16.msrb.mxu0 %v5180_v50  ;;  %v6252_v50 = vld [vmem:[#allocation8 + $0x1e4] sm:$0xf]  ;;  %v4437_v29 = vld [vmem:[#allocation8 + $0x48] sm:$0xf0]  ;;  %v4568_v36 = vor.u32 %v6232_v22, %v4565_v23  ;;  %s6756_s13 = scalar_lea.hbm %s6755_s4, 24  ;;  %p6761_p10 = scmp.lt.s32.totalorder %s6755_s4, %s7526_s9 }
  0xdd   : > { %2547 = vmatpush.bf16.msrb.mxu1 %v5244_v6  ;;  %v4648_v1 = vor.u32 %v6252_v50, %v4645_v51  ;;  %v6202_v6 = vld [vmem:[#allocation8 + $0x54] sm:$0xf]  ;;  %v6200_v28 = vld [vmem:[#allocation8 + $0x44] sm:$0xf]  ;;  %v4493_v51 = vld [vmem:[#allocation8 + $0xb8] sm:$0xf0]  ;;  %p6757_p4 = scmp.ne.s32.totalorder %s6755_s4, %s6756_s13  ;;  %p6762_p11 = scmp.lt.s32.totalorder %s6760_s24, %s6756_s13 }
  0xde   : > { %2565 = vmatpush.bf16.msrb.mxu2 %v5308_v46  ;;  %v4517_v46 = vld [vmem:[#allocation8 + $0xe8] sm:$0xf0]  ;;  %v4440_v37 = vor.u32 %v6200_v28, %v4437_v29  ;;  %v6214_v50 = vld [vmem:[#allocation8 + $0xb4] sm:$0xf]  ;;  %v6244_v22 = vld [vmem:[#allocation8 + $0x1a4] sm:$0xf] }
  0xdf   : > { %2583 = vmatpush.bf16.msrb.mxu3 %v5372_v7  ;;  %v4520_v0 = vor.u32 %v6220_v43, %v4517_v46  ;;  %v4445_v7 = vld [vmem:[#allocation8 + $0x58] sm:$0xf0]  ;;  %v4613_v23 = vld [vmem:[#allocation8 + $0x1a8] sm:$0xf0]  ;;  %p6758_p8 = pnand %p6757_p4, %p6970_p7  ;;  %p6763_p2 = por %p6762_p11, %p6761_p10 }
  0xe0   : > { %2530 = vmatpush.bf16.msrb.mxu0 %v5172_v14  ;;  %v6250_v14 = vld [vmem:[#allocation8 + $0x1d4] sm:$0xf]  ;;  %v4429_v46 = vld [vmem:[#allocation8 + $0x38] sm:$0xf0] }
  0xe1   : > { %2548 = vmatpush.bf16.msrb.mxu1 %v5236_v30  ;;  %v4640_v27 = vor.u32 %v6250_v14, %v4637_v15  ;;  %v6216_v30 = vld [vmem:[#allocation8 + $0xc4] sm:$0xf]  ;;  %v959_v15 = vunpack.c.l.b16 %v633_v58  ;;  %p6759_p9 = pneg %p6758_p8 }
  0xe2   : > { %2566 = vmatpush.bf16.msrb.mxu2 %v5300_v13  ;;  %v4509_v13 = vld [vmem:[#allocation8 + $0xd8] sm:$0xf0]  ;;  %v6212_v14 = vld [vmem:[#allocation8 + $0xa4] sm:$0xf] }
  0xe3   : > { %2584 = vmatpush.bf16.msrb.mxu3 %v5364_v31  ;;  %v4512_v26 = vor.u32 %v6218_v8, %v4509_v13  ;;  %2531 = vmatmul.bf16.vlgmr.msrb.gmra.mxu0 %v7157_v11  ;;  %v4501_v31 = vld [vmem:[#allocation8 + $0xc8] sm:$0xf0]  ;;  %v6196_v8 = vld [vmem:[#allocation8 + $0x24] sm:$0xf]  ;;  %p6764_p12 = pnand %p6763_p2, %p6759_p9 }
  0xe4   : > { %2595 = vmatpush.bf16.msra.mxu0 %v4464_v21  ;;  %v4448_v21 = vor.u32 %v6202_v6, %v4445_v7  ;;  %2549 = vmatmul.bf16.vlgmr.msrb.gmra.mxu1 %v7159_v12  ;;  %v4504_v43 = vor.u32 %v6216_v30, %v4501_v31  ;;  %v4496_v6 = vor.u32 %v6214_v50, %v4493_v51  ;;  %v4421_v13 = vld [vmem:[#allocation8 + $0x28] sm:$0xf0]  ;;  %v6226_v30 = vld [vmem:[#allocation8 + $0x114] sm:$0xf]  ;;  %v4541_v31 = vld [vmem:[#allocation8 + $0x118] sm:$0xf0] }
  0xe5   : > { %2613 = vmatpush.bf16.msra.mxu1 %v4528_v40  ;;  %2567 = vmatmul.bf16.vlgmr.msrb.gmra.mxu2 %v7161_v16  ;;  %v6230_v40 = vld [vmem:[#allocation8 + $0x134] sm:$0xf]  ;;  %v4624_v7 = vor.u32 %v6246_v55, %v4621_v56  ;;  %v4424_v29 = vor.u32 %v6196_v8, %v4421_v13  ;;  %v6224_v55 = vld [vmem:[#allocation8 + $0x104] sm:$0xf]  ;;  %v4544_v56 = vor.u32 %v6226_v30, %v4541_v31  ;;  %v4597_v13 = vld [vmem:[#allocation8 + $0x188] sm:$0xf0] }
  0xe6   : > { %2631 = vmatpush.bf16.msra.mxu2 %v4592_v18  ;;  %v4576_v18 = vor.u32 %v6234_v60, %v4573_v61  ;;  %2585 = vmatmul.bf16.vlgmr.msrb.gmra.mxu3 %v7163_v17  ;;  %v6240_v8 = vld [vmem:[#allocation8 + $0x184] sm:$0xf] }
  0xe7   : > { %2649 = vmatpush.bf16.msra.mxu3 %v4656_v41  ;;  %v4557_v41 = vld [vmem:[#allocation8 + $0x138] sm:$0xf0]  ;;  %v4600_v31 = vor.u32 %v6240_v8, %v4597_v13  ;;  %v6282_v13 = vld [vmem:[#allocation8 + $0x2d4] sm:$0xf] }
  0xe8   : > { %2596 = vmatpush.bf16.msra.mxu0 %v4456_v45  ;;  %v6198_v45 = vld [vmem:[#allocation8 + $0x34] sm:$0xf]  ;;  %v4560_v60 = vor.u32 %v6230_v40, %v4557_v41  ;;  %v7171_v41 = vpack.c.b16 %v959_v15, %v959_v15  ;;  %v4845_v15 = vld [vmem:[#allocation8 + $0x378] sm:$0xf0] }
  0xe9   : > { %2614 = vmatpush.bf16.msra.mxu1 %v4520_v0  ;;  %v4432_v61 = vor.u32 %v6198_v45, %v4429_v46  ;;  %v6228_v0 = vld [vmem:[#allocation8 + $0x124] sm:$0xf]  ;;  %v6210_v40 = vld [vmem:[#allocation8 + $0x94] sm:$0xf]  ;;  %v4605_v46 = vld [vmem:[#allocation8 + $0x198] sm:$0xf0] }
  0xea   : > { %2632 = vmatpush.bf16.msra.mxu2 %v4584_v44  ;;  %v4632_v44 = vor.u32 %v6248_v32, %v4629_v35  ;;  %v4616_v35 = vor.u32 %v6244_v22, %v4613_v23  ;;  %v6242_v45 = vld [vmem:[#allocation8 + $0x194] sm:$0xf]  ;;  %v4701_v8 = vld [vmem:[#allocation8 + $0x258] sm:$0xf0] }
  0xeb   : > { %2650 = vmatpush.bf16.msra.mxu3 %v4648_v1  ;;  %v4549_v1 = vld [vmem:[#allocation8 + $0x128] sm:$0xf0]  ;;  %v6286_v22 = vld [vmem:[#allocation8 + $0x2f4] sm:$0xf] }
  0xec   : > { %2597 = vmatpush.bf16.msra.mxu0 %v4448_v21  ;;  %v4485_v21 = vld [vmem:[#allocation8 + $0xa8] sm:$0xf0]  ;;  %v4552_v28 = vor.u32 %v6228_v0, %v4549_v1  ;;  %v4608_v1 = vor.u32 %v6242_v45, %v4605_v46  ;;  %v6268_v45 = vld [vmem:[#allocation8 + $0x264] sm:$0xf] }
  0xed   : > { %2615 = vmatpush.bf16.msra.mxu1 %v4512_v26  ;;  %v961_v26 = vunpack.c.l.b16 %v634_v59  ;;  %v4488_v32 = vor.u32 %v6212_v14, %v4485_v21  ;;  %v6302_v14 = vld [vmem:[#allocation8 + $0x374] sm:$0xf]  ;;  %v4717_v21 = vld [vmem:[#allocation8 + $0x278] sm:$0xf0]  ;;  %v4709_v46 = vld [vmem:[#allocation8 + $0x268] sm:$0xf0] }
  0xee   : > { %2633 = vmatpush.bf16.msra.mxu2 %v4576_v18  ;;  %v960_v18 = vunpack.c.h.b16 %v633_v58 }
  0xef   : > { %2651 = vmatpush.bf16.msra.mxu3 %v4640_v27  ;;  %v962_v27 = vunpack.c.h.b16 %v634_v59  ;;  %v7175_v50 = vpack.c.b16 %v961_v26, %v961_v26  ;;  %v4533_v59 = vld [vmem:[#allocation8 + $0x108] sm:$0xf0] }
  0xf0   : > { %2598 = vmatpush.bf16.msra.mxu0 %v4440_v37  ;;  %v4413_v37 = vld [vmem:[#allocation8 + $0x18] sm:$0xf0]  ;;  %v4536_v23 = vor.u32 %v6224_v55, %v4533_v59  ;;  %v4773_v55 = vld [vmem:[#allocation8 + $0x2e8] sm:$0xf0] }
  0xf1   : > { %2616 = vmatpush.bf16.msra.mxu1 %v4504_v43  ;;  %v7173_v43 = vpack.c.b16 %v960_v18, %v960_v18  ;;  %v7177_v51 = vpack.c.b16 %v962_v27, %v962_v27  ;;  %v6270_v18 = vld [vmem:[#allocation8 + $0x274] sm:$0xf]  ;;  %v4781_v27 = vld [vmem:[#allocation8 + $0x2f8] sm:$0xf0] }
  0xf2   : > { %2634 = vmatpush.bf16.msra.mxu2 %v4568_v36  ;;  %v6194_v36 = vld [vmem:[#allocation8 + $0x14] sm:$0xf] }
  0xf3   : > { %2652 = vmatpush.bf16.msra.mxu3 %v4632_v44  ;;  %v4477_v44 = vld [vmem:[#allocation8 + $0x98] sm:$0xf0]  ;;  %7554 = vst [vmem:[#allocation22_spill] sm:$0xff] %v7177_v51  ;;  %v4416_v58 = vor.u32 %v6194_v36, %v4413_v37  ;;  %2536 = vmatmul.bf16.gmra.mxu0 %v7171_v41  ;;  %v6300_v36 = vld [vmem:[#allocation8 + $0x364] sm:$0xf] }
  0xf4   : > { %2599 = vmatpush.bf16.msra.mxu0 %v4432_v61  ;;  %v4405_v61 = vld [vmem:[#allocation8 + $0x8] sm:$0xf0]  ;;  %v4480_v0 = vor.u32 %v6210_v40, %v4477_v44  ;;  %2554 = vmatmul.bf16.gmra.mxu1 %v7173_v43  ;;  %v4784_v40 = vor.u32 %v6286_v22, %v4781_v27 }
  0xf5   : > { %2617 = vmatpush.bf16.msra.mxu1 %v4496_v6  ;;  %v6208_v6 = vld [vmem:[#allocation8 + $0x84] sm:$0xf]  ;;  %2572 = vmatmul.bf16.gmra.mxu2 %v7175_v50  ;;  %v4837_v37 = vld [vmem:[#allocation8 + $0x368] sm:$0xf0] }
  0xf6   : > { %2635 = vmatpush.bf16.msra.mxu2 %v4560_v60  ;;  %v6192_v60 = vld [vmem:[#allocation8 + $0x4] sm:$0xf]  ;;  %2590 = vmatmul.bf16.gmra.mxu3 %v7177_v51  ;;  %v4840_v59 = vor.u32 %v6300_v36, %v4837_v37  ;;  %v4757_v36 = vld [vmem:[#allocation8 + $0x2c8] sm:$0xf0] }
  0xf7   : > { %2653 = vmatpush.bf16.msra.mxu3 %v4624_v7  ;;  %v4469_v7 = vld [vmem:[#allocation8 + $0x88] sm:$0xf0]  ;;  %v4408_v26 = vor.u32 %v6192_v60, %v4405_v61  ;;  %v6284_v51 = vld [vmem:[#allocation8 + $0x2e4] sm:$0xf]  ;;  %v4712_v60 = vor.u32 %v6268_v45, %v4709_v46  ;;  %v6294_v46 = vld [vmem:[#allocation8 + $0x334] sm:$0xf] }
  0xf8   : > { %2600 = vmatpush.bf16.msra.mxu0 %v4424_v29  ;;  %v4909_v29 = vld [vmem:[#allocation8 + $0x3f8] sm:$0xf0]  ;;  %v4472_v30 = vor.u32 %v6208_v6, %v4469_v7  ;;  %v4776_v61 = vor.u32 %v6284_v51, %v4773_v55  ;;  %v6266_v7 = vld [vmem:[#allocation8 + $0x254] sm:$0xf]  ;;  %v4821_v51 = vld [vmem:[#allocation8 + $0x348] sm:$0xf0] }
  0xf9   : > { %2618 = vmatpush.bf16.msra.mxu1 %v4488_v32  ;;  %v4848_v32 = vor.u32 %v6302_v14, %v4845_v15  ;;  %v4829_v6 = vld [vmem:[#allocation8 + $0x358] sm:$0xf0]  ;;  %v4704_v27 = vor.u32 %v6266_v7, %v4701_v8  ;;  %v6312_v37 = vld [vmem:[#allocation8 + $0x3c4] sm:$0xf] }
  0xfa   : > { %2636 = vmatpush.bf16.msra.mxu2 %v4552_v28  ;;  %v6318_v28 = vld [vmem:[#allocation8 + $0x3f4] sm:$0xf]  ;;  %v4765_v15 = vld [vmem:[#allocation8 + $0x2d8] sm:$0xf0] }
  0xfb   : > { %2654 = vmatpush.bf16.msra.mxu3 %v4616_v35  ;;  %v4720_v35 = vor.u32 %v6270_v18, %v4717_v21  ;;  %v4912_v44 = vor.u32 %v6318_v28, %v4909_v29  ;;  %v6314_v18 = vld [vmem:[#allocation8 + $0x3d4] sm:$0xf]  ;;  %v4893_v21 = vld [vmem:[#allocation8 + $0x3d8] sm:$0xf0]  ;;  %v6296_v28 = vld [vmem:[#allocation8 + $0x344] sm:$0xf]  ;;  %v4768_v29 = vor.u32 %v6282_v13, %v4765_v15 }
  0xfc   : > { %2601 = vmatpush.bf16.msra.mxu0 %v4416_v58  ;;  %v4901_v58 = vld [vmem:[#allocation8 + $0x3e8] sm:$0xf0]  ;;  %v4813_v55 = vld [vmem:[#allocation8 + $0x338] sm:$0xf0] }
  0xfd   : > { %2619 = vmatpush.bf16.msra.mxu1 %v4480_v0  ;;  %v4816_v8 = vor.u32 %v6294_v46, %v4813_v55  ;;  %v4669_v46 = vld [vmem:[#allocation8 + $0x218] sm:$0xf0]  ;;  %v6274_v55 = vld [vmem:[#allocation8 + $0x294] sm:$0xf] }
  0xfe   : > { %2637 = vmatpush.bf16.msra.mxu2 %v4544_v56  ;;  %v6316_v56 = vld [vmem:[#allocation8 + $0x3e4] sm:$0xf] }
  0xff   : > { %2655 = vmatpush.bf16.msra.mxu3 %v4608_v1  ;;  %v4904_v0 = vor.u32 %v6316_v56, %v4901_v58  ;;  %v6298_v1 = vld [vmem:[#allocation8 + $0x354] sm:$0xf] }
 0x100   : > { %2602 = vmatpush.bf16.msra.mxu0 %v4408_v26  ;;  %v2316_v14 = vpop.f32.mrf.mxu0  ;;  %v4832_v26 = vor.u32 %v6298_v1, %v4829_v6  ;;  %v6310_v6 = vld [vmem:[#allocation8 + $0x3b4] sm:$0xf] }
 0x101   : > { %2620 = vmatpush.bf16.msra.mxu1 %v4472_v30  ;;  %v2334_v22 = vpop.f32.mrf.mxu1  ;;  %v4896_v30 = vor.u32 %v6314_v18, %v4893_v21  ;;  %v6292_v18 = vld [vmem:[#allocation8 + $0x324] sm:$0xf]  ;;  %v4805_v21 = vld [vmem:[#allocation8 + $0x328] sm:$0xf0] }
 0x102   : > { %2638 = vmatpush.bf16.msra.mxu2 %v4536_v23  ;;  %v2335_v23 = vadd.f32 %v2334_v22, %v2316_v14 }
 0x103   : > { %2656 = vmatpush.bf16.msra.mxu3 %v4600_v31  ;;  %v6264_v31 = vld [vmem:[#allocation8 + $0x244] sm:$0xf]  ;;  %2603 = vmatmul.bf16.vlgmr.msra.gmra.mxu0 %v7055_v48 }
 0x104   : > { %2667 = vmatpush.bf16.msrb.mxu0 %v4720_v35  ;;  %v6280_v35 = vld [vmem:[#allocation8 + $0x2c4] sm:$0xf]  ;;  %2621 = vmatmul.bf16.vlgmr.msra.gmra.mxu1 %v7057_v53  ;;  %v4685_v53 = vld [vmem:[#allocation8 + $0x238] sm:$0xf0] }
 0x105   : > { %2685 = vmatpush.bf16.msrb.mxu1 %v4784_v40  ;;  %v4885_v40 = vld [vmem:[#allocation8 + $0x3c8] sm:$0xf0]  ;;  %2639 = vmatmul.bf16.vlgmr.msra.gmra.mxu2 %v7059_v54  ;;  %v4760_v58 = vor.u32 %v6280_v35, %v4757_v36  ;;  %v4749_v54 = vld [vmem:[#allocation8 + $0x2b8] sm:$0xf0]  ;;  %v6290_v35 = vld [vmem:[#allocation8 + $0x314] sm:$0xf] }
 0x106   : > { %2703 = vmatpush.bf16.msrb.mxu2 %v4848_v32  ;;  %v4693_v32 = vld [vmem:[#allocation8 + $0x248] sm:$0xf0]  ;;  %2657 = vmatmul.bf16.vlgmr.msra.gmra.mxu3 %v7061_v57  ;;  %v4888_v48 = vor.u32 %v6312_v37, %v4885_v40  ;;  %v4877_v57 = vld [vmem:[#allocation8 + $0x3b8] sm:$0xf0] }
 0x107   : > { %2721 = vmatpush.bf16.msrb.mxu3 %v4912_v44  ;;  %v4824_v44 = vor.u32 %v6296_v28, %v4821_v51  ;;  %v4696_v45 = vor.u32 %v6264_v31, %v4693_v32  ;;  %v6276_v28 = vld [vmem:[#allocation8 + $0x2a4] sm:$0xf]  ;;  %v4741_v51 = vld [vmem:[#allocation8 + $0x2a8] sm:$0xf0]  ;;  %v4808_v31 = vor.u32 %v6292_v18, %v4805_v21  ;;  %v4797_v36 = vld [vmem:[#allocation8 + $0x318] sm:$0xf0] }
 0x108   : > { %2668 = vmatpush.bf16.msrb.mxu0 %v4712_v60  ;;  %v2352_v56 = vpop.f32.mrf.mxu2  ;;  %v6278_v60 = vld [vmem:[#allocation8 + $0x2b4] sm:$0xf]  ;;  %v2318_v1 = vpop.f32.mrf.mxu0  ;;  %v4744_v40 = vor.u32 %v6276_v28, %v4741_v51  ;;  %v6272_v21 = vld [vmem:[#allocation8 + $0x284] sm:$0xf]  ;;  %v5101_v28 = vld [vmem:[#allocation8 + $0x578] sm:$0xf0] }
 0x109   : > { %2686 = vmatpush.bf16.msrb.mxu1 %v4776_v61  ;;  %v2353_v61 = vadd.f32 %v2352_v56, %v2335_v23  ;;  %v2336_v7 = vpop.f32.mrf.mxu1  ;;  %v4752_v22 = vor.u32 %v6278_v60, %v4749_v54  ;;  %v6260_v23 = vld [vmem:[#allocation8 + $0x224] sm:$0xf]  ;;  %v4861_v60 = vld [vmem:[#allocation8 + $0x398] sm:$0xf0]  ;;  %v6334_v51 = vld [vmem:[#allocation8 + $0x474] sm:$0xf] }
 0x10a   : > { %2704 = vmatpush.bf16.msrb.mxu2 %v4840_v59  ;;  %v6262_v59 = vld [vmem:[#allocation8 + $0x234] sm:$0xf]  ;;  %v2337_v14 = vadd.f32 %v2336_v7, %v2318_v1  ;;  %v6288_v1 = vld [vmem:[#allocation8 + $0x304] sm:$0xf]  ;;  %v4789_v7 = vld [vmem:[#allocation8 + $0x308] sm:$0xf0] }
 0x10b   : > { %2722 = vmatpush.bf16.msrb.mxu3 %v4904_v0  ;;  %v2370_v0 = vpop.f32.mrf.mxu3  ;;  %v4688_v15 = vor.u32 %v6262_v59, %v4685_v53  ;;  %v4733_v59 = vld [vmem:[#allocation8 + $0x298] sm:$0xf0]  ;;  %v6306_v53 = vld [vmem:[#allocation8 + $0x394] sm:$0xf] }
 0x10c   : > { %2669 = vmatpush.bf16.msrb.mxu0 %v4704_v27  ;;  %v7187_v13 = vadd.f32 %v2370_v0, %v2353_v61  ;;  %v4677_v27 = vld [vmem:[#allocation8 + $0x228] sm:$0xf0]  ;;  %v4800_v0 = vor.u32 %v6290_v35, %v4797_v36  ;;  %v4864_v18 = vor.u32 %v6306_v53, %v4861_v60  ;;  %v5037_v35 = vld [vmem:[#allocation8 + $0x4f8] sm:$0xf0]  ;;  %v6382_v36 = vld [vmem:[#allocation8 + $0x5f4] sm:$0xf] }
 0x10d   : > { %2687 = vmatpush.bf16.msrb.mxu1 %v4768_v29  ;;  %v6308_v29 = vld [vmem:[#allocation8 + $0x3a4] sm:$0xf]  ;;  %v4680_v32 = vor.u32 %v6260_v23, %v4677_v27  ;;  %v4853_v23 = vld [vmem:[#allocation8 + $0x388] sm:$0xf0]  ;;  %v6366_v27 = vld [vmem:[#allocation8 + $0x574] sm:$0xf] }
 0x10e   : > { %2705 = vmatpush.bf16.msrb.mxu2 %v4832_v26  ;;  %v4880_v26 = vor.u32 %v6310_v6, %v4877_v57  ;;  %v6332_v53 = vld [vmem:[#allocation8 + $0x464] sm:$0xf]  ;;  %v4965_v60 = vld [vmem:[#allocation8 + $0x468] sm:$0xf0] }
 0x10f   : > { %2723 = vmatpush.bf16.msrb.mxu3 %v4896_v30  ;;  %v4869_v30 = vld [vmem:[#allocation8 + $0x3a8] sm:$0xf0] }
 0x110   : > { %2670 = vmatpush.bf16.msrb.mxu0 %v4696_v45  ;;  %v2354_v37 = vpop.f32.mrf.mxu2  ;;  %v6258_v45 = vld [vmem:[#allocation8 + $0x214] sm:$0xf] }
 0x111   : > { %2688 = vmatpush.bf16.msrb.mxu1 %v4760_v58  ;;  %v2355_v56 = vadd.f32 %v2354_v37, %v2337_v14  ;;  %v2339_v61 = vpop.f32.mrf.mxu1  ;;  %v4672_v57 = vor.u32 %v6258_v45, %v4669_v46  ;;  %v4736_v14 = vor.u32 %v6274_v55, %v4733_v59  ;;  %v5165_v37 = vld [vmem:[#allocation8 + $0x5f8] sm:$0xf0]  ;;  %v5104_v46 = vor.u32 %v6366_v27, %v5101_v28  ;;  %v6364_v55 = vld [vmem:[#allocation8 + $0x564] sm:$0xf]  ;;  %v6346_v27 = vld [vmem:[#allocation8 + $0x4d4] sm:$0xf] }
 0x112   : > { %2706 = vmatpush.bf16.msrb.mxu2 %v4824_v44  ;;  %v4872_v44 = vor.u32 %v6308_v29, %v4869_v30  ;;  %v4973_v29 = vld [vmem:[#allocation8 + $0x478] sm:$0xf0]  ;;  %v6350_v30 = vld [vmem:[#allocation8 + $0x4f4] sm:$0xf]  ;;  %v5168_v59 = vor.u32 %v6382_v36, %v5165_v37 }
 0x113   : > { %2724 = vmatpush.bf16.msrb.mxu3 %v4888_v48  ;;  %v2372_v58 = vpop.f32.mrf.mxu3  ;;  %v2321_v48 = vpop.f32.mrf.mxu0  ;;  %2608 = vmatmul.bf16.gmra.mxu0 %v7069_v42 }
 0x114   : > { %2671 = vmatpush.bf16.msrb.mxu0 %v4688_v15  ;;  %v7189_v54 = vadd.f32 %v2372_v58, %v2355_v56  ;;  %v2340_v6 = vadd.f32 %v2339_v61, %v2321_v48  ;;  %v4661_v15 = vld [vmem:[#allocation8 + $0x208] sm:$0xf0]  ;;  %2626 = vmatmul.bf16.gmra.mxu1 %v7071_v47  ;;  %v5040_v48 = vor.u32 %v6350_v30, %v5037_v35  ;;  %v6348_v61 = vld [vmem:[#allocation8 + $0x4e4] sm:$0xf]  ;;  %v5149_v30 = vld [vmem:[#allocation8 + $0x5d8] sm:$0xf0] }
 0x115   : > { %2689 = vmatpush.bf16.msrb.mxu1 %v4752_v22  ;;  %v4725_v22 = vld [vmem:[#allocation8 + $0x288] sm:$0xf0]  ;;  %2644 = vmatmul.bf16.gmra.mxu2 %v7073_v49 }
 0x116   : > { %2707 = vmatpush.bf16.msrb.mxu2 %v4816_v8  ;;  %v6256_v8 = vld [vmem:[#allocation8 + $0x204] sm:$0xf]  ;;  %2662 = vmatmul.bf16.gmra.mxu3 %v7075_v52  ;;  %v4728_v47 = vor.u32 %v6272_v21, %v4725_v22  ;;  %v4976_v52 = vor.u32 %v6334_v51, %v4973_v29  ;;  %v5093_v56 = vld [vmem:[#allocation8 + $0x568] sm:$0xf0]  ;;  %v5085_v21 = vld [vmem:[#allocation8 + $0x558] sm:$0xf0] }
 0x117   : > { %2725 = vmatpush.bf16.msrb.mxu3 %v4880_v26  ;;  %v6304_v26 = vld [vmem:[#allocation8 + $0x384] sm:$0xf]  ;;  %v5021_v51 = vld [vmem:[#allocation8 + $0x4d8] sm:$0xf0]  ;;  %v6378_v29 = vld [vmem:[#allocation8 + $0x5d4] sm:$0xf] }
 0x118   : > { %2672 = vmatpush.bf16.msrb.mxu0 %v4680_v32  ;;  %v4664_v32 = vor.u32 %v6256_v8, %v4661_v15  ;;  %v2357_v42 = vpop.f32.mrf.mxu2  ;;  %v4968_v8 = vor.u32 %v6332_v53, %v4965_v60  ;;  %v5069_v53 = vld [vmem:[#allocation8 + $0x538] sm:$0xf0] }
 0x119   : > { %2690 = vmatpush.bf16.msrb.mxu1 %v4744_v40  ;;  %v4856_v40 = vor.u32 %v6304_v26, %v4853_v23  ;;  %v2341_v58 = vpop.f32.mrf.mxu1  ;;  %v6330_v26 = vld [vmem:[#allocation8 + $0x454] sm:$0xf]  ;;  %v4957_v23 = vld [vmem:[#allocation8 + $0x458] sm:$0xf0] }
 0x11a   : > { %2708 = vmatpush.bf16.msrb.mxu2 %v4808_v31  ;;  %v4792_v31 = vor.u32 %v6288_v1, %v4789_v7  ;;  %v5029_v1 = vld [vmem:[#allocation8 + $0x4e8] sm:$0xf0]  ;;  %v4960_v37 = vor.u32 %v6330_v26, %v4957_v23  ;;  %v6356_v26 = vld [vmem:[#allocation8 + $0x524] sm:$0xf] }
 0x11b   : > { %2726 = vmatpush.bf16.msrb.mxu3 %v4872_v44  ;;  %v2358_v44 = vadd.f32 %v2357_v42, %v2340_v6  ;;  %v2375_v45 = vpop.f32.mrf.mxu3  ;;  %v2323_v49 = vpop.f32.mrf.mxu0  ;;  %v5157_v7 = vld [vmem:[#allocation8 + $0x5e8] sm:$0xf0]  ;;  %v5096_v6 = vor.u32 %v6364_v55, %v5093_v56  ;;  %v5032_v15 = vor.u32 %v6348_v61, %v5029_v1  ;;  %v6360_v42 = vld [vmem:[#allocation8 + $0x544] sm:$0xf]  ;;  %v4941_v1 = vld [vmem:[#allocation8 + $0x438] sm:$0xf0] }
 0x11c   : > { %2673 = vmatpush.bf16.msrb.mxu0 %v4672_v57  ;;  %v6380_v57 = vld [vmem:[#allocation8 + $0x5e4] sm:$0xf]  ;;  %v4949_v49 = vld [vmem:[#allocation8 + $0x448] sm:$0xf0] }
 0x11d   : > { %2691 = vmatpush.bf16.msrb.mxu1 %v4736_v14  ;;  %v5160_v14 = vor.u32 %v6380_v57, %v5157_v7  ;;  %v5013_v55 = vld [vmem:[#allocation8 + $0x4c8] sm:$0xf0]  ;;  %v6376_v56 = vld [vmem:[#allocation8 + $0x5c4] sm:$0xf] }
 0x11e   : > { %2709 = vmatpush.bf16.msrb.mxu2 %v4800_v0  ;;  %v7195_v0 = vadd.f32 %v2375_v45, %v2358_v44  ;;  %v5152_v44 = vor.u32 %v6378_v29, %v5149_v30  ;;  %v6328_v45 = vld [vmem:[#allocation8 + $0x444] sm:$0xf]  ;;  %v5141_v58 = vld [vmem:[#allocation8 + $0x5c8] sm:$0xf0] }
 0x11f   : > { %2727 = vmatpush.bf16.msrb.mxu3 %v4864_v18  ;;  %v6362_v18 = vld [vmem:[#allocation8 + $0x554] sm:$0xf]  ;;  %v5144_v61 = vor.u32 %v6376_v56, %v5141_v58  ;;  %v5061_v23 = vld [vmem:[#allocation8 + $0x528] sm:$0xf0]  ;;  %v6324_v29 = vld [vmem:[#allocation8 + $0x424] sm:$0xf] }
 0x120   : > { %2674 = vmatpush.bf16.msrb.mxu0 %v4664_v32  ;;  %v2359_v22 = vpop.f32.mrf.mxu2  ;;  %v5088_v36 = vor.u32 %v6362_v18, %v5085_v21  ;;  %v4933_v30 = vld [vmem:[#allocation8 + $0x428] sm:$0xf0]  ;;  %v4989_v58 = vld [vmem:[#allocation8 + $0x498] sm:$0xf0] }
 0x121   : > { %2692 = vmatpush.bf16.msrb.mxu1 %v4728_v47  ;;  %v2406_v32 = vpop.f32.mrf.mxu1  ;;  %v5077_v47 = vld [vmem:[#allocation8 + $0x548] sm:$0xf0] }
 0x122   : > { %2710 = vmatpush.bf16.msrb.mxu2 %v4792_v31 }
 0x123   : > { %2728 = vmatpush.bf16.msrb.mxu3 %v4856_v40  ;;  %v2377_v28 = vpop.f32.mrf.mxu3  ;;  %v2388_v31 = vpop.f32.mrf.mxu0  ;;  %v5024_v40 = vor.u32 %v6346_v27, %v5021_v51  ;;  %2675 = vmatmul.bf16.vlgmr.msrb.gmra.mxu0 %v7089_v62  ;;  %v6326_v62 = vld [vmem:[#allocation8 + $0x434] sm:$0xf] }
 0x124   : > { %2739 = vmatpush.bf16.msra.mxu0 %v4976_v52  ;;  %v2389_v35 = vadd.f32 %v2388_v31, %v7187_v13  ;;  %2693 = vmatmul.bf16.vlgmr.msrb.gmra.mxu1 %v7091_v63  ;;  %v5080_v13 = vor.u32 %v6360_v42, %v5077_v47  ;;  %v6342_v63 = vld [vmem:[#allocation8 + $0x4b4] sm:$0xf]  ;;  %v4944_v22 = vor.u32 %v6326_v62, %v4941_v1  ;;  %v6340_v31 = vld [vmem:[#allocation8 + $0x4a4] sm:$0xf] }
 0x125   : > { %2757 = vmatpush.bf16.msra.mxu1 %v5040_v48  ;;  %2711 = vmatmul.bf16.vlgmr.msrb.gmra.mxu2 %v7093_v3  ;;  %v4952_v48 = vor.u32 %v6328_v45, %v4949_v49  ;;  %v5133_v3 = vld [vmem:[#allocation8 + $0x5b8] sm:$0xf0]  ;;  %v4936_v42 = vor.u32 %v6324_v29, %v4933_v30  ;;  %v6354_v47 = vld [vmem:[#allocation8 + $0x514] sm:$0xf] }
 0x126   : > { %2775 = vmatpush.bf16.msra.mxu2 %v5104_v46  ;;  %v6344_v46 = vld [vmem:[#allocation8 + $0x4c4] sm:$0xf]  ;;  %v2407_v52 = vadd.f32 %v2406_v32, %v2389_v35  ;;  %2729 = vmatmul.bf16.vlgmr.msrb.gmra.mxu3 %v7095_v4  ;;  %v4997_v35 = vld [vmem:[#allocation8 + $0x4a8] sm:$0xf0]  ;;  %v6322_v49 = vld [vmem:[#allocation8 + $0x414] sm:$0xf] }
 0x127   : > { %2793 = vmatpush.bf16.msra.mxu3 %v5168_v59  ;;  %v6358_v59 = vld [vmem:[#allocation8 + $0x534] sm:$0xf]  ;;  %v5016_v60 = vor.u32 %v6344_v46, %v5013_v55  ;;  %v4925_v46 = vld [vmem:[#allocation8 + $0x418] sm:$0xf0] }
 0x128   : > { %2740 = vmatpush.bf16.msra.mxu0 %v4968_v8  ;;  %v2424_v57 = vpop.f32.mrf.mxu2  ;;  %v6374_v8 = vld [vmem:[#allocation8 + $0x5b4] sm:$0xf]  ;;  %v5072_v21 = vor.u32 %v6358_v59, %v5069_v53 }
 0x129   : > { %2758 = vmatpush.bf16.msra.mxu1 %v5032_v15  ;;  %v2425_v15 = vadd.f32 %v2424_v57, %v2407_v52  ;;  %v5136_v51 = vor.u32 %v6374_v8, %v5133_v3  ;;  %v6338_v52 = vld [vmem:[#allocation8 + $0x494] sm:$0xf]  ;;  %v5045_v57 = vld [vmem:[#allocation8 + $0x508] sm:$0xf0] }
 0x12a   : > { %2776 = vmatpush.bf16.msra.mxu2 %v5096_v6  ;;  %v5005_v6 = vld [vmem:[#allocation8 + $0x4b8] sm:$0xf0]  ;;  %v4992_v3 = vor.u32 %v6338_v52, %v4989_v58  ;;  %v5221_v52 = vld [vmem:[#allocation8 + $0x668] sm:$0xf0]  ;;  %v6444_v58 = vld [vmem:[#allocation8 + $0x7e4] sm:$0xf] }
 0x12b   : > { %2794 = vmatpush.bf16.msra.mxu3 %v5160_v14  ;;  %v2442_v7 = vpop.f32.mrf.mxu3  ;;  %v2390_v4 = vpop.f32.mrf.mxu0  ;;  %v5008_v28 = vor.u32 %v6342_v63, %v5005_v6  ;;  %v4928_v63 = vor.u32 %v6322_v49, %v4925_v46  ;;  %v4917_v6 = vld [vmem:[#allocation8 + $0x408] sm:$0xf0]  ;;  %v6396_v46 = vld [vmem:[#allocation8 + $0x664] sm:$0xf] }
 0x12c   : > { %2741 = vmatpush.bf16.msra.mxu0 %v4960_v37  ;;  %v2408_v14 = vpop.f32.mrf.mxu1  ;;  %v2391_v18 = vadd.f32 %v2390_v4, %v7189_v54  ;;  %v7203_v27 = vadd.f32 %v2442_v7, %v2425_v15  ;;  %v5125_v37 = vld [vmem:[#allocation8 + $0x5a8] sm:$0xf0]  ;;  %v5064_v54 = vor.u32 %v6356_v26, %v5061_v23  ;;  %v6320_v7 = vld [vmem:[#allocation8 + $0x404] sm:$0xf]  ;;  %v5357_v26 = vld [vmem:[#allocation8 + $0x778] sm:$0xf0] }
 0x12d   : > { %2759 = vmatpush.bf16.msra.mxu1 %v5024_v40  ;;  %v5053_v40 = vld [vmem:[#allocation8 + $0x518] sm:$0xf0]  ;;  %v6336_v4 = vld [vmem:[#allocation8 + $0x484] sm:$0xf]  ;;  %v6398_v23 = vld [vmem:[#allocation8 + $0x674] sm:$0xf]  ;;  %v4920_v30 = vor.u32 %v6320_v7, %v4917_v6 }
 0x12e   : > { %2777 = vmatpush.bf16.msra.mxu2 %v5088_v36  ;;  %v2409_v32 = vadd.f32 %v2408_v14, %v2391_v18  ;;  %v6372_v36 = vld [vmem:[#allocation8 + $0x5a4] sm:$0xf]  ;;  %v5056_v1 = vor.u32 %v6354_v47, %v5053_v40  ;;  %v4981_v14 = vld [vmem:[#allocation8 + $0x488] sm:$0xf0]  ;;  %v6410_v7 = vld [vmem:[#allocation8 + $0x6d4] sm:$0xf] }
 0x12f   : > { %2795 = vmatpush.bf16.msra.mxu3 %v5152_v44  ;;  %v5000_v44 = vor.u32 %v6340_v31, %v4997_v35  ;;  %v5128_v45 = vor.u32 %v6372_v36, %v5125_v37  ;;  %v6368_v18 = vld [vmem:[#allocation8 + $0x584] sm:$0xf]  ;;  %v5293_v31 = vld [vmem:[#allocation8 + $0x6f8] sm:$0xf0] }
 0x130   : > { %2742 = vmatpush.bf16.msra.mxu0 %v4952_v48  ;;  %v2426_v55 = vpop.f32.mrf.mxu2  ;;  %v5117_v48 = vld [vmem:[#allocation8 + $0x598] sm:$0xf0] }
 0x131   : > { %2760 = vmatpush.bf16.msra.mxu1 %v5016_v60  ;;  %v2427_v59 = vadd.f32 %v2426_v55, %v2409_v32  ;;  %v6446_v32 = vld [vmem:[#allocation8 + $0x7f4] sm:$0xf]  ;;  %v5421_v35 = vld [vmem:[#allocation8 + $0x7f8] sm:$0xf0]  ;;  %v6412_v55 = vld [vmem:[#allocation8 + $0x6e4] sm:$0xf] }
 0x132   : > { %2778 = vmatpush.bf16.msra.mxu2 %v5080_v13  ;;  %v6370_v13 = vld [vmem:[#allocation8 + $0x594] sm:$0xf]  ;;  %v5424_v49 = vor.u32 %v6446_v32, %v5421_v35  ;;  %v6408_v32 = vld [vmem:[#allocation8 + $0x6c4] sm:$0xf] }
 0x133   : > { %2796 = vmatpush.bf16.msra.mxu3 %v5144_v61  ;;  %v2444_v56 = vpop.f32.mrf.mxu3  ;;  %v2393_v53 = vpop.f32.mrf.mxu0  ;;  %v6352_v61 = vld [vmem:[#allocation8 + $0x504] sm:$0xf]  ;;  %v5120_v15 = vor.u32 %v6370_v13, %v5117_v48  ;;  %2680 = vmatmul.bf16.gmra.mxu0 %v7103_v2  ;;  %v4984_v2 = vor.u32 %v6336_v4, %v4981_v14  ;;  %v5413_v13 = vld [vmem:[#allocation8 + $0x7e8] sm:$0xf0]  ;;  %v6442_v4 = vld [vmem:[#allocation8 + $0x7d4] sm:$0xf] }
 0x134   : > { %2743 = vmatpush.bf16.msra.mxu0 %v4944_v22  ;;  %v2411_v60 = vpop.f32.mrf.mxu1  ;;  %v2394_v62 = vadd.f32 %v2393_v53, %v7195_v0  ;;  %v7206_v8 = vadd.f32 %v2444_v56, %v2427_v59  ;;  %2698 = vmatmul.bf16.gmra.mxu1 %v7105_v5  ;;  %v5109_v0 = vld [vmem:[#allocation8 + $0x588] sm:$0xf0]  ;;  %v6430_v22 = vld [vmem:[#allocation8 + $0x774] sm:$0xf]  ;;  %v5048_v29 = vor.u32 %v6352_v61, %v5045_v57  ;;  %v5213_v57 = vld [vmem:[#allocation8 + $0x658] sm:$0xf0] }
 0x135   : > { %2761 = vmatpush.bf16.msra.mxu1 %v5008_v28  ;;  %2716 = vmatmul.bf16.gmra.mxu2 %v7107_v9  ;;  %v5229_v28 = vld [vmem:[#allocation8 + $0x678] sm:$0xf0]  ;;  %v5112_v5 = vor.u32 %v6368_v18, %v5109_v0  ;;  %v5285_v56 = vld [vmem:[#allocation8 + $0x6e8] sm:$0xf0]  ;;  %v5224_v53 = vor.u32 %v6396_v46, %v5221_v52  ;;  %v5416_v61 = vor.u32 %v6444_v58, %v5413_v13  ;;  %v6420_v13 = vld [vmem:[#allocation8 + $0x724] sm:$0xf] }
 0x136   : > { %2779 = vmatpush.bf16.msra.mxu2 %v5072_v21  ;;  %v2412_v21 = vadd.f32 %v2411_v60, %v2394_v62  ;;  %2734 = vmatmul.bf16.gmra.mxu3 %v7109_v10  ;;  %v5232_v9 = vor.u32 %v6398_v23, %v5229_v28  ;;  %v5349_v10 = vld [vmem:[#allocation8 + $0x768] sm:$0xf0]  ;;  %v5288_v60 = vor.u32 %v6412_v55, %v5285_v56  ;;  %v6426_v62 = vld [vmem:[#allocation8 + $0x754] sm:$0xf]  ;;  %v5405_v14 = vld [vmem:[#allocation8 + $0x7d8] sm:$0xf0] }
 0x137   : > { %2797 = vmatpush.bf16.msra.mxu3 %v5136_v51  ;;  %v6414_v51 = vld [vmem:[#allocation8 + $0x6f4] sm:$0xf]  ;;  %v6424_v23 = vld [vmem:[#allocation8 + $0x744] sm:$0xf]  ;;  %v5333_v28 = vld [vmem:[#allocation8 + $0x748] sm:$0xf0] }
 0x138   : > { %2744 = vmatpush.bf16.msra.mxu0 %v4936_v42  ;;  %v2429_v36 = vpop.f32.mrf.mxu2  ;;  %v6428_v42 = vld [vmem:[#allocation8 + $0x764] sm:$0xf] }
 0x139   : > { %2762 = vmatpush.bf16.msra.mxu1 %v5000_v44  ;;  %v2430_v47 = vadd.f32 %v2429_v36, %v2412_v21  ;;  %v5352_v59 = vor.u32 %v6428_v42, %v5349_v10  ;;  %v5397_v36 = vld [vmem:[#allocation8 + $0x7c8] sm:$0xf0] }
 0x13a   : > { %2780 = vmatpush.bf16.msra.mxu2 %v5064_v54  ;;  %v5360_v54 = vor.u32 %v6430_v22, %v5357_v26 }
 0x13b   : > { %2798 = vmatpush.bf16.msra.mxu3 %v5128_v45  ;;  %v2447_v37 = vpop.f32.mrf.mxu3  ;;  %v2395_v40 = vpop.f32.mrf.mxu0  ;;  %v5296_v45 = vor.u32 %v6414_v51, %v5293_v31  ;;  %v5205_v31 = vld [vmem:[#allocation8 + $0x648] sm:$0xf0] }
 0x13c   : > { %2745 = vmatpush.bf16.msra.mxu0 %v4928_v63  ;;  %v2413_v44 = vpop.f32.mrf.mxu1  ;;  %v7212_v48 = vadd.f32 %v2447_v37, %v2430_v47  ;;  %v6394_v63 = vld [vmem:[#allocation8 + $0x654] sm:$0xf]  ;;  %v5197_v47 = vld [vmem:[#allocation8 + $0x638] sm:$0xf0] }
 0x13d   : > { %2763 = vmatpush.bf16.msra.mxu1 %v4992_v3  ;;  %v5216_v26 = vor.u32 %v6394_v63, %v5213_v57  ;;  %v6404_v63 = vld [vmem:[#allocation8 + $0x6a4] sm:$0xf] }
 0x13e   : > { %2781 = vmatpush.bf16.msra.mxu2 %v5056_v1  ;;  %v5341_v1 = vld [vmem:[#allocation8 + $0x758] sm:$0xf0] }
 0x13f   : > { %2799 = vmatpush.bf16.msra.mxu3 %v5120_v15  ;;  %v5277_v15 = vld [vmem:[#allocation8 + $0x6d8] sm:$0xf0]  ;;  %v5344_v22 = vor.u32 %v6426_v62, %v5341_v1  ;;  %v6388_v62 = vld [vmem:[#allocation8 + $0x624] sm:$0xf]  ;;  %v5189_v1 = vld [vmem:[#allocation8 + $0x628] sm:$0xf0] }
 0x140   : > { %2746 = vmatpush.bf16.msra.mxu0 %v4920_v30  ;;  %v2431_v6 = vpop.f32.mrf.mxu2  ;;  %v5280_v51 = vor.u32 %v6410_v7, %v5277_v15  ;;  %v6392_v30 = vld [vmem:[#allocation8 + $0x644] sm:$0xf]  ;;  %v5253_v7 = vld [vmem:[#allocation8 + $0x6a8] sm:$0xf0]  ;;  %v5192_v15 = vor.u32 %v6388_v62, %v5189_v1  ;;  %v5635_v62 = vld [vmem:[#allocation7 + $0x160] sm:$0xf] }
 0x141   : > { %2764 = vmatpush.bf16.msra.mxu1 %v4984_v2  ;;  %v5269_v2 = vld [vmem:[#allocation8 + $0x6c8] sm:$0xf0]  ;;  %v5208_v37 = vor.u32 %v6392_v30, %v5205_v31  ;;  %v6436_v6 = vld [vmem:[#allocation8 + $0x7a4] sm:$0xf]  ;;  %v5373_v30 = vld [vmem:[#allocation8 + $0x798] sm:$0xf0] }
 0x142   : > { %2782 = vmatpush.bf16.msra.mxu2 %v5048_v29  ;;  %v5408_v29 = vor.u32 %v6442_v4, %v5405_v14  ;;  %v5272_v42 = vor.u32 %v6408_v32, %v5269_v2  ;;  %v6418_v4 = vld [vmem:[#allocation8 + $0x714] sm:$0xf]  ;;  %v5309_v14 = vld [vmem:[#allocation8 + $0x718] sm:$0xf0]  ;;  %v6416_v2 = vld [vmem:[#allocation8 + $0x704] sm:$0xf] }
 0x143   : > { %2800 = vmatpush.bf16.msra.mxu3 %v5112_v5  ;;  %v2449_v3 = vpop.f32.mrf.mxu3  ;;  %v2460_v18 = vpop.f32.mrf.mxu0  ;;  %2747 = vmatmul.bf16.vlgmr.msra.gmra.mxu0 %v7123_v19  ;;  %v6440_v5 = vld [vmem:[#allocation8 + $0x7c4] sm:$0xf]  ;;  %v6390_v19 = vld [vmem:[#allocation8 + $0x634] sm:$0xf] }
 0x144   : > { %2811 = vmatpush.bf16.msrb.mxu0 %v5232_v9  ;;  %v2478_v21 = vpop.f32.mrf.mxu1  ;;  %v2461_v0 = vadd.f32 %v2460_v18, %v7203_v27  ;;  %2765 = vmatmul.bf16.vlgmr.msra.gmra.mxu1 %v7125_v20  ;;  %v5336_v27 = vor.u32 %v6424_v23, %v5333_v28  ;;  %v5325_v9 = vld [vmem:[#allocation8 + $0x738] sm:$0xf0]  ;;  %v5400_v10 = vor.u32 %v6440_v5, %v5397_v36  ;;  %v6406_v20 = vld [vmem:[#allocation8 + $0x6b4] sm:$0xf]  ;;  %v5381_v3 = vld [vmem:[#allocation8 + $0x7a8] sm:$0xf0] }
 0x145   : > { %2829 = vmatpush.bf16.msrb.mxu1 %v5296_v45  ;;  %2783 = vmatmul.bf16.vlgmr.msra.gmra.mxu2 %v7127_v24  ;;  %v5261_v45 = vld [vmem:[#allocation8 + $0x6b8] sm:$0xf0]  ;;  %v5200_v58 = vor.u32 %v6390_v19, %v5197_v47  ;;  %v5256_v18 = vor.u32 %v6404_v63, %v5253_v7  ;;  %v5312_v36 = vor.u32 %v6418_v4, %v5309_v14  ;;  %v6400_v47 = vld [vmem:[#allocation8 + $0x684] sm:$0xf]  ;;  %v6077_v4 = vld [vmem:[#allocation7 + $0xe4] sm:$0xf0] }
 0x146   : > { %2847 = vmatpush.bf16.msrb.mxu2 %v5360_v54  ;;  %v2479_v35 = vadd.f32 %v2478_v21, %v2461_v0  ;;  %2801 = vmatmul.bf16.vlgmr.msra.gmra.mxu3 %v7129_v25  ;;  %v6422_v54 = vld [vmem:[#allocation8 + $0x734] sm:$0xf]  ;;  %v5389_v24 = vld [vmem:[#allocation8 + $0x7b8] sm:$0xf0]  ;;  %v5384_v21 = vor.u32 %v6436_v6, %v5381_v3  ;;  %v5507_v3 = vld [vmem:[#allocation7 + $0x60] sm:$0xf] }
 0x147   : > { %2865 = vmatpush.bf16.msrb.mxu3 %v5424_v49  ;;  %v6438_v49 = vld [vmem:[#allocation8 + $0x7b4] sm:$0xf]  ;;  %v5328_v56 = vor.u32 %v6422_v54, %v5325_v9  ;;  %v6384_v54 = vld [vmem:[#allocation8 + $0x604] sm:$0xf]  ;;  %v5173_v9 = vld [vmem:[#allocation8 + $0x608] sm:$0xf0] }
 0x148   : > { %2812 = vmatpush.bf16.msrb.mxu0 %v5224_v53  ;;  %v2496_v40 = vpop.f32.mrf.mxu2  ;;  %v6386_v0 = vld [vmem:[#allocation8 + $0x614] sm:$0xf]  ;;  %v5699_v14 = vld [vmem:[#allocation7 + $0x1e0] sm:$0xf] }
 0x149   : > { %2830 = vmatpush.bf16.msrb.mxu1 %v5288_v60  ;;  %v2497_v46 = vadd.f32 %v2496_v40, %v2479_v35  ;;  %v5264_v60 = vor.u32 %v6406_v20, %v5261_v45  ;;  %v5237_v20 = vld [vmem:[#allocation8 + $0x688] sm:$0xf0]  ;;  %v6432_v40 = vld [vmem:[#allocation8 + $0x784] sm:$0xf]  ;;  %v5643_v45 = vld [vmem:[#allocation7 + $0x170] sm:$0xf] }
 0x14a   : > { %2848 = vmatpush.bf16.msrb.mxu2 %v5352_v59  ;;  %v5317_v59 = vld [vmem:[#allocation8 + $0x728] sm:$0xf0] }
 0x14b   : > { %2866 = vmatpush.bf16.msrb.mxu3 %v5416_v61  ;;  %v2514_v44 = vpop.f32.mrf.mxu3  ;;  %v2462_v25 = vpop.f32.mrf.mxu0  ;;  %v5392_v61 = vor.u32 %v6438_v49, %v5389_v24  ;;  %v6095_v49 = vld [vmem:[#allocation7 + $0x174] sm:$0xf0]  ;;  %v5515_v24 = vld [vmem:[#allocation7 + $0x70] sm:$0xf] }
 0x14c   : > { %2813 = vmatpush.bf16.msrb.mxu0 %v5216_v26  ;;  %v2480_v52 = vpop.f32.mrf.mxu1  ;;  %v2463_v55 = vadd.f32 %v2462_v25, %v7206_v8  ;;  %v7220_v53 = vadd.f32 %v2514_v44, %v2497_v46  ;;  %v5320_v8 = vor.u32 %v6420_v13, %v5317_v59  ;;  %v6402_v26 = vld [vmem:[#allocation8 + $0x694] sm:$0xf]  ;;  %v6063_v46 = vld [vmem:[#allocation7 + $0x74] sm:$0xf0]  ;;  %v5579_v25 = vld [vmem:[#allocation7 + $0xf0] sm:$0xf] }
 0x14d   : > { %2831 = vmatpush.bf16.msrb.mxu1 %v5280_v51  ;;  %v5245_v51 = vld [vmem:[#allocation8 + $0x698] sm:$0xf0]  ;;  %v6111_v13 = vld [vmem:[#allocation7 + $0x1f4] sm:$0xf0] }
 0x14e   : > { %2849 = vmatpush.bf16.msrb.mxu2 %v5344_v22  ;;  %v2481_v57 = vadd.f32 %v2480_v52, %v2463_v55  ;;  %v5181_v22 = vld [vmem:[#allocation8 + $0x618] sm:$0xf0]  ;;  %v5176_v55 = vor.u32 %v6384_v54, %v5173_v9 }
 0x14f   : > { %2867 = vmatpush.bf16.msrb.mxu3 %v5408_v29  ;;  %v6434_v29 = vld [vmem:[#allocation8 + $0x794] sm:$0xf] }
 0x150   : > { %2814 = vmatpush.bf16.msrb.mxu0 %v5208_v37  ;;  %v2498_v23 = vpop.f32.mrf.mxu2  ;;  %v5301_v37 = vld [vmem:[#allocation8 + $0x708] sm:$0xf0]  ;;  %v5376_v19 = vor.u32 %v6434_v29, %v5373_v30  ;;  %v5499_v29 = vld [vmem:[#allocation7 + $0x50] sm:$0xf]  ;;  %v6059_v30 = vld [vmem:[#allocation7 + $0x54] sm:$0xf0] }
 0x151   : > { %2832 = vmatpush.bf16.msrb.mxu1 %v5272_v42  ;;  %v2499_v31 = vadd.f32 %v2498_v23, %v2481_v57  ;;  %v5304_v52 = vor.u32 %v6416_v2, %v5301_v37  ;;  %v6075_v2 = vld [vmem:[#allocation7 + $0xd4] sm:$0xf0] }
 0x152   : > { %2850 = vmatpush.bf16.msrb.mxu2 %v5336_v27  ;;  %v5184_v27 = vor.u32 %v6386_v0, %v5181_v22 }
 0x153   : > { %2868 = vmatpush.bf16.msrb.mxu3 %v5400_v10  ;;  %v2516_v28 = vpop.f32.mrf.mxu3  ;;  %v2465_v32 = vpop.f32.mrf.mxu0  ;;  %v5248_v10 = vor.u32 %v6402_v26, %v5245_v51  ;;  %2752 = vmatmul.bf16.gmra.mxu0 %v7137_v33  ;;  %v5240_v33 = vor.u32 %v6400_v47, %v5237_v20  ;;  %v6091_v51 = vld [vmem:[#allocation7 + $0x154] sm:$0xf0]  ;;  %v6089_v47 = vld [vmem:[#allocation7 + $0x144] sm:$0xf0] }
 0x154   : > { %2815 = vmatpush.bf16.msrb.mxu0 %v5200_v58  ;;  %v2483_v35 = vpop.f32.mrf.mxu1  ;;  %v2466_v5 = vadd.f32 %v2465_v32, %v7212_v48  ;;  %v7223_v42 = vadd.f32 %v2516_v28, %v2499_v31  ;;  %2770 = vmatmul.bf16.gmra.mxu1 %v7139_v34  ;;  %v5365_v48 = vld [vmem:[#allocation8 + $0x788] sm:$0xf0]  ;;  %v5707_v58 = vld [vmem:[#allocation7 + $0x1f0] sm:$0xf] }
 0x155   : > { %2833 = vmatpush.bf16.msrb.mxu1 %v5264_v60  ;;  %2788 = vmatmul.bf16.gmra.mxu2 %v7141_v38  ;;  %v5368_v34 = vor.u32 %v6432_v40, %v5365_v48  ;;  %v5516_v38 = vor.u32 %v6063_v46, %v5515_v24  ;;  %v5708_v6 = vor.u32 %v6111_v13, %v5707_v58  ;;  %v5627_v28 = vld [vmem:[#allocation7 + $0x150] sm:$0xf]  ;;  %v6057_v48 = vld [vmem:[#allocation7 + $0x44] sm:$0xf0]  ;;  %v5683_v46 = vld [vmem:[#allocation7 + $0x1c0] sm:$0xf] }
 0x156   : > { %2851 = vmatpush.bf16.msrb.mxu2 %v5328_v56  ;;  %v2484_v44 = vadd.f32 %v2483_v35, %v2466_v5  ;;  %2806 = vmatmul.bf16.gmra.mxu3 %v7143_v39  ;;  %v6079_v56 = vld [vmem:[#allocation7 + $0xf4] sm:$0xf0]  ;;  %v6093_v39 = vld [vmem:[#allocation7 + $0x164] sm:$0xf0]  ;;  %v5563_v31 = vld [vmem:[#allocation7 + $0xd0] sm:$0xf]  ;;  %v5628_v9 = vor.u32 %v6091_v51, %v5627_v28 }
 0x157   : > { %2869 = vmatpush.bf16.msrb.mxu3 %v5392_v61  ;;  %v5644_v61 = vor.u32 %v6095_v49, %v5643_v45  ;;  %v5580_v7 = vor.u32 %v6079_v56, %v5579_v25  ;;  %v5636_v0 = vor.u32 %v6093_v39, %v5635_v62  ;;  %v5691_v5 = vld [vmem:[#allocation7 + $0x1d0] sm:$0xf]  ;;  %v5564_v20 = vor.u32 %v6075_v2, %v5563_v31  ;;  %v5555_v45 = vld [vmem:[#allocation7 + $0xc0] sm:$0xf]  ;;  %v6073_v24 = vld [vmem:[#allocation7 + $0xc4] sm:$0xf0] }
 0x158   : > { %2816 = vmatpush.bf16.msrb.mxu0 %v5192_v15  ;;  %v2501_v59 = vpop.f32.mrf.mxu2  ;;  %v5571_v15 = vld [vmem:[#allocation7 + $0xe0] sm:$0xf]  ;;  %v6105_v25 = vld [vmem:[#allocation7 + $0x1c4] sm:$0xf0]  ;;  %v6087_v56 = vld [vmem:[#allocation7 + $0x134] sm:$0xf0]  ;;  %v5556_v58 = vor.u32 %v6073_v24, %v5555_v45 }
 0x159   : > { %2834 = vmatpush.bf16.msrb.mxu1 %v5256_v18  ;;  %v2502_v1 = vadd.f32 %v2501_v59, %v2484_v44  ;;  %v6109_v18 = vld [vmem:[#allocation7 + $0x1e4] sm:$0xf0]  ;;  %v5572_v26 = vor.u32 %v6077_v4, %v5571_v15  ;;  %v5491_v44 = vld [vmem:[#allocation7 + $0x40] sm:$0xf]  ;;  %v5684_v13 = vor.u32 %v6105_v25, %v5683_v46  ;;  %v5595_v28 = vld [vmem:[#allocation7 + $0x110] sm:$0xf] }
 0x15a   : > { %2852 = vmatpush.bf16.msrb.mxu2 %v5320_v8  ;;  %v6061_v8 = vld [vmem:[#allocation7 + $0x64] sm:$0xf0]  ;;  %v5700_v23 = vor.u32 %v6109_v18, %v5699_v14  ;;  %v5475_v15 = vld [vmem:[#allocation7 + $0x20] sm:$0xf]  ;;  %v6083_v51 = vld [vmem:[#allocation7 + $0x114] sm:$0xf0] }
 0x15b   : > { %2870 = vmatpush.bf16.msrb.mxu3 %v5384_v21  ;;  %v2519_v60 = vpop.f32.mrf.mxu3  ;;  %v2467_v63 = vpop.f32.mrf.mxu0  ;;  %v5508_v22 = vor.u32 %v6061_v8, %v5507_v3  ;;  %v6053_v4 = vld [vmem:[#allocation7 + $0x24] sm:$0xf0]  ;;  %v5539_v14 = vld [vmem:[#allocation7 + $0xa0] sm:$0xf]  ;;  %v5467_v31 = vld [vmem:[#allocation7 + $0x10] sm:$0xf] }
 0x15c   : > { %2817 = vmatpush.bf16.msrb.mxu0 %v5184_v27  ;;  %v2485_v57 = vpop.f32.mrf.mxu1  ;;  %v7229_v21 = vadd.f32 %v2519_v60, %v2502_v1  ;;  %v6071_v60 = vld [vmem:[#allocation7 + $0xb4] sm:$0xf0]  ;;  %v6049_v45 = vld [vmem:[#allocation7 + $0x4] sm:$0xf0]  ;;  %v5523_v25 = vld [vmem:[#allocation7 + $0x80] sm:$0xf] }
 0x15d   : > { %2835 = vmatpush.bf16.msrb.mxu1 %v5248_v10  ;;  %v5500_v10 = vor.u32 %v6059_v30, %v5499_v29  ;;  %v5603_v57 = vld [vmem:[#allocation7 + $0x120] sm:$0xf] }
 0x15e   : > { %2853 = vmatpush.bf16.msrb.mxu2 %v5312_v36  ;;  %v6107_v36 = vld [vmem:[#allocation7 + $0x1d4] sm:$0xf0] }
 0x15f   : > { %2871 = vmatpush.bf16.msrb.mxu3 %v5376_v19  ;;  %v5619_v19 = vld [vmem:[#allocation7 + $0x140] sm:$0xf]  ;;  %v5692_v40 = vor.u32 %v6107_v36, %v5691_v5  ;;  %v6067_v36 = vld [vmem:[#allocation7 + $0x94] sm:$0xf0] }
 0x160   : > { %2818 = vmatpush.bf16.msrb.mxu0 %v5176_v55  ;;  %v2503_v32 = vpop.f32.mrf.mxu2  ;;  %v5611_v55 = vld [vmem:[#allocation7 + $0x130] sm:$0xf] }
 0x161   : > { %2836 = vmatpush.bf16.msrb.mxu1 %v5240_v33  ;;  %v6055_v33 = vld [vmem:[#allocation7 + $0x34] sm:$0xf0]  ;;  %v5612_v1 = vor.u32 %v6087_v56, %v5611_v55  ;;  %v5899_v56 = vld [vmem:[#allocation7 + $0x370] sm:$0xf] }
 0x162   : > { %2854 = vmatpush.bf16.msrb.mxu2 %v5304_v52  ;;  %v5492_v52 = vor.u32 %v6057_v48, %v5491_v44  ;;  %v6051_v32 = vld [vmem:[#allocation7 + $0x14] sm:$0xf0]  ;;  %v6081_v44 = vld [vmem:[#allocation7 + $0x104] sm:$0xf0]  ;;  %v5459_v48 = vld [vmem:[#allocation7] sm:$0xf] }
 0x163   : > { %2872 = vmatpush.bf16.msrb.mxu3 %v5368_v34  ;;  %v2521_v35 = vpop.f32.mrf.mxu3  ;;  %v2532_v27 = vpop.f32.mrf.mxu0  ;;  %2819 = vmatmul.bf16.vlgmr.msrb.gmra.mxu0 %v7157_v11  ;;  %v5483_v11 = vld [vmem:[#allocation7 + $0x30] sm:$0xf] }
 0x164   : > { %3591 = vmatpush.bf16.msra.mxu0 %v5516_v38  ;;  %v2550_v37 = vpop.f32.mrf.mxu1  ;;  %v2533_v54 = vadd.f32 %v2532_v27, %v7220_v53  ;;  %2837 = vmatmul.bf16.vlgmr.msrb.gmra.mxu1 %v7159_v12  ;;  %v5620_v53 = vor.u32 %v6089_v47, %v5619_v19  ;;  %v5547_v12 = vld [vmem:[#allocation7 + $0xb0] sm:$0xf]  ;;  %v5484_v63 = vor.u32 %v6055_v33, %v5483_v11  ;;  %v5587_v19 = vld [vmem:[#allocation7 + $0x100] sm:$0xf]  ;;  %v6127_v33 = vld [vmem:[#allocation7 + $0x274] sm:$0xf0] }
 0x165   : > { %3609 = vmatpush.bf16.msra.mxu1 %v5580_v7  ;;  %2855 = vmatmul.bf16.vlgmr.msrb.gmra.mxu2 %v7161_v16  ;;  %v6103_v16 = vld [vmem:[#allocation7 + $0x1b4] sm:$0xf0]  ;;  %v6085_v7 = vld [vmem:[#allocation7 + $0x124] sm:$0xf0]  ;;  %v5548_v3 = vor.u32 %v6071_v60, %v5547_v12  ;;  %v5531_v35 = vld [vmem:[#allocation7 + $0x90] sm:$0xf] }
 0x166   : > { %3627 = vmatpush.bf16.msra.mxu2 %v5644_v61  ;;  %v2551_v49 = vadd.f32 %v2550_v37, %v2533_v54  ;;  %2873 = vmatmul.bf16.vlgmr.msrb.gmra.mxu3 %v7163_v17  ;;  %v5675_v61 = vld [vmem:[#allocation7 + $0x1b0] sm:$0xf]  ;;  %v6099_v37 = vld [vmem:[#allocation7 + $0x194] sm:$0xf0]  ;;  %v5532_v24 = vor.u32 %v6067_v36, %v5531_v35  ;;  %v6041_v35 = vld [vmem:[%s7025_s30 + $0xc] sm:$0xf] }
 0x167   : > { %3645 = vmatpush.bf16.msra.mxu3 %v5708_v6  ;;  %v5676_v8 = vor.u32 %v6103_v16, %v5675_v61  ;;  %v5659_v27 = vld [vmem:[#allocation7 + $0x190] sm:$0xf]  ;;  %v6143_v60 = vld [vmem:[#allocation7 + $0x2f4] sm:$0xf0]  ;;  %v5437_v36 = vld [vmem:[%s7025_s30 + $0x28] sm:$0xf0] }
 0x168   : > { %3592 = vmatpush.bf16.msra.mxu0 %v5508_v22  ;;  %v2568_v34 = vpop.f32.mrf.mxu2  ;;  %v5667_v22 = vld [vmem:[#allocation7 + $0x1a0] sm:$0xf]  ;;  %v5660_v46 = vor.u32 %v6099_v37, %v5659_v27  ;;  %v5771_v11 = vld [vmem:[#allocation7 + $0x270] sm:$0xf]  ;;  %v6155_v37 = vld [vmem:[#allocation7 + $0x354] sm:$0xf0] }
 0x169   : > { %3610 = vmatpush.bf16.msra.mxu1 %v5572_v26  ;;  %v2569_v38 = vadd.f32 %v2568_v34, %v2551_v49  ;;  %v6101_v26 = vld [vmem:[#allocation7 + $0x1a4] sm:$0xf0]  ;;  %v5835_v12 = vld [vmem:[#allocation7 + $0x2f0] sm:$0xf]  ;;  %v5588_v34 = vor.u32 %v6081_v44, %v5587_v19  ;;  %v6139_v44 = vld [vmem:[#allocation7 + $0x2d4] sm:$0xf0] }
 0x16a   : > { %3628 = vmatpush.bf16.msra.mxu2 %v5636_v0  ;;  %v6069_v0 = vld [vmem:[#allocation7 + $0xa4] sm:$0xf0]  ;;  %v5668_v30 = vor.u32 %v6101_v26, %v5667_v22  ;;  %v5963_v61 = vld [vmem:[#allocation7 + $0x3f0] sm:$0xf] }
 0x16b   : > { %3646 = vmatpush.bf16.msra.mxu3 %v5700_v23  ;;  %v2586_v59 = vpop.f32.mrf.mxu3  ;;  %v2534_v17 = vpop.f32.mrf.mxu0  ;;  %v5476_v23 = vor.u32 %v6053_v4, %v5475_v15  ;;  %v5540_v29 = vor.u32 %v6069_v0, %v5539_v14  ;;  %v5763_v15 = vld [vmem:[#allocation7 + $0x260] sm:$0xf]  ;;  %v6125_v4 = vld [vmem:[#allocation7 + $0x264] sm:$0xf0]  ;;  %v5883_v27 = vld [vmem:[#allocation7 + $0x350] sm:$0xf] }
 0x16c   : > { %3593 = vmatpush.bf16.msra.mxu0 %v5500_v10  ;;  %v2552_v62 = vpop.f32.mrf.mxu1  ;;  %v2535_v39 = vadd.f32 %v2534_v17, %v7223_v42  ;;  %v7237_v6 = vadd.f32 %v2586_v59, %v2569_v38  ;;  %v5604_v42 = vor.u32 %v6085_v7, %v5603_v57  ;;  %v5460_v59 = vor.u32 %v6049_v45, %v5459_v48  ;;  %v5827_v14 = vld [vmem:[#allocation7 + $0x2e0] sm:$0xf]  ;;  %v6173_v22 = vld [vmem:[#allocation7 + $0x3e4] sm:$0xf0]  ;;  %v5947_v48 = vld [vmem:[#allocation7 + $0x3d0] sm:$0xf] }
 0x16d   : > { %3611 = vmatpush.bf16.msra.mxu1 %v5564_v20  ;;  %v5596_v20 = vor.u32 %v6083_v51, %v5595_v28  ;;  %v5955_v0 = vld [vmem:[#allocation7 + $0x3e0] sm:$0xf]  ;;  %v6040_v28 = vld [vmem:[%s7025_s30 + $0x4] sm:$0xf]  ;;  %v6171_v45 = vld [vmem:[#allocation7 + $0x3d4] sm:$0xf0] }
 0x16e   : > { %3629 = vmatpush.bf16.msra.mxu2 %v5628_v9  ;;  %v2553_v18 = vadd.f32 %v2552_v62, %v2535_v39  ;;  %v5772_v62 = vor.u32 %v6127_v33, %v5771_v11  ;;  %v5891_v39 = vld [vmem:[#allocation7 + $0x360] sm:$0xf]  ;;  %v5429_v51 = vld [vmem:[%s7025_s30 + $0x20] sm:$0xf0]  ;;  %v5948_v11 = vor.u32 %v6171_v45, %v5947_v48  ;;  %v5851_v45 = vld [vmem:[#allocation7 + $0x310] sm:$0xf] }
 0x16f   : > { %3647 = vmatpush.bf16.msra.mxu3 %v5692_v40  ;;  %v5468_v40 = vor.u32 %v6051_v32, %v5467_v31  ;;  %v5435_v31 = vld [vmem:[%s7025_s30 + $0x8] sm:$0xf]  ;;  %v5747_v33 = vld [vmem:[#allocation7 + $0x240] sm:$0xf] }
 0x170   : > { %3594 = vmatpush.bf16.msra.mxu0 %v5492_v52  ;;  %v2570_v2 = vpop.f32.mrf.mxu2  ;;  %v5651_v52 = vld [vmem:[#allocation7 + $0x180] sm:$0xf]  ;;  %v6045_v32 = vld [vmem:[%s7025_s30 + $0x24] sm:$0xf0] }
 0x171   : > { %3612 = vmatpush.bf16.msra.mxu1 %v5556_v58  ;;  %v2571_v54 = vadd.f32 %v2570_v2, %v2553_v18  ;;  %v6159_v58 = vld [vmem:[#allocation7 + $0x374] sm:$0xf0]  ;;  %v6141_v18 = vld [vmem:[#allocation7 + $0x2e4] sm:$0xf0] }
 0x172   : > { %3630 = vmatpush.bf16.msra.mxu2 %v5620_v53  ;;  %v6065_v53 = vld [vmem:[#allocation7 + $0x84] sm:$0xf0]  ;;  %v5900_v17 = vor.u32 %v6159_v58, %v5899_v56  ;;  %v5828_v2 = vor.u32 %v6141_v18, %v5827_v14  ;;  %v5875_v56 = vld [vmem:[#allocation7 + $0x340] sm:$0xf] }
 0x173   : > { %3648 = vmatpush.bf16.msra.mxu3 %v5684_v13  ;;  %v2588_v5 = vpop.f32.mrf.mxu3  ;;  %v2537_v9 = vpop.f32.mrf.mxu0  ;;  %2824 = vmatmul.bf16.gmra.mxu0 %v7171_v41  ;;  %v7555_v13 = vld [vmem:[#allocation22_spill] sm:$0xff]  ;;  %v6175_v41 = vld [vmem:[#allocation7 + $0x3f4] sm:$0xf0]  ;;  %v6153_v58 = vld [vmem:[#allocation7 + $0x344] sm:$0xf0] }
 0x174   : > { %3595 = vmatpush.bf16.msra.mxu0 %v5484_v63  ;;  %v2555_v10 = vpop.f32.mrf.mxu1  ;;  %v2538_v47 = vadd.f32 %v2537_v9, %v7229_v21  ;;  %v7241_v49 = vadd.f32 %v2588_v5, %v2571_v54  ;;  %2842 = vmatmul.bf16.gmra.mxu1 %v7173_v43  ;;  %v6097_v21 = vld [vmem:[#allocation7 + $0x184] sm:$0xf0]  ;;  %v5524_v43 = vor.u32 %v6065_v53, %v5523_v25  ;;  %v5755_v54 = vld [vmem:[#allocation7 + $0x250] sm:$0xf]  ;;  %v6123_v9 = vld [vmem:[#allocation7 + $0x254] sm:$0xf0] }
 0x175   : > { %3613 = vmatpush.bf16.msra.mxu1 %v5548_v3  ;;  %2860 = vmatmul.bf16.gmra.mxu2 %v7175_v50  ;;  %v5652_v16 = vor.u32 %v6097_v21, %v5651_v52  ;;  %v5836_v3 = vor.u32 %v6143_v60, %v5835_v12  ;;  %v5956_v5 = vor.u32 %v6173_v22, %v5955_v0  ;;  %v6121_v12 = vld [vmem:[#allocation7 + $0x244] sm:$0xf0]  ;;  %v5939_v60 = vld [vmem:[#allocation7 + $0x3c0] sm:$0xf] }
 0x176   : > { %3631 = vmatpush.bf16.msra.mxu2 %v5612_v1  ;;  %v2556_v55 = vadd.f32 %v2555_v10, %v2538_v47  ;;  %2878 = vmatmul.bf16.gmra.mxu3 %v7555_v13  ;;  %v6157_v1 = vld [vmem:[#allocation7 + $0x364] sm:$0xf0]  ;;  %v5819_v10 = vld [vmem:[#allocation7 + $0x2d0] sm:$0xf]  ;;  %v7273_v25 = vor.u32 %v6045_v32, %v5435_v31  ;;  %v7275_v53 = vor.u32 %v6041_v35, %v5437_v36  ;;  %v479_v18 = vld [vmem:[%s7025_s30 + $0x40] sm:$0xff] }
 0x177   : > { %3649 = vmatpush.bf16.msra.mxu3 %v5676_v8  ;;  %v5964_v8 = vor.u32 %v6175_v41, %v5963_v61  ;;  %v5756_v21 = vor.u32 %v6123_v9, %v5755_v54  ;;  %v5820_v13 = vor.u32 %v6139_v44, %v5819_v10  ;;  %v6169_v61 = vld [vmem:[#allocation7 + $0x3c4] sm:$0xf0]  ;;  %v5876_v41 = vor.u32 %v6153_v58, %v5875_v56  ;;  %v5731_v35 = vld [vmem:[#allocation7 + $0x220] sm:$0xf]  ;;  %v5787_v56 = vld [vmem:[#allocation7 + $0x290] sm:$0xf] }
 0x178   : > { %3596 = vmatpush.bf16.msra.mxu0 %v5476_v23  ;;  %v2573_v50 = vpop.f32.mrf.mxu2  ;;  %v6044_v23 = vld [vmem:[%s7025_s30 + $0x1c] sm:$0xf0]  ;;  %v480_v0 = vld [vmem:[%s7025_s30 + $0x48] sm:$0xff]  ;;  %v2911_v36 = vunpack.c.l.b16 %v479_v18  ;;  %v6830_v10 = vmov 0   ;;  %v6131_v58 = vld [vmem:[#allocation7 + $0x294] sm:$0xf0] }
 0x179   : > { %3614 = vmatpush.bf16.msra.mxu1 %v5540_v29  ;;  %v2574_v63 = vadd.f32 %v2573_v50, %v2556_v55  ;;  %v5892_v29 = vor.u32 %v6157_v1, %v5891_v39  ;;  %v5884_v55 = vor.u32 %v6155_v37, %v5883_v27  ;;  %v6151_v50 = vld [vmem:[#allocation7 + $0x334] sm:$0xf0]  ;;  %v5803_v1 = vld [vmem:[#allocation7 + $0x2b0] sm:$0xf]  ;;  %v2912_v27 = vunpack.c.h.b16 %v479_v18  ;;  %v6133_v37 = vld [vmem:[#allocation7 + $0x2a4] sm:$0xf0]  ;;  %6582 = vset.pattern.permute.xlu0 %v6830_v10 }
 0x17a   : > { %3632 = vmatpush.bf16.msra.mxu2 %v5604_v42  ;;  %v5427_v42 = vld [vmem:[%s7025_s30] sm:$0xf]  ;;  %v6119_v39 = vld [vmem:[#allocation7 + $0x234] sm:$0xf0]  ;;  %v6165_v9 = vld [vmem:[#allocation7 + $0x3a4] sm:$0xf0]  ;;  %6583 = vset.pattern.permute.xlu1 %v6830_v10 }
 0x17b   : > { %3650 = vmatpush.bf16.msra.mxu3 %v5668_v30  ;;  %v2591_v38 = vpop.f32.mrf.mxu3  ;;  %v2539_v57 = vpop.f32.mrf.mxu0  ;;  %v5764_v30 = vor.u32 %v6125_v4, %v5763_v15  ;;  %v5923_v54 = vld [vmem:[#allocation7 + $0x3a0] sm:$0xf]  ;;  %v6161_v18 = vld [vmem:[#allocation7 + $0x384] sm:$0xf0] }
 0x17c   : > { %3597 = vmatpush.bf16.msra.mxu0 %v5468_v40  ;;  %v2557_v7 = vpop.f32.mrf.mxu1  ;;  %v7253_v26 = vadd.f32 %v2591_v38, %v2574_v63  ;;  %v7271_v40 = vor.u32 %v6040_v28, %v5429_v51  ;;  %v5859_v28 = vld [vmem:[#allocation7 + $0x320] sm:$0xf]  ;;  %v6149_v51 = vld [vmem:[#allocation7 + $0x324] sm:$0xf0] }
 0x17d   : > { %3615 = vmatpush.bf16.msra.mxu1 %v5532_v24  ;;  %v6135_v7 = vld [vmem:[#allocation7 + $0x2b4] sm:$0xf0]  ;;  %v5860_v44 = vor.u32 %v6149_v51, %v5859_v28  ;;  %v6078_v28 = vld [vmem:[#allocation7 + $0xf4] sm:$0xf]  ;;  %v7314_v51 = vld [vmem:[%s7285_s25 + $0x8] sm:$0xff] }
 0x17e   : > { %3633 = vmatpush.bf16.msra.mxu2 %v5596_v20  ;;  %v7269_v20 = vor.u32 %v6044_v23, %v5427_v42  ;;  %v5804_v31 = vor.u32 %v6135_v7, %v5803_v1  ;;  %v5779_v7 = vld [vmem:[#allocation7 + $0x280] sm:$0xf] }
 0x17f   : > { %3651 = vmatpush.bf16.msra.mxu3 %v5660_v46 }
 0x180   : > { %3598 = vmatpush.bf16.msra.mxu0 %v5460_v59  ;;  %v2575_v19 = vpop.f32.mrf.mxu2  ;;  %v6137_v59 = vld [vmem:[#allocation7 + $0x2c4] sm:$0xf0] }
 0x181   : > { %3616 = vmatpush.bf16.msra.mxu1 %v5524_v43  ;;  %v5748_v43 = vor.u32 %v6121_v12, %v5747_v33  ;;  %v2913_v19 = vunpack.c.l.b16 %v480_v0  ;;  %v7295_v33 = vpack.c.b16 %v2911_v36, %v2911_v36  ;;  %v7297_v12 = vpack.c.b16 %v2912_v27, %v2912_v27 }
 0x182   : > { %3634 = vmatpush.bf16.msra.mxu2 %v5588_v34  ;;  %v5811_v34 = vld [vmem:[#allocation7 + $0x2c0] sm:$0xf] }
 0x183   : > { %3652 = vmatpush.bf16.msra.mxu3 %v5652_v16  ;;  %v2593_v47 = vpop.f32.mrf.mxu3  ;;  %v2604_v24 = vpop.f32.mrf.mxu0  ;;  %3599 = vmatmul.bf16.vlgmr.msra.gmra.mxu0 %v7269_v20  ;;  %v5867_v16 = vld [vmem:[#allocation7 + $0x330] sm:$0xf]  ;;  %v5812_v38 = vor.u32 %v6137_v59, %v5811_v34  ;;  %v6163_v59 = vld [vmem:[#allocation7 + $0x394] sm:$0xf0] }
 0x184   : > { %3663 = vmatpush.bf16.msrb.mxu0 %v5772_v62  ;;  %v2622_v46 = vpop.f32.mrf.mxu1  ;;  %3617 = vmatmul.bf16.vlgmr.msra.gmra.mxu1 %v7271_v40  ;;  %v5739_v62 = vld [vmem:[#allocation7 + $0x230] sm:$0xf]  ;;  %v5868_v42 = vor.u32 %v6151_v50, %v5867_v16  ;;  %v2914_v47 = vunpack.c.h.b16 %v480_v0  ;;  %v7302_v16 = vpack.c.b16 %v2913_v19, %v2913_v19  ;;  %v6094_v0 = vld [vmem:[#allocation7 + $0x174] sm:$0xf]  ;;  %v6092_v19 = vld [vmem:[#allocation7 + $0x164] sm:$0xf] }
 0x185   : > { %3681 = vmatpush.bf16.msrb.mxu1 %v5836_v3  ;;  %v2623_v52 = vadd.f32 %v2622_v46, %v2604_v24  ;;  %3635 = vmatmul.bf16.vlgmr.msra.gmra.mxu2 %v7273_v25  ;;  %v5931_v3 = vld [vmem:[#allocation7 + $0x3b0] sm:$0xf]  ;;  %v5740_v23 = vor.u32 %v6119_v39, %v5739_v62  ;;  %v6147_v24 = vld [vmem:[#allocation7 + $0x314] sm:$0xf0] }
 0x186   : > { %3699 = vmatpush.bf16.msrb.mxu2 %v5900_v17  ;;  %3653 = vmatmul.bf16.vlgmr.msra.gmra.mxu3 %v7275_v53  ;;  %v5940_v17 = vor.u32 %v6169_v61, %v5939_v60  ;;  %v5723_v46 = vld [vmem:[#allocation7 + $0x210] sm:$0xf]  ;;  %v7304_v50 = vpack.c.b16 %v2914_v47, %v2914_v47  ;;  %v5852_v39 = vor.u32 %v6147_v24, %v5851_v45  ;;  %v5637_v47 = vld [vmem:[#allocation7 + $0x168] sm:$0xf0] }
 0x187   : > { %3717 = vmatpush.bf16.msrb.mxu3 %v5964_v8  ;;  %v6167_v8 = vld [vmem:[#allocation7 + $0x3b4] sm:$0xf0]  ;;  %v5915_v34 = vld [vmem:[#allocation7 + $0x390] sm:$0xf] }
 0x188   : > { %3664 = vmatpush.bf16.msrb.mxu0 %v5764_v30  ;;  %v2640_v63 = vpop.f32.mrf.mxu2  ;;  %v5932_v32 = vor.u32 %v6167_v8, %v5931_v3  ;;  %v7300_v60 = vld [vmem:[%s7285_s25 + $0x10] sm:$0xff]  ;;  %v5788_v8 = vor.u32 %v6131_v58, %v5787_v56  ;;  %v6831_v56 = vmov 1   ;;  %v5573_v58 = vld [vmem:[#allocation7 + $0xe8] sm:$0xf0] }
 0x189   : > { %3682 = vmatpush.bf16.msrb.mxu1 %v5828_v2  ;;  %v2641_v15 = vadd.f32 %v2640_v63, %v2623_v52  ;;  %v6117_v2 = vld [vmem:[#allocation7 + $0x224] sm:$0xf0]  ;;  %3895 = vperm.xlu1 %6583, %v7300_v60   ;;  %v5715_v63 = vld [vmem:[#allocation7 + $0x200] sm:$0xf] }
 0x18a   : > { %3700 = vmatpush.bf16.msrb.mxu2 %v5892_v29  ;;  %v7290_v29 = vld [vmem:[%s7285_s25] sm:$0xff]  ;;  %v5732_v48 = vor.u32 %v6117_v2, %v5731_v35  ;;  %v5581_v35 = vld [vmem:[#allocation7 + $0xf8] sm:$0xf0]  ;;  %v6110_v2 = vld [vmem:[#allocation7 + $0x1f4] sm:$0xf]  ;;  %6585 = vset.pattern.permute.xlu2 %v6831_v56 }
 0x18b   : > { %3718 = vmatpush.bf16.msrb.mxu3 %v5956_v5  ;;  %v2658_v57 = vpop.f32.mrf.mxu3  ;;  %v2606_v4 = vpop.f32.mrf.mxu0  ;;  %v5795_v5 = vld [vmem:[#allocation7 + $0x2a0] sm:$0xf]  ;;  %3885 = vperm.xlu0 %6582, %v7290_v29   ;;  %v5584_v24 = vor.u32 %v6078_v28, %v5581_v35  ;;  %v5565_v28 = vld [vmem:[#allocation7 + $0xd8] sm:$0xf0] }
 0x18c   : > { %3665 = vmatpush.bf16.msrb.mxu0 %v5756_v21  ;;  %v2624_v14 = vpop.f32.mrf.mxu1  ;;  %v7292_v30 = vadd.f32 %v2658_v57, %v2641_v15  ;;  %v5796_v52 = vor.u32 %v6133_v37, %v5795_v5  ;;  %v6115_v21 = vld [vmem:[#allocation7 + $0x214] sm:$0xf0]  ;;  %v6113_v57 = vld [vmem:[#allocation7 + $0x204] sm:$0xf0]  ;;  %v5916_v15 = vor.u32 %v6163_v59, %v5915_v34  ;;  %v5709_v5 = vld [vmem:[#allocation7 + $0x1f8] sm:$0xf0]  ;;  %3922 = vperm.xlu2 %6585, %v7314_v51  }
 0x18d   : > { %3683 = vmatpush.bf16.msrb.mxu1 %v5820_v13  ;;  %v2625_v22 = vadd.f32 %v2624_v14, %v2606_v4  ;;  %v5724_v1 = vor.u32 %v6115_v21, %v5723_v46  ;;  %v6129_v4 = vld [vmem:[#allocation7 + $0x284] sm:$0xf0]  ;;  %v5907_v14 = vld [vmem:[#allocation7 + $0x380] sm:$0xf]  ;;  %v5712_v46 = vor.u32 %v6110_v2, %v5709_v5  ;;  %v6076_v21 = vld [vmem:[#allocation7 + $0xe4] sm:$0xf] }
 0x18e   : > { %3701 = vmatpush.bf16.msrb.mxu2 %v5884_v55  ;;  %v5924_v55 = vor.u32 %v6165_v9, %v5923_v54  ;;  %v5780_v36 = vor.u32 %v6129_v4, %v5779_v7  ;;  %v5908_v27 = vor.u32 %v6161_v18, %v5907_v14  ;;  %v5443_v59 = vld [vmem:[%s7025_s30 + $0x10] sm:$0xf]  ;;  %v6058_v4 = vld [vmem:[#allocation7 + $0x54] sm:$0xf]  ;;  %v5501_v14 = vld [vmem:[#allocation7 + $0x58] sm:$0xf0] }
 0x18f   : > { %3719 = vmatpush.bf16.msrb.mxu3 %v5948_v11  ;;  %v6074_v18 = vld [vmem:[#allocation7 + $0xd4] sm:$0xf] }
 0x190   : > { %3666 = vmatpush.bf16.msrb.mxu0 %v5748_v43  ;;  %v2642_v13 = vpop.f32.mrf.mxu2 }
 0x191   : > { %3684 = vmatpush.bf16.msrb.mxu1 %v5812_v38  ;;  %v2643_v61 = vadd.f32 %v2642_v13, %v2625_v22  ;;  %v5843_v38 = vld [vmem:[#allocation7 + $0x300] sm:$0xf]  ;;  %v5645_v22 = vld [vmem:[#allocation7 + $0x178] sm:$0xf0]  ;;  %6584 = vset.pattern.permute.xlu1 %v6831_v56  ;;  %v6108_v13 = vld [vmem:[#allocation7 + $0x1e4] sm:$0xf] }
 0x192   : > { %3702 = vmatpush.bf16.msrb.mxu2 %v5876_v41  ;;  %v5648_v9 = vor.u32 %v6094_v0, %v5645_v22  ;;  %3918 = vperm.xlu1 %6584, %v7290_v29  }
 0x193   : > { %3720 = vmatpush.bf16.msrb.mxu3 %v5940_v17  ;;  %v2660_v11 = vpop.f32.mrf.mxu3  ;;  %v2609_v41 = vpop.f32.mrf.mxu0  ;;  %v6145_v17 = vld [vmem:[#allocation7 + $0x304] sm:$0xf0]  ;;  %3604 = vmatmul.bf16.gmra.mxu0 %v7295_v33 }
 0x194   : > { %3667 = vmatpush.bf16.msrb.mxu0 %v5740_v23  ;;  %v2627_v43 = vpop.f32.mrf.mxu1  ;;  %v7307_v3 = vadd.f32 %v2660_v11, %v2643_v61  ;;  %3622 = vmatmul.bf16.gmra.mxu1 %v7297_v12  ;;  %v5517_v23 = vld [vmem:[#allocation7 + $0x78] sm:$0xf0]  ;;  %v5701_v11 = vld [vmem:[#allocation7 + $0x1e8] sm:$0xf0]  ;;  %v6046_v61 = vld [vmem:[%s7025_s30 + $0x2c] sm:$0xf0] }
 0x195   : > { %3685 = vmatpush.bf16.msrb.mxu1 %v5804_v31  ;;  %v2628_v62 = vadd.f32 %v2627_v43, %v2609_v41  ;;  %3640 = vmatmul.bf16.gmra.mxu2 %v7302_v16  ;;  %v5844_v31 = vor.u32 %v6145_v17, %v5843_v38  ;;  %v6042_v41 = vld [vmem:[%s7025_s30 + $0x14] sm:$0xf]  ;;  %v5451_v38 = vld [vmem:[%s7025_s30 + $0x18] sm:$0xf]  ;;  %v5640_v17 = vor.u32 %v6092_v19, %v5637_v47  ;;  %v6832_v19 = vmov 2  }
 0x196   : > { %3703 = vmatpush.bf16.msrb.mxu2 %v5868_v42  ;;  %v6062_v42 = vld [vmem:[#allocation7 + $0x74] sm:$0xf]  ;;  %3658 = vmatmul.bf16.gmra.mxu3 %v7304_v50  ;;  %v5704_v7 = vor.u32 %v6108_v13, %v5701_v11  ;;  %v5568_v47 = vor.u32 %v6074_v18, %v5565_v28  ;;  %v5613_v13 = vld [vmem:[#allocation7 + $0x138] sm:$0xf0]  ;;  %v6084_v18 = vld [vmem:[#allocation7 + $0x124] sm:$0xf] }
 0x197   : > { %3721 = vmatpush.bf16.msrb.mxu3 %v5932_v32  ;;  %v5716_v32 = vor.u32 %v6113_v57, %v5715_v63  ;;  %v5520_v10 = vor.u32 %v6062_v42, %v5517_v23  ;;  %3890 = vperm.xlu0 %6582, %v7314_v51   ;;  %v5445_v43 = vld [vmem:[%s7025_s30 + $0x30] sm:$0xf0]  ;;  %v5453_v63 = vld [vmem:[%s7025_s30 + $0x38] sm:$0xf0]  ;;  %v5576_v57 = vor.u32 %v6076_v21, %v5573_v58 }
 0x198   : > { %3668 = vmatpush.bf16.msrb.mxu0 %v5732_v48  ;;  %v2645_v37 = vpop.f32.mrf.mxu2  ;;  %v7329_v42 = vor.u32 %v6046_v61, %v5443_v59  ;;  %v7331_v23 = vor.u32 %v6042_v41, %v5445_v43  ;;  %v6086_v58 = vld [vmem:[#allocation7 + $0x134] sm:$0xf]  ;;  %v5485_v61 = vld [vmem:[#allocation7 + $0x38] sm:$0xf0]  ;;  %3926 = vperm.xlu2 %6585, %v7300_v60  }
 0x199   : > { %3686 = vmatpush.bf16.msrb.mxu1 %v5796_v52  ;;  %v6060_v52 = vld [vmem:[#allocation7 + $0x64] sm:$0xf]  ;;  %v6054_v59 = vld [vmem:[#allocation7 + $0x34] sm:$0xf] }
 0x19a   : > { %3704 = vmatpush.bf16.msrb.mxu2 %v5860_v44  ;;  %v2646_v44 = vadd.f32 %v2645_v37, %v2628_v62  ;;  %v6070_v41 = vld [vmem:[#allocation7 + $0xb4] sm:$0xf]  ;;  %6587 = vset.pattern.permute.xlu1 %v6832_v19 }
 0x19b   : > { %3722 = vmatpush.bf16.msrb.mxu3 %v5924_v55  ;;  %v2663_v54 = vpop.f32.mrf.mxu3  ;;  %v2611_v48 = vpop.f32.mrf.mxu0  ;;  %v5509_v55 = vld [vmem:[#allocation7 + $0x68] sm:$0xf0]  ;;  %3952 = vperm.xlu1 %6587, %v7314_v51  }
 0x19c   : > { %3669 = vmatpush.bf16.msrb.mxu0 %v5724_v1  ;;  %v2629_v45 = vpop.f32.mrf.mxu1  ;;  %v7317_v34 = vadd.f32 %v2663_v54, %v2646_v44  ;;  %v5512_v62 = vor.u32 %v6060_v52, %v5509_v55  ;;  %v6043_v1 = vld [vmem:[%s7025_s30 + $0x1c] sm:$0xf]  ;;  %v5504_v54 = vor.u32 %v6058_v4, %v5501_v14  ;;  %v6056_v48 = vld [vmem:[#allocation7 + $0x44] sm:$0xf]  ;;  %v5685_v55 = vld [vmem:[#allocation7 + $0x1c8] sm:$0xf0]  ;;  %v5616_v4 = vor.u32 %v6086_v58, %v5613_v13 }
 0x19d   : > { %3687 = vmatpush.bf16.msrb.mxu1 %v5788_v8  ;;  %v6090_v8 = vld [vmem:[#allocation7 + $0x154] sm:$0xf]  ;;  %v5493_v45 = vld [vmem:[#allocation7 + $0x48] sm:$0xf0]  ;;  %v6104_v52 = vld [vmem:[#allocation7 + $0x1c4] sm:$0xf]  ;;  %v5488_v14 = vor.u32 %v6054_v59, %v5485_v61 }
 0x19e   : > { %3705 = vmatpush.bf16.msrb.mxu2 %v5852_v39  ;;  %v6047_v39 = vld [vmem:[%s7025_s30 + $0x34] sm:$0xf0]  ;;  %v5496_v56 = vor.u32 %v6056_v48, %v5493_v45  ;;  %v5688_v11 = vor.u32 %v6104_v52, %v5685_v55  ;;  %v6082_v45 = vld [vmem:[#allocation7 + $0x114] sm:$0xf]  ;;  %v5469_v55 = vld [vmem:[#allocation7 + $0x18] sm:$0xf0] }
 0x19f   : > { %3723 = vmatpush.bf16.msrb.mxu3 %v5916_v15  ;;  %v5629_v15 = vld [vmem:[#allocation7 + $0x158] sm:$0xf0]  ;;  %v7333_v5 = vor.u32 %v6047_v39, %v5451_v38  ;;  %6586 = vset.pattern.permute.xlu0 %v6832_v19  ;;  %v6050_v52 = vld [vmem:[#allocation7 + $0x14] sm:$0xf] }
 0x1a0   : > { %3670 = vmatpush.bf16.msrb.mxu0 %v5716_v32  ;;  %v2647_v0 = vpop.f32.mrf.mxu2  ;;  %v5693_v32 = vld [vmem:[#allocation7 + $0x1d8] sm:$0xf0]  ;;  %v5632_v37 = vor.u32 %v6090_v8, %v5629_v15  ;;  %3948 = vperm.xlu0 %6586, %v7290_v29   ;;  %v6098_v59 = vld [vmem:[#allocation7 + $0x194] sm:$0xf] }
 0x1a1   : > { %3688 = vmatpush.bf16.msrb.mxu1 %v5780_v36  ;;  %v7335_v36 = vor.u32 %v6043_v1, %v5453_v63  ;;  %v5677_v39 = vld [vmem:[#allocation7 + $0x1b8] sm:$0xf0]  ;;  %v5605_v0 = vld [vmem:[#allocation7 + $0x128] sm:$0xf0]  ;;  %6588 = vset.pattern.permute.xlu2 %v6832_v19 }
 0x1a2   : > { %3706 = vmatpush.bf16.msrb.mxu2 %v5844_v31  ;;  %v6106_v31 = vld [vmem:[#allocation7 + $0x1d4] sm:$0xf]  ;;  %v482_v15 = vld [vmem:[%s7025_s30 + $0x58] sm:$0xff]  ;;  %3956 = vperm.xlu2 %6588, %v7300_v60   ;;  %v5653_v60 = vld [vmem:[#allocation7 + $0x188] sm:$0xf0] }
 0x1a3   : > { %3724 = vmatpush.bf16.msrb.mxu3 %v5908_v27  ;;  %v2665_v22 = vpop.f32.mrf.mxu3  ;;  %v2676_v35 = vpop.f32.mrf.mxu0  ;;  %v5696_v44 = vor.u32 %v6106_v31, %v5693_v32  ;;  %3671 = vmatmul.bf16.vlgmr.msrb.gmra.mxu0 %v7329_v42  ;;  %v6052_v32 = vld [vmem:[#allocation7 + $0x24] sm:$0xf]  ;;  %v5661_v61 = vld [vmem:[#allocation7 + $0x198] sm:$0xf0] }
 0x1a4   : > { %3735 = vmatpush.bf16.msra.mxu0 %v5520_v10  ;;  %v2694_v2 = vpop.f32.mrf.mxu1  ;;  %v2677_v27 = vadd.f32 %v2676_v35, %v7292_v30  ;;  %v5621_v10 = vld [vmem:[#allocation7 + $0x148] sm:$0xf0]  ;;  %3689 = vmatmul.bf16.vlgmr.msrb.gmra.mxu1 %v7331_v23 }
 0x1a5   : > { %3753 = vmatpush.bf16.msra.mxu1 %v5584_v24  ;;  %v6072_v24 = vld [vmem:[#allocation7 + $0xc4] sm:$0xf]  ;;  %v5557_v30 = vld [vmem:[#allocation7 + $0xc8] sm:$0xf0]  ;;  %3707 = vmatmul.bf16.vlgmr.msrb.gmra.mxu2 %v7333_v5 }
 0x1a6   : > { %3771 = vmatpush.bf16.msra.mxu2 %v5648_v9  ;;  %v6088_v9 = vld [vmem:[#allocation7 + $0x144] sm:$0xf]  ;;  %3725 = vmatmul.bf16.vlgmr.msrb.gmra.mxu3 %v7335_v36  ;;  %v5560_v29 = vor.u32 %v6072_v24, %v5557_v30  ;;  %v5477_v35 = vld [vmem:[#allocation7 + $0x28] sm:$0xf0]  ;;  %v5597_v24 = vld [vmem:[#allocation7 + $0x118] sm:$0xf0] }
 0x1a7   : > { %3789 = vmatpush.bf16.msra.mxu3 %v5712_v46  ;;  %v2695_v46 = vadd.f32 %v2694_v2, %v2677_v27  ;;  %v5624_v21 = vor.u32 %v6088_v9, %v5621_v10  ;;  %v6068_v2 = vld [vmem:[#allocation7 + $0xa4] sm:$0xf]  ;;  %v5669_v9 = vld [vmem:[#allocation7 + $0x1a8] sm:$0xf0]  ;;  %v2917_v10 = vunpack.c.l.b16 %v482_v15  ;;  %v5480_v48 = vor.u32 %v6052_v32, %v5477_v35  ;;  %v5901_v32 = vld [vmem:[#allocation7 + $0x378] sm:$0xf0] }
 0x1a8   : > { %3736 = vmatpush.bf16.msra.mxu0 %v5512_v62  ;;  %v2712_v43 = vpop.f32.mrf.mxu2  ;;  %v6102_v62 = vld [vmem:[#allocation7 + $0x1b4] sm:$0xf] }
 0x1a9   : > { %3754 = vmatpush.bf16.msra.mxu1 %v5576_v57  ;;  %v2713_v1 = vadd.f32 %v2712_v43, %v2695_v46  ;;  %v5680_v31 = vor.u32 %v6102_v62, %v5677_v39  ;;  %v6080_v39 = vld [vmem:[#allocation7 + $0x104] sm:$0xf]  ;;  %v6126_v35 = vld [vmem:[#allocation7 + $0x274] sm:$0xf] }
 0x1aa   : > { %3772 = vmatpush.bf16.msra.mxu2 %v5640_v17  ;;  %v5549_v17 = vld [vmem:[#allocation7 + $0xb8] sm:$0xf0] }
 0x1ab   : > { %3790 = vmatpush.bf16.msra.mxu3 %v5704_v7  ;;  %v2730_v38 = vpop.f32.mrf.mxu3  ;;  %v2678_v63 = vpop.f32.mrf.mxu0  ;;  %v481_v7 = vld [vmem:[%s7025_s30 + $0x50] sm:$0xff]  ;;  %v5552_v28 = vor.u32 %v6070_v41, %v5549_v17  ;;  %v7357_v17 = vpack.c.b16 %v2917_v10, %v2917_v10 }
 0x1ac   : > { %3737 = vmatpush.bf16.msra.mxu0 %v5504_v54  ;;  %v2696_v57 = vpop.f32.mrf.mxu1  ;;  %v2679_v8 = vadd.f32 %v2678_v63, %v7307_v3  ;;  %v7350_v22 = vadd.f32 %v2730_v38, %v2713_v1  ;;  %v2915_v51 = vunpack.c.l.b16 %v481_v7  ;;  %v5541_v3 = vld [vmem:[#allocation7 + $0xa8] sm:$0xf0]  ;;  %v6100_v54 = vld [vmem:[#allocation7 + $0x1a4] sm:$0xf]  ;;  %v5600_v63 = vor.u32 %v6082_v45, %v5597_v24 }
 0x1ad   : > { %3755 = vmatpush.bf16.msra.mxu1 %v5568_v47  ;;  %v2918_v47 = vunpack.c.h.b16 %v482_v15  ;;  %v5544_v46 = vor.u32 %v6068_v2, %v5541_v3  ;;  %v5672_v30 = vor.u32 %v6100_v54, %v5669_v9  ;;  %v5461_v15 = vld [vmem:[#allocation7 + $0x8] sm:$0xf0]  ;;  %v5773_v2 = vld [vmem:[#allocation7 + $0x278] sm:$0xf0]  ;;  %v6174_v54 = vld [vmem:[#allocation7 + $0x3f4] sm:$0xf] }
 0x1ae   : > { %3773 = vmatpush.bf16.msra.mxu2 %v5632_v37  ;;  %v2697_v27 = vadd.f32 %v2696_v57, %v2679_v8  ;;  %v2916_v37 = vunpack.c.h.b16 %v481_v7  ;;  %v7352_v13 = vpack.c.b16 %v2915_v51, %v2915_v51  ;;  %v5472_v57 = vor.u32 %v6050_v52, %v5469_v55  ;;  %v5589_v7 = vld [vmem:[#allocation7 + $0x108] sm:$0xf0]  ;;  %v6048_v8 = vld [vmem:[#allocation7 + $0x4] sm:$0xf]  ;;  %v5837_v3 = vld [vmem:[#allocation7 + $0x2f8] sm:$0xf0] }
 0x1af   : > { %3791 = vmatpush.bf16.msra.mxu3 %v5696_v44  ;;  %v5608_v44 = vor.u32 %v6084_v18, %v5605_v0  ;;  %v7359_v62 = vpack.c.b16 %v2918_v47, %v2918_v47  ;;  %v6064_v18 = vld [vmem:[#allocation7 + $0x84] sm:$0xf]  ;;  %v5525_v0 = vld [vmem:[#allocation7 + $0x88] sm:$0xf0]  ;;  %v5592_v51 = vor.u32 %v6080_v39, %v5589_v7  ;;  %v5965_v9 = vld [vmem:[#allocation7 + $0x3f8] sm:$0xf0]  ;;  %v5776_v24 = vor.u32 %v6126_v35, %v5773_v2 }
 0x1b0   : > { %3738 = vmatpush.bf16.msra.mxu0 %v5496_v56  ;;  %v2714_v56 = vpop.f32.mrf.mxu2  ;;  %v5528_v10 = vor.u32 %v6064_v18, %v5525_v0  ;;  %v6138_v18 = vld [vmem:[#allocation7 + $0x2d4] sm:$0xf] }
 0x1b1   : > { %3756 = vmatpush.bf16.msra.mxu1 %v5560_v29  ;;  %v7354_v29 = vpack.c.b16 %v2916_v37, %v2916_v37  ;;  %v2715_v41 = vadd.f32 %v2714_v56, %v2697_v27  ;;  %v6142_v27 = vld [vmem:[#allocation7 + $0x2f4] sm:$0xf]  ;;  %v5464_v37 = vor.u32 %v6048_v8, %v5461_v15  ;;  %v5885_v15 = vld [vmem:[#allocation7 + $0x358] sm:$0xf0] }
 0x1b2   : > { %3774 = vmatpush.bf16.msra.mxu2 %v5624_v21  ;;  %v6066_v21 = vld [vmem:[#allocation7 + $0x94] sm:$0xf]  ;;  %v5840_v56 = vor.u32 %v6142_v27, %v5837_v3  ;;  %v5877_v3 = vld [vmem:[#allocation7 + $0x348] sm:$0xf0] }
 0x1b3   : > { %3792 = vmatpush.bf16.msra.mxu3 %v5688_v11  ;;  %v2732_v58 = vpop.f32.mrf.mxu3  ;;  %v5533_v11 = vld [vmem:[#allocation7 + $0x98] sm:$0xf0]  ;;  %v2681_v43 = vpop.f32.mrf.mxu0  ;;  %3676 = vmatmul.bf16.gmra.mxu0 %v7352_v13  ;;  %v6154_v8 = vld [vmem:[#allocation7 + $0x354] sm:$0xf] }
 0x1b4   : > { %3739 = vmatpush.bf16.msra.mxu0 %v5488_v14  ;;  %v2699_v38 = vpop.f32.mrf.mxu1  ;;  %v2682_v1 = vadd.f32 %v2681_v43, %v7317_v34  ;;  %v7363_v19 = vadd.f32 %v2732_v58, %v2715_v41  ;;  %v5664_v14 = vor.u32 %v6098_v59, %v5661_v61  ;;  %3694 = vmatmul.bf16.gmra.mxu1 %v7354_v29  ;;  %v6158_v34 = vld [vmem:[#allocation7 + $0x374] sm:$0xf]  ;;  %v5765_v59 = vld [vmem:[#allocation7 + $0x268] sm:$0xf0]  ;;  %v6140_v61 = vld [vmem:[#allocation7 + $0x2e4] sm:$0xf] }
 0x1b5   : > { %3757 = vmatpush.bf16.msra.mxu1 %v5552_v28  ;;  %v6096_v28 = vld [vmem:[#allocation7 + $0x184] sm:$0xf]  ;;  %3712 = vmatmul.bf16.gmra.mxu2 %v7357_v17  ;;  %v5904_v45 = vor.u32 %v6158_v34, %v5901_v32  ;;  %v5968_v58 = vor.u32 %v6174_v54, %v5965_v9  ;;  %v5829_v41 = vld [vmem:[#allocation7 + $0x2e8] sm:$0xf0]  ;;  %v5949_v34 = vld [vmem:[#allocation7 + $0x3d8] sm:$0xf0]  ;;  %v5888_v27 = vor.u32 %v6154_v8, %v5885_v15 }
 0x1b6   : > { %3775 = vmatpush.bf16.msra.mxu2 %v5616_v4  ;;  %v5536_v4 = vor.u32 %v6066_v21, %v5533_v11  ;;  %3730 = vmatmul.bf16.gmra.mxu3 %v7359_v62  ;;  %v5656_v47 = vor.u32 %v6096_v28, %v5653_v60  ;;  %v6124_v11 = vld [vmem:[#allocation7 + $0x264] sm:$0xf]  ;;  %v6170_v60 = vld [vmem:[#allocation7 + $0x3d4] sm:$0xf] }
 0x1b7   : > { %3793 = vmatpush.bf16.msra.mxu3 %v5680_v31  ;;  %v2700_v31 = vadd.f32 %v2699_v38, %v2682_v1  ;;  %v6172_v43 = vld [vmem:[#allocation7 + $0x3e4] sm:$0xf]  ;;  %v5957_v38 = vld [vmem:[#allocation7 + $0x3e8] sm:$0xf0]  ;;  %v5952_v9 = vor.u32 %v6170_v60, %v5949_v34 }
 0x1b8   : > { %3740 = vmatpush.bf16.msra.mxu0 %v5480_v48  ;;  %v5960_v7 = vor.u32 %v6172_v43, %v5957_v38  ;;  %v5925_v60 = vld [vmem:[#allocation7 + $0x3a8] sm:$0xf0] }
 0x1b9   : > { %3758 = vmatpush.bf16.msra.mxu1 %v5544_v46  ;;  %v6156_v46 = vld [vmem:[#allocation7 + $0x364] sm:$0xf] }
 0x1ba   : > { %3776 = vmatpush.bf16.msra.mxu2 %v5608_v44  ;;  %v2717_v44 = vpop.f32.mrf.mxu2 }
 0x1bb   : > { %3794 = vmatpush.bf16.msra.mxu3 %v5672_v30  ;;  %v2735_v48 = vpop.f32.mrf.mxu3  ;;  %v5893_v30 = vld [vmem:[#allocation7 + $0x368] sm:$0xf0]  ;;  %v2718_v52 = vadd.f32 %v2717_v44, %v2700_v31  ;;  %v2683_v55 = vpop.f32.mrf.mxu0  ;;  %v5821_v31 = vld [vmem:[#allocation7 + $0x2d8] sm:$0xf0]  ;;  %v6136_v44 = vld [vmem:[#allocation7 + $0x2c4] sm:$0xf] }
 0x1bc   : > { %3741 = vmatpush.bf16.msra.mxu0 %v5472_v57  ;;  %v2701_v21 = vpop.f32.mrf.mxu1  ;;  %v5896_v1 = vor.u32 %v6156_v46, %v5893_v30  ;;  %v5832_v57 = vor.u32 %v6140_v61, %v5829_v41  ;;  %v5824_v54 = vor.u32 %v6138_v18, %v5821_v31  ;;  %v5941_v46 = vld [vmem:[#allocation7 + $0x3c8] sm:$0xf0]  ;;  %v5869_v55 = vld [vmem:[#allocation7 + $0x338] sm:$0xf0]  ;;  %v6166_v41 = vld [vmem:[#allocation7 + $0x3b4] sm:$0xf] }
 0x1bd   : > { %3759 = vmatpush.bf16.msra.mxu1 %v5536_v4  ;;  %v7369_v39 = vadd.f32 %v2735_v48, %v2718_v52  ;;  %v6122_v4 = vld [vmem:[#allocation7 + $0x254] sm:$0xf]  ;;  %v5805_v61 = vld [vmem:[#allocation7 + $0x2b8] sm:$0xf0]  ;;  %v5733_v18 = vld [vmem:[#allocation7 + $0x228] sm:$0xf0] }
 0x1be   : > { %3777 = vmatpush.bf16.msra.mxu2 %v5600_v63  ;;  %v5768_v63 = vor.u32 %v6124_v11, %v5765_v59  ;;  %v6150_v52 = vld [vmem:[#allocation7 + $0x334] sm:$0xf]  ;;  %v6164_v31 = vld [vmem:[#allocation7 + $0x3a4] sm:$0xf] }
 0x1bf   : > { %3795 = vmatpush.bf16.msra.mxu3 %v5664_v14  ;;  %v5757_v14 = vld [vmem:[#allocation7 + $0x258] sm:$0xf0] }
 0x1c0   : > { %3742 = vmatpush.bf16.msra.mxu0 %v5464_v37  ;;  %v6152_v37 = vld [vmem:[#allocation7 + $0x344] sm:$0xf] }
 0x1c1   : > { %3760 = vmatpush.bf16.msra.mxu1 %v5528_v10  ;;  %v6120_v10 = vld [vmem:[#allocation7 + $0x244] sm:$0xf] }
 0x1c2   : > { %3778 = vmatpush.bf16.msra.mxu2 %v5592_v51  ;;  %v2719_v0 = vpop.f32.mrf.mxu2  ;;  %v5760_v51 = vor.u32 %v6122_v4, %v5757_v14  ;;  %v6116_v14 = vld [vmem:[#allocation7 + $0x224] sm:$0xf] }
 0x1c3   : > { %3796 = vmatpush.bf16.msra.mxu3 %v5656_v47  ;;  %v2737_v28 = vpop.f32.mrf.mxu3  ;;  %v2748_v32 = vpop.f32.mrf.mxu0  ;;  %v5749_v47 = vld [vmem:[#allocation7 + $0x248] sm:$0xf0]  ;;  %3743 = vmatmul.bf16.vlgmr.msra.gmra.mxu0 %v7269_v20  ;;  %v6118_v20 = vld [vmem:[#allocation7 + $0x234] sm:$0xf]  ;;  %v6132_v0 = vld [vmem:[#allocation7 + $0x2a4] sm:$0xf] }
 0x1c4   : > { %3807 = vmatpush.bf16.msrb.mxu0 %v5776_v24  ;;  %v2766_v35 = vpop.f32.mrf.mxu1  ;;  %v2749_v2 = vadd.f32 %v2748_v32, %v7350_v22  ;;  %3761 = vmatmul.bf16.vlgmr.msra.gmra.mxu1 %v7271_v40  ;;  %v6168_v24 = vld [vmem:[#allocation7 + $0x3c4] sm:$0xf]  ;;  %v5880_v22 = vor.u32 %v6152_v37, %v5877_v3  ;;  %v5752_v30 = vor.u32 %v6120_v10, %v5749_v47  ;;  %v6134_v40 = vld [vmem:[#allocation7 + $0x2b4] sm:$0xf]  ;;  %v5797_v28 = vld [vmem:[#allocation7 + $0x2a8] sm:$0xf0] }
 0x1c5   : > { %3825 = vmatpush.bf16.msrb.mxu1 %v5840_v56  ;;  %3779 = vmatmul.bf16.vlgmr.msra.gmra.mxu2 %v7273_v25  ;;  %v5944_v56 = vor.u32 %v6168_v24, %v5941_v46  ;;  %v5933_v25 = vld [vmem:[#allocation7 + $0x3b8] sm:$0xf0]  ;;  %v5808_v15 = vor.u32 %v6134_v40, %v5805_v61  ;;  %v5736_v32 = vor.u32 %v6116_v14, %v5733_v18  ;;  %v6114_v37 = vld [vmem:[#allocation7 + $0x214] sm:$0xf]  ;;  %v6128_v40 = vld [vmem:[#allocation7 + $0x284] sm:$0xf] }
 0x1c6   : > { %3843 = vmatpush.bf16.msrb.mxu2 %v5904_v45  ;;  %v2767_v48 = vadd.f32 %v2766_v35, %v2749_v2  ;;  %v5813_v45 = vld [vmem:[#allocation7 + $0x2c8] sm:$0xf0]  ;;  %3797 = vmatmul.bf16.vlgmr.msra.gmra.mxu3 %v7275_v53  ;;  %v5936_v4 = vor.u32 %v6166_v41, %v5933_v25  ;;  %v6146_v35 = vld [vmem:[#allocation7 + $0x314] sm:$0xf]  ;;  %v5853_v2 = vld [vmem:[#allocation7 + $0x318] sm:$0xf0] }
 0x1c7   : > { %3861 = vmatpush.bf16.msrb.mxu3 %v5968_v58  ;;  %v5816_v21 = vor.u32 %v6136_v44, %v5813_v45  ;;  %v5741_v58 = vld [vmem:[#allocation7 + $0x238] sm:$0xf0]  ;;  %v6162_v44 = vld [vmem:[#allocation7 + $0x394] sm:$0xf]  ;;  %v5909_v61 = vld [vmem:[#allocation7 + $0x388] sm:$0xf0] }
 0x1c8   : > { %3808 = vmatpush.bf16.msrb.mxu0 %v5768_v63  ;;  %v5744_v63 = vor.u32 %v6118_v20, %v5741_v58  ;;  %v5725_v3 = vld [vmem:[#allocation7 + $0x218] sm:$0xf0]  ;;  %v6112_v20 = vld [vmem:[#allocation7 + $0x204] sm:$0xf]  ;;  %v5717_v58 = vld [vmem:[#allocation7 + $0x208] sm:$0xf0] }
 0x1c9   : > { %3826 = vmatpush.bf16.msrb.mxu1 %v5832_v57  ;;  %v6148_v57 = vld [vmem:[#allocation7 + $0x324] sm:$0xf]  ;;  %v5789_v47 = vld [vmem:[#allocation7 + $0x298] sm:$0xf0]  ;;  %v5720_v25 = vor.u32 %v6112_v20, %v5717_v58 }
 0x1ca   : > { %3844 = vmatpush.bf16.msrb.mxu2 %v5896_v1  ;;  %v2784_v11 = vpop.f32.mrf.mxu2  ;;  %v5872_v1 = vor.u32 %v6150_v52, %v5869_v55  ;;  %v6144_v52 = vld [vmem:[#allocation7 + $0x304] sm:$0xf]  ;;  %v5845_v55 = vld [vmem:[#allocation7 + $0x308] sm:$0xf0] }
 0x1cb   : > { %3862 = vmatpush.bf16.msrb.mxu3 %v5960_v7  ;;  %v2802_v59 = vpop.f32.mrf.mxu3  ;;  %v2785_v43 = vadd.f32 %v2784_v11, %v2767_v48  ;;  %v7376_v53 = vpop.f32.mrf.mxu0  ;;  %v5861_v7 = vld [vmem:[#allocation7 + $0x328] sm:$0xf0]  ;;  %v5917_v48 = vld [vmem:[#allocation7 + $0x398] sm:$0xf0]  ;;  %v5848_v41 = vor.u32 %v6144_v52, %v5845_v55 }
 0x1cc   : > { %3809 = vmatpush.bf16.msrb.mxu0 %v5760_v51  ;;  %v7378_v38 = vpop.f32.mrf.mxu1  ;;  %v5864_v34 = vor.u32 %v6148_v57, %v5861_v7  ;;  %v5928_v51 = vor.u32 %v6164_v31, %v5925_v60 }
 0x1cd   : > { %3827 = vmatpush.bf16.msrb.mxu1 %v5824_v54  ;;  %v7380_v8 = vadd.f32 %v2802_v59, %v2785_v43  ;;  %v6130_v54 = vld [vmem:[#allocation7 + $0x294] sm:$0xf]  ;;  %v5781_v59 = vld [vmem:[#allocation7 + $0x288] sm:$0xf0] }
 0x1ce   : > { %3845 = vmatpush.bf16.msrb.mxu2 %v5888_v27  ;;  %v5800_v27 = vor.u32 %v6132_v0, %v5797_v28  ;;  %v5784_v43 = vor.u32 %v6128_v40, %v5781_v59 }
 0x1cf   : > { %3863 = vmatpush.bf16.msrb.mxu3 %v5952_v9 }
 0x1d0   : > { %3810 = vmatpush.bf16.msrb.mxu0 %v5752_v30  ;;  %v5728_v30 = vor.u32 %v6114_v37, %v5725_v3 }
 0x1d1   : > { %3828 = vmatpush.bf16.msrb.mxu1 %v5816_v21  ;;  %v5792_v21 = vor.u32 %v6130_v54, %v5789_v47 }
 0x1d2   : > { %3846 = vmatpush.bf16.msrb.mxu2 %v5880_v22  ;;  %v2786_v9 = vpop.f32.mrf.mxu2  ;;  %v5856_v22 = vor.u32 %v6146_v35, %v5853_v2 }
 0x1d3   : > { %3864 = vmatpush.bf16.msrb.mxu3 %v5944_v56  ;;  %v2804_v10 = vpop.f32.mrf.mxu3  ;;  %v2753_v45 = vpop.f32.mrf.mxu0  ;;  %v5920_v56 = vor.u32 %v6162_v44, %v5917_v48  ;;  %3748 = vmatmul.bf16.gmra.mxu0 %v7295_v33 }
 0x1d4   : > { %3811 = vmatpush.bf16.msrb.mxu0 %v5744_v63  ;;  %v2771_v24 = vpop.f32.mrf.mxu1  ;;  %v2754_v46 = vadd.f32 %v2753_v45, %v7369_v39  ;;  %3766 = vmatmul.bf16.gmra.mxu1 %v7297_v12  ;;  %v6160_v39 = vld [vmem:[#allocation7 + $0x384] sm:$0xf] }
 0x1d5   : > { %3829 = vmatpush.bf16.msrb.mxu1 %v5808_v15  ;;  %3784 = vmatmul.bf16.gmra.mxu2 %v7302_v16  ;;  %v2751_v16 = vadd.f32 %v7376_v53, %v7363_v19 }
 0x1d6   : > { %3847 = vmatpush.bf16.msrb.mxu2 %v5872_v1  ;;  %v2772_v11 = vadd.f32 %v2771_v24, %v2754_v46  ;;  %3802 = vmatmul.bf16.gmra.mxu3 %v7304_v50  ;;  %v5912_v1 = vor.u32 %v6160_v39, %v5909_v61  ;;  %v7408_v24 = vld [vmem:[%s7522_s5] sm:$0x77] }
 0x1d7   : > { %3865 = vmatpush.bf16.msrb.mxu3 %v5936_v4  ;;  %v2769_v0 = vadd.f32 %v7378_v38, %v2751_v16 }
 0x1d8   : > { %3812 = vmatpush.bf16.msrb.mxu0 %v5736_v32 }
 0x1d9   : > { %3830 = vmatpush.bf16.msrb.mxu1 %v5800_v27  ;;  %v2787_v31 = vadd.f32 %v2786_v9, %v2769_v0  ;;  %v6450_v0 = vld [vmem:[#allocation10 + $0x10] sm:$0xff] }
 0x1da   : > { %3848 = vmatpush.bf16.msrb.mxu2 %v5864_v34  ;;  %v2789_v63 = vpop.f32.mrf.mxu2 }
 0x1db   : > { %3866 = vmatpush.bf16.msrb.mxu3 %v5928_v51  ;;  %v2807_v57 = vpop.f32.mrf.mxu3  ;;  %v2790_v33 = vadd.f32 %v2789_v63, %v2772_v11  ;;  %v2755_v7 = vpop.f32.mrf.mxu0  ;;  %v2805_v34 = vadd.f32 %v2804_v10, %v2787_v31  ;;  %v6453_v11 = vld [vmem:[#allocation10 + $0x28] sm:$0xff] }
 0x1dc   : > { %3813 = vmatpush.bf16.msrb.mxu0 %v5728_v30  ;;  %v2773_v12 = vpop.f32.mrf.mxu1  ;;  %v6455_v30 = vld [vmem:[#allocation10 + $0x38] sm:$0xff] }
 0x1dd   : > { %3831 = vmatpush.bf16.msrb.mxu1 %v5792_v21  ;;  %v2808_v15 = vadd.f32 %v2807_v57, %v2790_v33  ;;  %v3960_v57 = vperm.slane %v7408_v24, 6  ;;  %v6451_v12 = vld [vmem:[#allocation10 + $0x18] sm:$0xff] }
 0x1de   : > { %3849 = vmatpush.bf16.msrb.mxu2 %v5856_v22 }
 0x1df   : > { %3867 = vmatpush.bf16.msrb.mxu3 %v5920_v56  ;;  %v6454_v56 = vld [vmem:[#allocation10 + $0x30] sm:$0xff] }
 0x1e0   : > { %3814 = vmatpush.bf16.msrb.mxu0 %v5720_v25  ;;  %v6452_v25 = vld [vmem:[#allocation10 + $0x20] sm:$0xff] }
 0x1e1   : > { %3832 = vmatpush.bf16.msrb.mxu1 %v5784_v43  ;;  %v3930_v43 = vperm.slane %v7408_v24, 5 }
 0x1e2   : > { %3850 = vmatpush.bf16.msrb.mxu2 %v5848_v41  ;;  %v2791_v50 = vpop.f32.mrf.mxu2 }
 0x1e3   : > { %3868 = vmatpush.bf16.msrb.mxu3 %v5912_v1  ;;  %v2809_v4 = vpop.f32.mrf.mxu3  ;;  %v2820_v14 = vpop.f32.mrf.mxu0  ;;  %3815 = vmatmul.bf16.vlgmr.msrb.gmra.mxu0 %v7329_v42  ;;  %v3934_v63 = vperm.slane %v3930_v43, 1 }
 0x1e4   : > { %v2838_v18 = vpop.f32.mrf.mxu1  ;;  %v2821_v28 = vadd.f32 %v2820_v14, %v7380_v8  ;;  %3833 = vmatmul.bf16.vlgmr.msrb.gmra.mxu1 %v7331_v23  ;;  %4131 = vmatpush.bf16.msra.mxu0 %v6455_v30  ;;  %v3964_v14 = vperm.slane %v3960_v57, 2 }
 0x1e5   : > { %3851 = vmatmul.bf16.vlgmr.msrb.gmra.mxu2 %v7333_v5 }
 0x1e6   : > { %v2839_v60 = vadd.f32 %v2838_v18, %v2821_v28  ;;  %3869 = vmatmul.bf16.vlgmr.msrb.gmra.mxu3 %v7335_v36  ;;  %6467 = vmatpush.bf16.msra.mxu2 %v6455_v30  ;;  %v7427_v1 = vpop.permute.xlu2 %3922  ;;  %v3929_v30 = vperm.slane %v7408_v24, 1 }
 0x1e7   : > { %v7431_v50 = vmul.f32 %v3934_v63, %v7427_v1 }
 0x1e8   : > { %4132 = vmatpush.bf16.msra.mxu0 %v6454_v56 }
 0x1ea   : > { %v2856_v19 = vpop.f32.mrf.mxu2  ;;  %6468 = vmatpush.bf16.msra.mxu2 %v6454_v56 }
 0x1eb   : > { %v2874_v53 = vpop.f32.mrf.mxu3  ;;  %v2857_v32 = vadd.f32 %v2856_v19, %v2839_v60  ;;  %v2822_v35 = vpop.f32.mrf.mxu0 }
 0x1ec   : > { %v2840_v2 = vpop.f32.mrf.mxu1  ;;  %v2823_v27 = vadd.f32 %v2822_v35, %v2805_v34  ;;  %4133 = vmatpush.bf16.msra.mxu0 %v6453_v11  ;;  %v6449_v35 = vld [vmem:[#allocation10 + $0x8] sm:$0xff] }
 0x1ed   : > { %v7395_v38 = vadd.f32 %v2874_v53, %v2857_v32 }
 0x1ee   : > { %v2841_v8 = vadd.f32 %v2840_v2, %v2823_v27  ;;  %6469 = vmatpush.bf16.msra.mxu2 %v6453_v11 }
 0x1f0   : > { %4134 = vmatpush.bf16.msra.mxu0 %v6452_v25 }
 0x1f2   : > { %v2858_v51 = vpop.f32.mrf.mxu2  ;;  %6470 = vmatpush.bf16.msra.mxu2 %v6452_v25  ;;  %v7437_v60 = vpop.permute.xlu2 %3926 }
 0x1f3   : > { %v2876_v37 = vpop.f32.mrf.mxu3  ;;  %v2859_v3 = vadd.f32 %v2858_v51, %v2841_v8  ;;  %v2825_v42 = vpop.f32.mrf.mxu0  ;;  %3820 = vmatmul.bf16.gmra.mxu0 %v7352_v13  ;;  %v3900_v13 = vperm.slane %v7408_v24, 4  ;;  %v7441_v19 = vmul.f32 %v3934_v63, %v7437_v60 }
 0x1f4   : > { %v2843_v54 = vpop.f32.mrf.mxu1  ;;  %v2826_v23 = vadd.f32 %v2825_v42, %v2808_v15  ;;  %3838 = vmatmul.bf16.gmra.mxu1 %v7354_v29  ;;  %4135 = vmatpush.bf16.msra.mxu0 %v6451_v12 }
 0x1f5   : > { %v7397_v9 = vadd.f32 %v2876_v37, %v2859_v3  ;;  %3856 = vmatmul.bf16.gmra.mxu2 %v7357_v17  ;;  %v3904_v46 = vperm.slane %v3900_v13, 0  ;;  %v6448_v3 = vld [vmem:[#allocation10] sm:$0xff] }
 0x1f6   : > { %v2844_v5 = vadd.f32 %v2843_v54, %v2826_v23  ;;  %3874 = vmatmul.bf16.gmra.mxu3 %v7359_v62  ;;  %6471 = vmatpush.bf16.msra.mxu2 %v6451_v12 }
 0x1f8   : > { %4136 = vmatpush.bf16.msra.mxu0 %v6450_v0 }
 0x1fa   : > { %v2861_v36 = vpop.f32.mrf.mxu2  ;;  %6472 = vmatpush.bf16.msra.mxu2 %v6450_v0 }
 0x1fb   : > { %v2879_v10 = vpop.f32.mrf.mxu3  ;;  %v2862_v47 = vadd.f32 %v2861_v36, %v2844_v5  ;;  %v2827_v44 = vpop.f32.mrf.mxu0  ;;  %v3899_v5 = vperm.slane %v7408_v24, 0 }
 0x1fc   : > { %v2845_v48 = vpop.f32.mrf.mxu1  ;;  %v7416_v21 = vpop.permute.xlu1 %3895  ;;  %4137 = vmatpush.bf16.msra.mxu0 %v6449_v35 }
 0x1fd   : > { %v7403_v45 = vadd.f32 %v2879_v10, %v2862_v47  ;;  %v7411_v29 = vpop.permute.xlu0 %3885  ;;  %v7419_v20 = vmul.f32 %v3904_v46, %v7416_v21  ;;  %v7445_v54 = vpop.permute.xlu2 %3956 }
 0x1fe   : > { %v7414_v62 = vmul.f32 %v3904_v46, %v7411_v29  ;;  %6473 = vmatpush.bf16.msra.mxu2 %v6449_v35  ;;  %v7449_v23 = vmul.f32 %v3964_v14, %v7445_v54 }
 0x200   : > { %4138 = vmatpush.bf16.msra.mxu0 %v6448_v3 }
 0x202   : > { %v2863_v17 = vpop.f32.mrf.mxu2  ;;  %6474 = vmatpush.bf16.msra.mxu2 %v6448_v3 }
 0x203   : > { %v2881_v22 = vpop.f32.mrf.mxu3  ;;  %v3600_v52 = vpop.f32.mrf.mxu0  ;;  %v3903_v17 = vperm.slane %v3899_v5, 0 }
 0x204   : > { %v3618_v55 = vpop.f32.mrf.mxu1  ;;  %v3919_v4 = vpop.permute.xlu1 %3918  ;;  %v3601_v34 = vadd.f32 %v3600_v52, %v7237_v6 }
 0x205   : > { %v7433_v18 = vmul.f32 %v3934_v63, %v3919_v4  ;;  %v3959_v63 = vperm.slane %v7408_v24, 2  ;;  %v7460_v24 = vld [vmem:[%s7523_s6] sm:$0x3] }
 0x206   : > { %v3619_v8 = vadd.f32 %v3618_v55, %v3601_v34 }
 0x207   : > { %v3963_v34 = vperm.slane %v3959_v63, 2  ;;  %v6463_v63 = vld [vmem:[#allocation10 + $0x78] sm:$0xff] }
 0x208   : > { %4149 = vmatpush.bf16.msra.mxu1 %v6463_v63  ;;  %6475 = vmatpush.bf16.msra.mxu3 %v6463_v63 }
 0x209   : > { %v7421_v61 = vpop.permute.xlu0 %3890 }
 0x20a   : > { %v3636_v58 = vpop.f32.mrf.mxu2  ;;  %v7424_v41 = vmul.f32 %v3904_v46, %v7421_v61 }
 0x20b   : > { %v3654_v40 = vpop.f32.mrf.mxu3  ;;  %v3602_v59 = vpop.f32.mrf.mxu0  ;;  %v3637_v42 = vadd.f32 %v3636_v58, %v3619_v8 }
 0x20c   : > { %v3620_v39 = vpop.f32.mrf.mxu1  ;;  %v3603_v6 = vadd.f32 %v3602_v59, %v7241_v49  ;;  %v3905_v49 = vmul.f32 %v3903_v17, %v7411_v29 }
 0x20d   : > { %v3953_v51 = vpop.permute.xlu1 %3952  ;;  %v3655_v47 = vadd.f32 %v3654_v40, %v3637_v42  ;;  %v3933_v40 = vperm.slane %v3929_v30, 1 }
 0x20e   : > { %v7443_v37 = vmul.f32 %v3964_v14, %v3953_v51  ;;  %v3621_v13 = vadd.f32 %v3620_v39, %v3603_v6  ;;  %v3979_v6 = vperm.slane %v7460_v24, 0 }
 0x20f   : > { %v3935_v0 = vmul.f32 %v3933_v40, %v3919_v4 }
 0x212   : > { %v3638_v33 = vpop.f32.mrf.mxu2  ;;  %v3949_v28 = vpop.permute.xlu0 %3948 }
 0x213   : > { %v3656_v7 = vpop.f32.mrf.mxu3  ;;  %v3605_v15 = vpop.f32.mrf.mxu0  ;;  %v7435_v31 = vmul.f32 %v3964_v14, %v3949_v28  ;;  %v3639_v22 = vadd.f32 %v3638_v33, %v3621_v13 }
 0x214   : > { %v3623_v16 = vpop.f32.mrf.mxu1  ;;  %v3606_v52 = vadd.f32 %v3605_v15, %v7253_v26  ;;  %v3907_v15 = vmul.f32 %v3903_v17, %v7421_v61 }
 0x215   : > { %v3657_v11 = vadd.f32 %v3656_v7, %v3639_v22 }
 0x216   : > { %v3624_v39 = vadd.f32 %v3623_v16, %v3606_v52  ;;  %v3937_v16 = vmul.f32 %v3933_v40, %v7427_v1  ;;  %v3939_v1 = vmul.f32 %v3933_v40, %v7437_v60  ;;  %v6462_v60 = vld [vmem:[#allocation10 + $0x70] sm:$0xff] }
 0x217   : > { %4150 = vmatpush.bf16.msra.mxu1 %v6462_v60  ;;  %6476 = vmatpush.bf16.msra.mxu3 %v6462_v60 }
 0x21a   : > { %v3641_v53 = vpop.f32.mrf.mxu2 }
 0x21b   : > { %v3659_v32 = vpop.f32.mrf.mxu3  ;;  %v3607_v2 = vpop.f32.mrf.mxu0  ;;  %v3642_v33 = vadd.f32 %v3641_v53, %v3624_v39 }
 0x21c   : > { %v3625_v27 = vpop.f32.mrf.mxu1 }
 0x21d   : > { %v3660_v2 = vadd.f32 %v3659_v32, %v3642_v33  ;;  %v3965_v27 = vmul.f32 %v3963_v34, %v3949_v28 }
 0x222   : > { %v3643_v36 = vpop.f32.mrf.mxu2 }
 0x223   : > { %v3661_v10 = vpop.f32.mrf.mxu3  ;;  %v3672_v44 = vpop.f32.mrf.mxu0  ;;  %v3967_v36 = vmul.f32 %v3963_v34, %v3953_v51  ;;  %v3969_v51 = vmul.f32 %v3963_v34, %v7445_v54  ;;  %v6461_v54 = vld [vmem:[#allocation10 + $0x68] sm:$0xff] }
 0x224   : > { %v3690_v48 = vpop.f32.mrf.mxu1  ;;  %v3673_v46 = vadd.f32 %v3672_v44, %v3655_v47  ;;  %v3909_v44 = vmul.f32 %v3903_v17, %v7416_v21  ;;  %4151 = vmatpush.bf16.msra.mxu1 %v6461_v54  ;;  %6477 = vmatpush.bf16.msra.mxu3 %v6461_v54 }
 0x226   : > { %v3691_v55 = vadd.f32 %v3690_v48, %v3673_v46 }
 0x22a   : > { %v3708_v56 = vpop.f32.mrf.mxu2 }
 0x22b   : > { %v3726_v58 = vpop.f32.mrf.mxu3  ;;  %v3709_v59 = vadd.f32 %v3708_v56, %v3691_v55  ;;  %v3674_v25 = vpop.f32.mrf.mxu0 }
 0x22c   : > { %v3692_v43 = vpop.f32.mrf.mxu1  ;;  %v3675_v12 = vadd.f32 %v3674_v25, %v3657_v11 }
 0x22d   : > { %v3727_v57 = vadd.f32 %v3726_v58, %v3709_v59 }
 0x22e   : > { %v3693_v26 = vadd.f32 %v3692_v43, %v3675_v12 }
 0x22f   : > { %v3911_v14 = vadd.f32 %v3905_v49, %v3727_v57 }
 0x231   : > { %v3941_v7 = vadd.f32 %v3935_v0, %v3911_v14 }
 0x232   : > { %v3710_v29 = vpop.f32.mrf.mxu2 }
 0x233   : > { %v3728_v35 = vpop.f32.mrf.mxu3  ;;  %v3711_v8 = vadd.f32 %v3710_v29, %v3693_v26  ;;  %v3677_v3 = vpop.f32.mrf.mxu0  ;;  %v3971_v61 = vadd.f32 %v3965_v27, %v3941_v7  ;;  %v6460_v26 = vld [vmem:[#allocation10 + $0x60] sm:$0xff]  ;;  %v6458_v27 = vld [vmem:[#allocation10 + $0x50] sm:$0xff] }
 0x234   : > { %v3695_v42 = vpop.f32.mrf.mxu1  ;;  %v3678_v53 = vadd.f32 %v3677_v3, %v3660_v2  ;;  %4152 = vmatpush.bf16.msra.mxu1 %v6460_v26  ;;  %6478 = vmatpush.bf16.msra.mxu3 %v6460_v26 }
 0x235   : > { %v3729_v4 = vadd.f32 %v3728_v35, %v3711_v8  ;;  %v3983_v48 = vadd.f32 %v3979_v6, %v3971_v61  ;;  %v6459_v35 = vld [vmem:[#allocation10 + $0x58] sm:$0xff]  ;;  %v6456_v61 = vld [vmem:[#allocation10 + $0x40] sm:$0xff] }
 0x236   : > { %v3696_v32 = vadd.f32 %v3695_v42, %v3678_v53 }
 0x237   : > { %v3913_v5 = vadd.f32 %v3907_v15, %v3729_v4  ;;  %v3989_v49 = vmax.f32 %v3983_v48, 0.0 }
 0x238   : > { %4153 = vmatpush.bf16.msra.mxu1 %v6459_v35  ;;  %6479 = vmatpush.bf16.msra.mxu3 %v6459_v35 }
 0x239   : > { %v3943_v10 = vadd.f32 %v3937_v16, %v3913_v5  ;;  %v6457_v16 = vld [vmem:[#allocation10 + $0x48] sm:$0xff] }
 0x23a   : > { %v3713_v28 = vpop.f32.mrf.mxu2 }
 0x23b   : > { %v3731_v47 = vpop.f32.mrf.mxu3  ;;  %v3973_v13 = vadd.f32 %v3967_v36, %v3943_v10  ;;  %v3714_v46 = vadd.f32 %v3713_v28, %v3696_v32  ;;  %v3679_v22 = vpop.f32.mrf.mxu0 }
 0x23c   : > { %v3697_v30 = vpop.f32.mrf.mxu1  ;;  %4154 = vmatpush.bf16.msra.mxu1 %v6458_v27  ;;  %6480 = vmatpush.bf16.msra.mxu3 %v6458_v27 }
 0x23d   : > { %v3985_v52 = vadd.f32 %v3979_v6, %v3973_v13  ;;  %v3732_v55 = vadd.f32 %v3731_v47, %v3714_v46 }
 0x23f   : > { %v3991_v56 = vmax.f32 %v3985_v52, 0.0  ;;  %v3915_v58 = vadd.f32 %v3909_v44, %v3732_v55 }
 0x240   : > { %4155 = vmatpush.bf16.msra.mxu1 %v6457_v16  ;;  %6481 = vmatpush.bf16.msra.mxu3 %v6457_v16 }
 0x241   : > { %v3995_v11 = vpack.c.bf16 %v3991_v56, %v3989_v49  ;;  %v3945_v59 = vadd.f32 %v3939_v1, %v3915_v58 }
 0x242   : > { %v3715_v25 = vpop.f32.mrf.mxu2 }
 0x243   : > { %v3733_v43 = vpop.f32.mrf.mxu3  ;;  %v3975_v21 = vadd.f32 %v3969_v51, %v3945_v59  ;;  %4139 = vmatmul.bf16.vlgmr.msra.gmra.mxu0 %v3995_v11  ;;  %v3744_v17 = vpop.f32.mrf.mxu0  ;;  %v3980_v25 = vperm.slane %v7460_v24, 1 }
 0x244   : > { %v3762_v39 = vpop.f32.mrf.mxu1  ;;  %v3745_v8 = vadd.f32 %v3744_v17, %v7395_v38  ;;  %4156 = vmatpush.bf16.msra.mxu1 %v6456_v61  ;;  %6482 = vmatpush.bf16.msra.mxu3 %v6456_v61 }
 0x245   : > { %v3987_v57 = vadd.f32 %v3979_v6, %v3975_v21 }
 0x246   : > { %v3763_v6 = vadd.f32 %v3762_v39, %v3745_v8 }
 0x247   : > { %v3993_v40 = vmax.f32 %v3987_v57, 0.0 }
 0x249   : > { %v3997_v12 = vpack.c.bf16 %v3993_v40, %v3993_v40 }
 0x24a   : > { %v3780_v33 = vpop.f32.mrf.mxu2 }
 0x24b   : > { %v3798_v14 = vpop.f32.mrf.mxu3  ;;  %4144 = vmatmul.bf16.vlgmr.msra.gmra.mxu2 %v3997_v12  ;;  %v3746_v0 = vpop.f32.mrf.mxu0  ;;  %v3781_v5 = vadd.f32 %v3780_v33, %v3763_v6 }
 0x24c   : > { %v3764_v34 = vpop.f32.mrf.mxu1  ;;  %v3747_v36 = vadd.f32 %v3746_v0, %v7397_v9 }
 0x24d   : > { %v3799_v28 = vadd.f32 %v3798_v14, %v3781_v5 }
 0x24e   : > { %v3765_v38 = vadd.f32 %v3764_v34, %v3747_v36 }
 0x252   : > { %v3782_v15 = vpop.f32.mrf.mxu2 }
 0x253   : > { %v3800_v29 = vpop.f32.mrf.mxu3  ;;  %v3749_v2 = vpop.f32.mrf.mxu0  ;;  %v3783_v13 = vadd.f32 %v3782_v15, %v3765_v38 }
 0x254   : > { %v3767_v7 = vpop.f32.mrf.mxu1  ;;  %v3750_v46 = vadd.f32 %v3749_v2, %v7403_v45 }
 0x255   : > { %v3801_v52 = vadd.f32 %v3800_v29, %v3783_v13 }
 0x256   : > { %v3768_v58 = vadd.f32 %v3767_v7, %v3750_v46 }
 0x25a   : > { %v3785_v3 = vpop.f32.mrf.mxu2 }
 0x25b   : > { %v3803_v42 = vpop.f32.mrf.mxu3  ;;  %v3751_v4 = vpop.f32.mrf.mxu0  ;;  %v3786_v11 = vadd.f32 %v3785_v3, %v3768_v58 }
 0x25c   : > { %v3769_v53 = vpop.f32.mrf.mxu1 }
 0x25d   : > { %v3804_v17 = vadd.f32 %v3803_v42, %v3786_v11 }
 0x262   : > { %v3787_v32 = vpop.f32.mrf.mxu2 }
 0x263   : > { %v3805_v10 = vpop.f32.mrf.mxu3  ;;  %v3816_v47 = vpop.f32.mrf.mxu0 }
 0x264   : > { %v3834_v44 = vpop.f32.mrf.mxu1  ;;  %v3817_v48 = vadd.f32 %v3816_v47, %v3799_v28 }
 0x266   : > { %v3835_v22 = vadd.f32 %v3834_v44, %v3817_v48 }
 0x26a   : > { %v3852_v30 = vpop.f32.mrf.mxu2 }
 0x26b   : > { %v3870_v1 = vpop.f32.mrf.mxu3  ;;  %v3853_v55 = vadd.f32 %v3852_v30, %v3835_v22  ;;  %v3818_v49 = vpop.f32.mrf.mxu0 }
 0x26c   : > { %v3836_v56 = vpop.f32.mrf.mxu1  ;;  %v3819_v9 = vadd.f32 %v3818_v49, %v3801_v52 }
 0x26d   : > { %v3871_v51 = vadd.f32 %v3870_v1, %v3853_v55 }
 0x26e   : > { %v3837_v63 = vadd.f32 %v3836_v56, %v3819_v9 }
 0x26f   : > { %v3912_v59 = vadd.f32 %v7414_v62, %v3871_v51 }
 0x271   : > { %v3942_v43 = vadd.f32 %v7433_v18, %v3912_v59 }
 0x272   : > { %v3854_v21 = vpop.f32.mrf.mxu2 }
 0x273   : > { %v3872_v45 = vpop.f32.mrf.mxu3  ;;  %v3972_v39 = vadd.f32 %v7435_v31, %v3942_v43  ;;  %v3855_v57 = vadd.f32 %v3854_v21, %v3837_v63  ;;  %v3821_v60 = vpop.f32.mrf.mxu0 }
 0x274   : > { %v3839_v40 = vpop.f32.mrf.mxu1  ;;  %v3822_v14 = vadd.f32 %v3821_v60, %v3804_v17 }
 0x275   : > { %v3984_v12 = vadd.f32 %v3980_v25, %v3972_v39  ;;  %v3873_v33 = vadd.f32 %v3872_v45, %v3855_v57 }
 0x276   : > { %v3840_v0 = vadd.f32 %v3839_v40, %v3822_v14 }
 0x277   : > { %v3914_v54 = vadd.f32 %v7424_v41, %v3873_v33  ;;  %v3990_v2 = vmax.f32 %v3984_v12, 0.0 }
 0x279   : > { %v3944_v62 = vadd.f32 %v7431_v50, %v3914_v54 }
 0x27a   : > { %v3857_v24 = vpop.f32.mrf.mxu2 }
 0x27b   : > { %v3875_v34 = vpop.f32.mrf.mxu3  ;;  %v3974_v18 = vadd.f32 %v7443_v37, %v3944_v62  ;;  %v3858_v26 = vadd.f32 %v3857_v24, %v3840_v0  ;;  %v3823_v15 = vpop.f32.mrf.mxu0 }
 0x27c   : > { %v3841_v29 = vpop.f32.mrf.mxu1 }
 0x27d   : > { %v3986_v35 = vadd.f32 %v3980_v25, %v3974_v18  ;;  %v3876_v31 = vadd.f32 %v3875_v34, %v3858_v26 }
 0x27f   : > { %v3992_v7 = vmax.f32 %v3986_v35, 0.0  ;;  %v3916_v27 = vadd.f32 %v7419_v20, %v3876_v31  ;;  %v6589_v20 = vld [vmem:[%s7525_s8] ss:$0 sm:$0xff] }
 0x281   : > { %v3996_v8 = vpack.c.bf16 %v3992_v7, %v3990_v2  ;;  %v3946_v41 = vadd.f32 %v7441_v19, %v3916_v27 }
 0x282   : > { %v3859_v3 = vpop.f32.mrf.mxu2 }
 0x283   : > { %v3877_v50 = vpop.f32.mrf.mxu3  ;;  %v3976_v42 = vadd.f32 %v7449_v23, %v3946_v41  ;;  %4157 = vmatmul.bf16.vlgmr.msra.gmra.mxu1 %v3996_v8 }
 0x285   : > { %v3988_v37 = vadd.f32 %v3980_v25, %v3976_v42 }
 0x287   : > { %v3994_v16 = vmax.f32 %v3988_v37, 0.0 }
 0x289   : > { %v3998_v4 = vpack.c.bf16 %v3994_v16, %v3994_v16 }
 0x28b   : > { %4162 = vmatmul.bf16.vlgmr.msra.gmra.mxu3 %v3998_v4 }
 0x2c0   : > { %v4140_v61 = vpop.f32.mrf.mxu0 }
 0x2c1   : > { %v4141_v5 = vadd.f32 %v6589_v20, %v4140_v61 }
 0x2c8   : > { %v4142_v23 = vpop.f32.mrf.mxu0 }
 0x2c9   : > { %v4143_v32 = vadd.f32 %v6589_v20, %v4142_v23 }
 0x2ce   : > { %v4145_v53 = vpop.f32.mrf.mxu2 }
 0x2cf   : > { %v4146_v47 = vadd.f32 %v6589_v20, %v4145_v53 }
 0x2d6   : > { %v4147_v6 = vpop.f32.mrf.mxu2 }
 0x300   : > { %v4158_v19 = vpop.f32.mrf.mxu1 }
 0x301   : > { %v4159_v36 = vadd.f32 %v4158_v19, %v4141_v5 }
 0x303   : > { %4167 = vst [vmem:[%s461_s18] sm:$0xff] %v4159_v36 }
 0x308   : > { %v4160_v10 = vpop.f32.mrf.mxu1 }
 0x309   : > { %v4161_v28 = vadd.f32 %v4160_v10, %v4143_v32 }
 0x30b   : > { %4168 = vst [vmem:[%s461_s18 + $0x8] sm:$0xff] %v4161_v28 }
 0x30e   : > { %v4163_v44 = vpop.f32.mrf.mxu3 }
 0x30f   : > { %v4164_v38 = vadd.f32 %v4163_v44, %v4146_v47 }
 0x311   : > { %4169 = vst [vmem:[%s461_s18 + $0x10] sm:$0xff] %v4164_v38 }
 0x312   : > { %6767 = shalt.err (!%p6764_p12)
}
 0x313   : > { %s6833_s14 = smov 128   ;;  %s6834_s19 = smov 8  }
 0x314   : > { %6504 = dma.vmem_to_hbm [thread:$0]  (%p6970_p7), %s4184_s28, 384, %s4186_s21, %s4171_s15, %s6833_s14, %s6833_s14, %s6834_s19  }
 0x316   : > { %v4165_v48 = vpop.f32.mrf.mxu3 }
 0x317 PF: > { %s7557_s23 = sld [smem:[#allocation17_spill]]  ;;  %p7559_p13 = scmp.ge.s32.totalorder %s6818_s12, 2 }
 0x319   : > { %p6524_p0 = pnand %p7559_p13, %p6920_p6 }
 0x31b   : > { %p6525_p3 = pneg %p6524_p0 }
 0x31d   : > { %s4200_s29 = sand.u32 1, %s7557_s23  }
 0x31e   : > { %s4201_s11 = scalar_lea.sflag [#allocation4], %s4200_s29 }
 0x31f   : > { %6801 = dma.done.wait (%p6525_p3), %s4201_s11, 384  }
 0x320   : > { %6803 = vsyncadd (%p6525_p3), %s4201_s11, 4294966912  ;;  %s7560_s12 = sld [smem:[#allocation20_spill]]  ;;  %s7563_s30 = smov %s6810_s10 }
 0x321   : > { %s7561_s17 = sld [smem:[#allocation18_spill]] }
 0x322   : > { %s7562_s11 = sld [smem:[#allocation21_spill]] }
 0x326   : > { %p26_p5 = scmp.ge.s32.totalorder %s7560_s12, 4  }
 0x327   : > { %s7564_s10 = smov %s7561_s17 }
 0x328   :  { %28 = sbr.rel (!%p26_p5) target bundleno = 13 (0xd), region = 129 }
 0x32d   :  { %4207 = vsyncpa [#allocation3], 1 }
 0x32e   :  { %4209 = vsyncpa [#allocation3 + $0x1], 1 }
 0x32f   :  { %4210 = vsyncpa [#allocation6], 1 }
 0x330   :  { %4212 = vsyncpa [#allocation6 + $0x1], 1 }
 0x331   :  { %4213 = vsyncpa [#allocation9], 1 }
 0x332   :  { %4214 = vsyncpa [#allocation4], 1 }
 0x333   :  { %4216 = vsyncpa [#allocation4 + $0x1], 1 }

</bundles_post_ra>
